<compile_context>
chip_gen: v6e
topology: v6e:2x2x1
jax: 0.10.0
libtpu: 0.0.40
codegen_flags: <defaults>
</compile_context>

<pallas_src>
import functools

import jax
import jax.numpy as jnp
from jax.experimental import pallas as pl
from jax.experimental.pallas import tpu as pltpu


def _kmeans_kernel(x_ref, c_ref, new_c_ref, counts_ref, sums_acc, cnt_acc, *,
                   n_total):
    i = pl.program_id(0)

    @pl.when(i == 0)
    def _init():
        sums_acc[...] = jnp.zeros_like(sums_acc)
        cnt_acc[...] = jnp.zeros_like(cnt_acc)

    x = x_ref[...].astype(jnp.float32)          # (tile_n, D)
    c = c_ref[...].astype(jnp.float32)          # (K, D)
    tile_n, D = x.shape
    K = c.shape[0]

    # ---- assignment: argmin_k ||x - c_k||^2 == argmin_k (||c_k||^2 - 2 x.c_k)
    xc = jax.lax.dot_general(x, c, (((1,), (1,)), ((), ())),
                             preferred_element_type=jnp.float32)   # (tile_n, K) MXU
    c_sq = jnp.sum(c * c, axis=-1)[None, :]                        # (1, K)
    d2 = c_sq - 2.0 * xc                                           # (tile_n, K)

    dmin = jnp.min(d2, axis=-1, keepdims=True)                     # (tile_n, 1)
    col_idx = jax.lax.broadcasted_iota(jnp.int32, (tile_n, K), 1)
    # first-index tie-break, matching torch.min
    assign = jnp.min(jnp.where(d2 <= dmin, col_idx, K), axis=-1)   # (tile_n,)
    onehot = (col_idx == assign[:, None]).astype(jnp.float32)      # (tile_n, K)

    # mask rows past N in the (possibly partial) last tile
    if n_total % tile_n != 0:
        row = jax.lax.broadcasted_iota(jnp.int32, (tile_n, 1), 0) + i * tile_n
        valid = row < n_total
        onehot = jnp.where(valid, onehot, 0.0)
        x = jnp.where(valid, x, 0.0)

    # ---- per-cluster sums & counts: two MXU contractions over the point axis
    ones_col = jnp.ones((tile_n, 1), jnp.float32)
    sums_acc[...] += jax.lax.dot_general(
        onehot, x, (((0,), (0,)), ((), ())),
        preferred_element_type=jnp.float32)                        # (K, D)
    cnt_acc[...] += jax.lax.dot_general(
        onehot, ones_col, (((0,), (0,)), ((), ())),
        preferred_element_type=jnp.float32)                        # (K, 1)

    # ---- finalize: mean of members; keep old center for empty clusters
    @pl.when(i == pl.num_programs(0) - 1)
    def _finalize():
        counts = cnt_acc[...]                                      # (K, 1)
        has_members = counts > 0.0
        safe = jnp.maximum(counts, 1.0)
        new_c = jnp.where(has_members, sums_acc[...] / safe, c)
        new_c_ref[...] = new_c.astype(new_c_ref.dtype)
        counts_ref[...] = counts.astype(counts_ref.dtype)


def kmeans_forward(x, cluster_centers, *, tile_n=4096,
                   vmem_limit_bytes=32 * 1024 * 1024):
    """x: (N, D) f32, cluster_centers: (K, D) f32 ->
       (new_centers (K, D) f32, counts (K,) f32)."""
    N, D = x.shape
    K, _ = cluster_centers.shape

    tile_n = min(tile_n, N)
    if tile_n < N:
        tile_n = max(8, (tile_n // 8) * 8)      # sublane dim must be 8-aligned
    grid = (pl.cdiv(N, tile_n),)

    cost = pl.CostEstimate(
        flops=2 * N * K * D            # distance matmul
        + 2 * N * K * (D + 1)          # sums + counts contractions
        + 6 * N * K,                   # argmin / one-hot VPU work
        transcendentals=0,
        bytes_accessed=N * D * 4 + 2 * K * D * 4 + K * 4,
    )

    new_c, counts = pl.pallas_call(
        functools.partial(_kmeans_kernel, n_total=N),
        out_shape=(
            jax.ShapeDtypeStruct((K, D), jnp.float32),
            jax.ShapeDtypeStruct((K, 1), jnp.float32),
        ),
        grid_spec=pltpu.PrefetchScalarGridSpec(
            num_scalar_prefetch=0,
            grid=grid,
            in_specs=[
                pl.BlockSpec((tile_n, D), lambda i: (i, 0)),   # x streamed over N
                pl.BlockSpec((K, D), lambda i: (0, 0)),        # centers resident
            ],
            out_specs=(
                pl.BlockSpec((K, D), lambda i: (0, 0)),        # accumulator outputs
                pl.BlockSpec((K, 1), lambda i: (0, 0)),
            ),
            scratch_shapes=[
                pltpu.VMEM((K, D), jnp.float32),   # per-cluster coordinate sums
                pltpu.VMEM((K, 1), jnp.float32),   # per-cluster counts
            ],
        ),
        compiler_params=pltpu.CompilerParams(
            dimension_semantics=("arbitrary",),
            vmem_limit_bytes=vmem_limit_bytes,
        ),
        cost_estimate=cost,
        input_output_aliases={1: 0},   # reuse centers HBM buffer for new centers
    )(x, cluster_centers)
    return new_c, counts[:, 0]


def kmeans_reference(x, cluster_centers):
    """Pure-JAX reference mirroring the PyTorch forward."""
    d = jnp.sqrt(jnp.maximum(
        jnp.sum((x[:, None, :] - cluster_centers[None, :, :]) ** 2, axis=-1), 0.0))
    assign = jnp.argmin(d, axis=-1)
    K = cluster_centers.shape[0]
    counts = jnp.zeros((K,), jnp.float32).at[assign].add(1.0)
    onehot = jax.nn.one_hot(assign, K, dtype=jnp.float32)
    sums = onehot.T @ x
    new_c = jnp.where((counts > 0)[:, None],
                      sums / jnp.maximum(counts, 1.0)[:, None],
                      cluster_centers)
    return new_c, counts


if __name__ == "__main__":
    key = jax.random.PRNGKey(0)
    k_emb, k_x, k_c, k_tc, k_lbl, k_nx, k_ic = jax.random.split(key, 7)

    # ---- test 1: shapes implied by the module (small, single tile) ----------
    vocab, D = 100, 32
    embedding_weights = jax.random.normal(k_emb, (vocab, D), dtype=jnp.float32)
    num_clusters = 8
    N = 128

    cluster_centers = jax.random.normal(
        k_c, (num_clusters, embedding_weights.shape[-1]), dtype=jnp.float32)
    x = jax.random.normal(k_x, (N, D), dtype=jnp.float32)

    ref_centers, ref_counts = kmeans_reference(x, cluster_centers)
    new_centers, counts = kmeans_forward(x, cluster_centers)
    jax.block_until_ready((new_centers, counts))

    assert new_centers.shape == (num_clusters, D)
    assert counts.shape == (num_clusters,)
    assert jnp.allclose(counts, ref_counts), "counts mismatch"
    assert jnp.allclose(new_centers, ref_centers, atol=1e-4, rtol=1e-4), "centers mismatch"
    assert float(jnp.sum(counts)) == float(N)

    # ---- test 2: multi-tile grid + partial last tile (well-separated data) --
    N2, K2 = 1000, 8
    true_c = jax.random.normal(k_tc, (K2, D), dtype=jnp.float32) * 20.0
    labels = jax.random.randint(k_lbl, (N2,), 0, K2)
    x2 = true_c[labels] + 0.1 * jax.random.normal(k_nx, (N2, D), dtype=jnp.float32)
    init_c = true_c + 0.05 * jax.random.normal(k_ic, (K2, D), dtype=jnp.float32)

    ref_c2, ref_n2 = kmeans_reference(x2, init_c)
    c2, n2 = kmeans_forward(x2, init_c, tile_n=256)   # grid=(4,), partial last tile
    jax.block_until_ready((c2, n2))

    assert jnp.allclose(n2, ref_n2), "tiled counts mismatch"
    assert jnp.allclose(c2, ref_c2, atol=1e-4, rtol=1e-4), "tiled centers mismatch"
    assert float(jnp.sum(n2)) == float(N2)

    print("KERNEL_OK")
</pallas_src>

<mosaic_0001>
module attributes {stable_mosaic.version = 11 : i64} {
  func.func @_kmeans_kernel(%arg0: i32, %arg1: memref<128x32xf32, #tpu.memory_space<vmem>>, %arg2: memref<8x32xf32, #tpu.memory_space<vmem>>, %arg3: memref<8x32xf32, #tpu.memory_space<vmem>>, %arg4: memref<8x1xf32, #tpu.memory_space<vmem>>, %arg5: memref<8x32xf32, #tpu.memory_space<vmem>>, %arg6: memref<8x1xf32, #tpu.memory_space<vmem>>) attributes {dimension_semantics = [#tpu.dimension_semantics<arbitrary>], iteration_bounds = array<i64: 1>, scalar_prefetch = 0 : i64, scratch_operands = 2 : i64, tpu.core_type = #tpu.core_type<tc>, window_params = [{transform_indices = @transform_0, window_bounds = array<i64: 128, 32>}, {pipeline_mode = #tpu.pipeline_mode<synchronous>, transform_indices = @transform_1, window_bounds = array<i64: 8, 32>}, {pipeline_mode = #tpu.pipeline_mode<synchronous>, transform_indices = @transform_2, window_bounds = array<i64: 8, 32>}, {pipeline_mode = #tpu.pipeline_mode<synchronous>, transform_indices = @transform_3, window_bounds = array<i64: 8, 1>}]} {
    %c0_i32 = arith.constant 0 : i32
    %0 = arith.cmpi eq, %arg0, %c0_i32 : i32
    %1 = arith.extui %0 : i1 to i32
    %c0_i32_0 = arith.constant 0 : i32
    %2 = arith.cmpi ne, %1, %c0_i32_0 : i32
    scf.if %2 {
      %cst_21 = arith.constant 0.000000e+00 : f32
      %38 = vector.broadcast %cst_21 : f32 to vector<8x32xf32>
      %c0_22 = arith.constant 0 : index
      %c0_23 = arith.constant 0 : index
      %39 = vector.load %arg5[%c0_22, %c0_23] : memref<8x32xf32, #tpu.memory_space<vmem>>, vector<8x32xf32>
      tpu.vector_store %arg5[%c0_22, %c0_23], %38 {strides = array<i32>} : memref<8x32xf32, #tpu.memory_space<vmem>>, vector<8x32xf32>,
      %cst_24 = arith.constant 0.000000e+00 : f32
      %40 = vector.broadcast %cst_24 : f32 to vector<8x1xf32>
      %c0_25 = arith.constant 0 : index
      %c0_26 = arith.constant 0 : index
      %41 = vector.load %arg6[%c0_25, %c0_26] : memref<8x1xf32, #tpu.memory_space<vmem>>, vector<8x1xf32>
      tpu.vector_store %arg6[%c0_25, %c0_26], %40 {strides = array<i32>} : memref<8x1xf32, #tpu.memory_space<vmem>>, vector<8x1xf32>,
    } else {
    }
    %c0 = arith.constant 0 : index
    %c0_1 = arith.constant 0 : index
    %3 = vector.load %arg1[%c0, %c0_1] : memref<128x32xf32, #tpu.memory_space<vmem>>, vector<128x32xf32>
    %c0_2 = arith.constant 0 : index
    %c0_3 = arith.constant 0 : index
    %4 = vector.load %arg2[%c0_2, %c0_3] : memref<8x32xf32, #tpu.memory_space<vmem>>, vector<8x32xf32>
    %cst = arith.constant dense<0.000000e+00> : vector<128x8xf32>
    %5 = tpu.matmul %3, %4, %cst {dimension_numbers = #tpu.dot_dimension_numbers<[1], [1], [0], [0], [0, 0, 1, 0], [], []>} : vector<128x32xf32>, vector<8x32xf32>, vector<128x8xf32> -> vector<128x8xf32>
    %6 = arith.mulf %4, %4 : vector<8x32xf32>
    %cst_4 = arith.constant dense<0.000000e+00> : vector<8xf32>
    %7 = vector.multi_reduction <add>, %6, %cst_4 [1] : vector<8x32xf32> to vector<8xf32>
    %8 = vector.shape_cast %7 : vector<8xf32> to vector<1x8xf32>
    %cst_5 = arith.constant 2.000000e+00 : f32
    %9 = vector.broadcast %cst_5 : f32 to vector<128x8xf32>
    %10 = arith.mulf %9, %5 : vector<128x8xf32>
    %11 = vector.broadcast %8 : vector<1x8xf32> to vector<128x8xf32>
    %12 = arith.subf %11, %10 : vector<128x8xf32>
    %cst_6 = arith.constant dense<0x7F800000> : vector<128xf32>
    %13 = vector.multi_reduction <minimumf>, %12, %cst_6 [1] : vector<128x8xf32> to vector<128xf32>
    %14 = vector.shape_cast %13 : vector<128xf32> to vector<128x1xf32>
    %15 = tpu.iota {dimensions = array<i32: 1>} : vector<128x8xi32>
    %16 = vector.broadcast %14 : vector<128x1xf32> to vector<128x8xf32>
    %17 = arith.cmpf ole, %12, %16 : vector<128x8xf32>
    %c8_i32 = arith.constant 8 : i32
    %18 = vector.broadcast %c8_i32 : i32 to vector<128x8xi32>
    %19 = arith.select %17, %15, %18 : vector<128x8xi1>, vector<128x8xi32>
    %cst_7 = arith.constant dense<2147483647> : vector<128xi32>
    %20 = vector.multi_reduction <minsi>, %19, %cst_7 [1] : vector<128x8xi32> to vector<128xi32>
    %21 = vector.shape_cast %20 : vector<128xi32> to vector<128x1xi32>
    %22 = vector.broadcast %21 : vector<128x1xi32> to vector<128x8xi32>
    %23 = arith.cmpi eq, %15, %22 : vector<128x8xi32>
    %24 = arith.extui %23 : vector<128x8xi1> to vector<128x8xi32>
    %25 = arith.sitofp %24 : vector<128x8xi32> to vector<128x8xf32>
    %cst_8 = arith.constant 1.000000e+00 : f32
    %26 = vector.broadcast %cst_8 : f32 to vector<128x1xf32>
    %c0_9 = arith.constant 0 : index
    %c0_10 = arith.constant 0 : index
    %27 = vector.load %arg5[%c0_9, %c0_10] : memref<8x32xf32, #tpu.memory_space<vmem>>, vector<8x32xf32>
    %cst_11 = arith.constant dense<0.000000e+00> : vector<8x32xf32>
    %28 = tpu.matmul %25, %3, %cst_11 {dimension_numbers = #tpu.dot_dimension_numbers<[0], [0], [1], [1], [0, 1, 1, 1], [], []>} : vector<128x8xf32>, vector<128x32xf32>, vector<8x32xf32> -> vector<8x32xf32>
    %29 = arith.addf %27, %28 : vector<8x32xf32>
    %c0_12 = arith.constant 0 : index
    %c0_13 = arith.constant 0 : index
    %30 = vector.load %arg5[%c0_12, %c0_13] : memref<8x32xf32, #tpu.memory_space<vmem>>, vector<8x32xf32>
    tpu.vector_store %arg5[%c0_12, %c0_13], %29 {strides = array<i32>} : memref<8x32xf32, #tpu.memory_space<vmem>>, vector<8x32xf32>,
    %c0_14 = arith.constant 0 : index
    %c0_15 = arith.constant 0 : index
    %31 = vector.load %arg6[%c0_14, %c0_15] : memref<8x1xf32, #tpu.memory_space<vmem>>, vector<8x1xf32>
    %cst_16 = arith.constant dense<0.000000e+00> : vector<8x1xf32>
    %32 = tpu.matmul %25, %26, %cst_16 {dimension_numbers = #tpu.dot_dimension_numbers<[0], [0], [1], [1], [0, 1, 1, 1], [], []>} : vector<128x8xf32>, vector<128x1xf32>, vector<8x1xf32> -> vector<8x1xf32>
    %33 = arith.addf %31, %32 : vector<8x1xf32>
    %c0_17 = arith.constant 0 : index
    %c0_18 = arith.constant 0 : index
    %34 = vector.load %arg6[%c0_17, %c0_18] : memref<8x1xf32, #tpu.memory_space<vmem>>, vector<8x1xf32>
    tpu.vector_store %arg6[%c0_17, %c0_18], %33 {strides = array<i32>} : memref<8x1xf32, #tpu.memory_space<vmem>>, vector<8x1xf32>,
    %c0_i32_19 = arith.constant 0 : i32
    %35 = arith.cmpi eq, %arg0, %c0_i32_19 : i32
    %36 = arith.extui %35 : i1 to i32
    %c0_i32_20 = arith.constant 0 : i32
    %37 = arith.cmpi ne, %36, %c0_i32_20 : i32
    scf.if %37 {
      %c0_21 = arith.constant 0 : index
      %c0_22 = arith.constant 0 : index
      %38 = vector.load %arg6[%c0_21, %c0_22] : memref<8x1xf32, #tpu.memory_space<vmem>>, vector<8x1xf32>
      %cst_23 = arith.constant 0.000000e+00 : f32
      %39 = vector.broadcast %cst_23 : f32 to vector<8x1xf32>
      %40 = arith.cmpf ogt, %38, %39 : vector<8x1xf32>
      %cst_24 = arith.constant 1.000000e+00 : f32
      %41 = vector.broadcast %cst_24 : f32 to vector<8x1xf32>
      %42 = arith.maximumf %38, %41 : vector<8x1xf32>
      %c0_25 = arith.constant 0 : index
      %c0_26 = arith.constant 0 : index
      %43 = vector.load %arg5[%c0_25, %c0_26] : memref<8x32xf32, #tpu.memory_space<vmem>>, vector<8x32xf32>
      %44 = vector.broadcast %42 : vector<8x1xf32> to vector<8x32xf32>
      %45 = arith.divf %43, %44 : vector<8x32xf32>
      %46 = vector.shape_cast %40 : vector<8x1xi1> to vector<8x1xi1>
      %47 = vector.broadcast %46 : vector<8x1xi1> to vector<8x32xi1>
      %48 = arith.select %47, %45, %4 : vector<8x32xi1>, vector<8x32xf32>
      %c0_27 = arith.constant 0 : index
      %c0_28 = arith.constant 0 : index
      %49 = vector.load %arg3[%c0_27, %c0_28] : memref<8x32xf32, #tpu.memory_space<vmem>>, vector<8x32xf32>
      tpu.vector_store %arg3[%c0_27, %c0_28], %48 {strides = array<i32>} : memref<8x32xf32, #tpu.memory_space<vmem>>, vector<8x32xf32>,
      %c0_29 = arith.constant 0 : index
      %c0_30 = arith.constant 0 : index
      %50 = vector.load %arg4[%c0_29, %c0_30] : memref<8x1xf32, #tpu.memory_space<vmem>>, vector<8x1xf32>
      tpu.vector_store %arg4[%c0_29, %c0_30], %38 {strides = array<i32>} : memref<8x1xf32, #tpu.memory_space<vmem>>, vector<8x1xf32>,
    } else {
    }
    return
  }
  func.func @transform_0(%arg0: i32) -> (i32, i32) {
    %c0_i32 = arith.constant 0 : i32
    %c0_i32_0 = arith.constant 0 : i32
    return %arg0, %c0_i32 : i32, i32
  }
  func.func @transform_1(%arg0: i32) -> (i32, i32) {
    %c0_i32 = arith.constant 0 : i32
    %c0_i32_0 = arith.constant 0 : i32
    %c0_i32_1 = arith.constant 0 : i32
    return %c0_i32, %c0_i32_0 : i32, i32
  }
  func.func @transform_2(%arg0: i32) -> (i32, i32) {
    %c0_i32 = arith.constant 0 : i32
    %c0_i32_0 = arith.constant 0 : i32
    %c0_i32_1 = arith.constant 0 : i32
    return %c0_i32, %c0_i32_0 : i32, i32
  }
  func.func @transform_3(%arg0: i32) -> (i32, i32) {
    %c0_i32 = arith.constant 0 : i32
    %c0_i32_0 = arith.constant 0 : i32
    %c0_i32_1 = arith.constant 0 : i32
    return %c0_i32, %c0_i32_0 : i32, i32
  }
}

</mosaic_0001>

<bundles_post_ra>
// kernel: tpu_custom_call.1
= control target key start
LH: loop header
LB: loop body
LE: loop exit
PB: predicated region body
PF: predicated region fallthrough
CT: control target
= control target key end

     0   :  { %vm17_vm0 = vcmask 261120   ;;  %v8454_v19 = vlaneseq  ;;  %vm2449_vm1 = vcmask 1041409   ;;  %vm2451_vm2 = vcmask 1042434   ;;  %s8449_s1 = inlined_call_operand.vmem [shape: f32[8,32], index: 1, kind: input, shape index: {}, may-alias: {1,2}]   ;;  %s8450_s0 = inlined_call_operand.vmem [shape: f32[128,32], index: 0, kind: input, shape index: {}]   ;;  %s8451_s3 = inlined_call_operand.vmem [shape: f32[8,1], index: 3, kind: output, shape index: {1}]   ;;  %s8452_s2 = inlined_call_operand.vmem [shape: f32[8,32], index: 2, kind: output, shape index: {0}, may-alias: {1,2}]  }
   0x1   :  { %v37_v0 = vld [vmem:[%s8449_s1] sm:$0xff]  ;;  %v22_v3 = vld [vmem:[%s8450_s0 + $0x8] sm:$0xff]  ;;  %v23_v4 = vld [vmem:[%s8450_s0 + $0x10] sm:$0xff]  ;;  %vm2453_vm3 = vcmask 1043459   ;;  %vm2455_vm4 = vcmask 1044484   ;;  %vm2457_vm5 = vcmask 1045509  }
   0x2   :  { %v21_v1 = vld [vmem:[%s8450_s0] sm:$0xff]  ;;  %5137 = vmatprep.subr.msk.mxu0 %vm17_vm0, %v37_v0  ;;  %v235_v2 = vmul.f32 %v37_v0, %v37_v0  ;;  %v24_v6 = vld [vmem:[%s8450_s0 + $0x18] sm:$0xff]  ;;  %v26_v8 = vld [vmem:[%s8450_s0 + $0x28] sm:$0xff]  ;;  %v5353_v20 = vshrl.u32 %v8454_v19, 7  ;;  %vm2459_vm6 = vcmask 1046534   ;;  %vm2461_vm7 = vcmask 1047559  }
   0x3   :  { %5139 = vmatprep.mubr.msk.f32.mxu0 %vm17_vm0, %v21_v1  ;;  %5138 = vmatpush3.xpose.msk.msra.mxu0 %vm17_vm0, %v37_v0  ;;  %v25_v7 = vld [vmem:[%s8450_s0 + $0x20] sm:$0xff]  ;;  %v27_v9 = vld [vmem:[%s8450_s0 + $0x30] sm:$0xff]  ;;  %v28_v10 = vld [vmem:[%s8450_s0 + $0x38] sm:$0xff]  ;;  %vm2584_vm8 = vcmask 64512  }
   0x4   :  { %v236_v5 = vsel %vm17_vm0, %v235_v2, 0.0  ;;  %v29_v11 = vld [vmem:[%s8450_s0 + $0x40] sm:$0xff]  ;;  %v30_v12 = vld [vmem:[%s8450_s0 + $0x48] sm:$0xff]  ;;  %v31_v13 = vld [vmem:[%s8450_s0 + $0x50] sm:$0xff]  ;;  %8592 = vst [vmem:[#allocation4_spill] sm:$0xff] %v5353_v20  ;;  %v5356_v21 = vsub.s32 1, %v5353_v20 }
   0x5   :  { %237 = vadd.xlane.f32.xlu0 %v236_v5  ;;  %v32_v14 = vld [vmem:[%s8450_s0 + $0x58] sm:$0xff]  ;;  %v33_v15 = vld [vmem:[%s8450_s0 + $0x60] sm:$0xff]  ;;  %v34_v16 = vld [vmem:[%s8450_s0 + $0x68] sm:$0xff]  ;;  %v5359_v22 = vsub.s32 0, %v5353_v20  ;;  %v5364_v27 = vsub.s32 3, %v5353_v20  ;;  %v5367_v28 = vsub.s32 2, %v5353_v20 }
   0x6   :  { %5140 = vmatmul.mubr.msk.f32.vlgmr.msra.gmra.mxu0 %vm17_vm0, %v22_v3  ;;  %v35_v17 = vld [vmem:[%s8450_s0 + $0x70] sm:$0xff]  ;;  %v36_v18 = vld [vmem:[%s8450_s0 + $0x78] sm:$0xff]  ;;  %8593 = vst [vmem:[#allocation5_spill] sm:$0xff] %v5356_v21  ;;  %v5372_v31 = vsub.s32 5, %v5353_v20  ;;  %v5375_v32 = vsub.s32 4, %v5353_v20  ;;  %v5380_v35 = vsub.s32 7, %v5353_v20 }
   0x7   :  { %5142 = vmatprep.mubr.msk.f32.mxu0 %vm17_vm0, %v23_v4  ;;  %8594 = vst [vmem:[#allocation6_spill] sm:$0xff] %v5359_v22  ;;  %8595 = vst [vmem:[#allocation7_spill] sm:$0xff] %v5364_v27  ;;  %v5383_v36 = vsub.s32 6, %v5353_v20 }
   0x8   :  { %8596 = vst [vmem:[#allocation8_spill] sm:$0xff] %v5367_v28  ;;  %8597 = vst [vmem:[#allocation9_spill] sm:$0xff] %v5372_v31 }
   0x9   :  { %8598 = vst [vmem:[#allocation10_spill] sm:$0xff] %v5375_v32  ;;  %8599 = vst [vmem:[#allocation11_spill] sm:$0xff] %v5380_v35 }
   0xa   :  { %5143 = vmatmul.mubr.msk.f32.gmra.mxu0 %vm17_vm0, %v24_v6  ;;  %8600 = vst [vmem:[#allocation12_spill] sm:$0xff] %v5383_v36 }
   0xb   :  { %5145 = vmatprep.mubr.msk.f32.mxu0 %vm17_vm0, %v25_v7 }
   0xe   :  { %5146 = vmatmul.mubr.msk.f32.gmra.mxu0 %vm17_vm0, %v26_v8 }
   0xf   :  { %5148 = vmatprep.mubr.msk.f32.mxu0 %vm17_vm0, %v27_v9 }
  0x12   :  { %5149 = vmatmul.mubr.msk.f32.gmra.mxu0 %vm17_vm0, %v28_v10 }
  0x13   :  { %5151 = vmatprep.mubr.msk.f32.mxu0 %vm17_vm0, %v29_v11 }
  0x16   :  { %5152 = vmatmul.mubr.msk.f32.gmra.mxu0 %vm17_vm0, %v30_v12 }
  0x17   :  { %5154 = vmatprep.mubr.msk.f32.mxu0 %vm17_vm0, %v31_v13 }
  0x1a   :  { %5155 = vmatmul.mubr.msk.f32.gmra.mxu0 %vm17_vm0, %v32_v14 }
  0x1b   :  { %5157 = vmatprep.mubr.msk.f32.mxu0 %vm17_vm0, %v33_v15 }
  0x1e   :  { %5158 = vmatmul.mubr.msk.f32.gmra.mxu0 %vm17_vm0, %v34_v16 }
  0x1f   :  { %5160 = vmatprep.mubr.msk.f32.mxu0 %vm17_vm0, %v35_v17 }
  0x22   :  { %5161 = vmatmul.mubr.msk.f32.gmra.mxu0 %vm17_vm0, %v36_v18 }
  0xc6   :  { %v5141_v23 = vpop.f32.mrf.mxu0 }
  0xc7   :  { %v240_v24 = vmul.f32 2.0, %v5141_v23 }
  0xc8   :  { %v156_v37 = vpop.f32.mrf.mxu0 }
  0xc9   :  { %v337_v25 = vrot.slane %v240_v24, %v5356_v21  ;;  %v330_v26 = vrot.slane %v240_v24, %v5359_v22  ;;  %v351_v29 = vrot.slane %v240_v24, %v5364_v27  ;;  %v344_v30 = vrot.slane %v240_v24, %v5367_v28 }
  0xca   :  { %v365_v33 = vrot.slane %v240_v24, %v5372_v31  ;;  %v358_v34 = vrot.slane %v240_v24, %v5375_v32  ;;  %v5144_v38 = vpop.f32.mrf.mxu0  ;;  %v239_v39 = vmul.f32 2.0, %v156_v37  ;;  %v379_v40 = vrot.slane %v240_v24, %v5380_v35 }
  0xcb   :  { %339 = vbcast.lane.b32.xlu1 %v337_v25, 256  ;;  %332 = vbcast.lane.b32.xlu0 %v330_v26, 256  ;;  %v372_v41 = vrot.slane %v240_v24, %v5383_v36  ;;  %v242_v42 = vmul.f32 2.0, %v5144_v38 }
  0xcc   :  { %v281_v43 = vrot.slane %v239_v39, %v5356_v21  ;;  %v274_v44 = vrot.slane %v239_v39, %v5359_v22  ;;  %v288_v46 = vrot.slane %v239_v39, %v5367_v28  ;;  %v295_v48 = vrot.slane %v239_v39, %v5364_v27  ;;  %v166_v50 = vpop.f32.mrf.mxu0 }
  0xcd   :  { %v442_v45 = vrot.slane %v242_v42, %v5359_v22  ;;  %v456_v47 = vrot.slane %v242_v42, %v5367_v28  ;;  %v470_v49 = vrot.slane %v242_v42, %v5375_v32  ;;  %v302_v51 = vrot.slane %v239_v39, %v5375_v32 }
  0xce   :  { %v241_v52 = vmul.f32 2.0, %v166_v50  ;;  %v484_v53 = vrot.slane %v242_v42, %v5383_v36  ;;  %v309_v54 = vrot.slane %v239_v39, %v5372_v31  ;;  %v316_v56 = vrot.slane %v239_v39, %v5383_v36  ;;  %v5147_v61 = vpop.f32.mrf.mxu0 }
  0xcf   :  { %353 = vbcast.lane.b32.xlu1 %v351_v29, 256  ;;  %346 = vbcast.lane.b32.xlu0 %v344_v30, 256  ;;  %v323_v58 = vrot.slane %v239_v39, %v5380_v35  ;;  %v449_v59 = vrot.slane %v242_v42, %v5356_v21  ;;  %v244_v62 = vmul.f32 2.0, %v5147_v61  ;;  %v463_v63 = vrot.slane %v242_v42, %v5364_v27 }
  0xd0   :  { %v386_v55 = vrot.slane %v241_v52, %v5359_v22  ;;  %v400_v57 = vrot.slane %v241_v52, %v5367_v28  ;;  %v414_v60 = vrot.slane %v241_v52, %v5375_v32  ;;  %v428_v0 = vrot.slane %v241_v52, %v5383_v36  ;;  %v176_v6 = vpop.f32.mrf.mxu0 }
  0xd1   :  { %v554_v1 = vrot.slane %v244_v62, %v5359_v22  ;;  %v477_v2 = vrot.slane %v242_v42, %v5372_v31  ;;  %v568_v3 = vrot.slane %v244_v62, %v5367_v28  ;;  %v491_v4 = vrot.slane %v242_v42, %v5380_v35 }
  0xd2   :  { %v582_v5 = vrot.slane %v244_v62, %v5375_v32  ;;  %v393_v7 = vrot.slane %v241_v52, %v5356_v21  ;;  %v243_v8 = vmul.f32 2.0, %v176_v6  ;;  %v596_v9 = vrot.slane %v244_v62, %v5383_v36  ;;  %v5150_v17 = vpop.f32.mrf.mxu0 }
  0xd3   :  { %367 = vbcast.lane.b32.xlu1 %v365_v33, 256  ;;  %360 = vbcast.lane.b32.xlu0 %v358_v34, 256  ;;  %v407_v10 = vrot.slane %v241_v52, %v5364_v27  ;;  %v421_v12 = vrot.slane %v241_v52, %v5372_v31  ;;  %v435_v14 = vrot.slane %v241_v52, %v5380_v35  ;;  %v246_v18 = vmul.f32 2.0, %v5150_v17 }
  0xd4   :  { %v498_v11 = vrot.slane %v243_v8, %v5359_v22  ;;  %v512_v13 = vrot.slane %v243_v8, %v5367_v28  ;;  %v561_v15 = vrot.slane %v244_v62, %v5356_v21  ;;  %v526_v16 = vrot.slane %v243_v8, %v5375_v32  ;;  %v186_v34 = vpop.f32.mrf.mxu0 }
  0xd5   :  { %v575_v23 = vrot.slane %v244_v62, %v5364_v27  ;;  %v540_v24 = vrot.slane %v243_v8, %v5383_v36  ;;  %v666_v25 = vrot.slane %v246_v18, %v5359_v22  ;;  %v589_v26 = vrot.slane %v244_v62, %v5372_v31 }
  0xd6   :  { %v680_v29 = vrot.slane %v246_v18, %v5367_v28  ;;  %v603_v30 = vrot.slane %v244_v62, %v5380_v35  ;;  %v694_v33 = vrot.slane %v246_v18, %v5375_v32  ;;  %v505_v37 = vrot.slane %v243_v8, %v5356_v21 }
  0xd7   :  { %381 = vbcast.lane.b32.xlu1 %v379_v40, 256  ;;  %374 = vbcast.lane.b32.xlu0 %v372_v41, 256  ;;  %v5427_v38 = vmul.f32 2.0, %v186_v34  ;;  %v708_v39 = vrot.slane %v246_v18, %v5383_v36  ;;  %v519_v40 = vrot.slane %v243_v8, %v5364_v27  ;;  %v533_v42 = vrot.slane %v243_v8, %v5372_v31 }
  0xd8   :  { %v687_v50 = vrot.slane %v246_v18, %v5364_v27 }
  0xd9   :  { %v610_v41 = vrot.slane %v5427_v38, %v5359_v22  ;;  %v631_v6 = vrot.slane %v5427_v38, %v5364_v27 }
  0xdb   :  { %283 = vbcast.lane.b32.xlu1 %v281_v43, 256  ;;  %276 = vbcast.lane.b32.xlu0 %v274_v44, 256  ;;  %v624_v43 = vrot.slane %v5427_v38, %v5367_v28  ;;  %v547_v44 = vrot.slane %v243_v8, %v5380_v35 }
  0xdf   :  { %290 = vbcast.lane.b32.xlu1 %v288_v46, 256  ;;  %444 = vbcast.lane.b32.xlu0 %v442_v45, 256  ;;  %v673_v45 = vrot.slane %v246_v18, %v5356_v21  ;;  %v638_v46 = vrot.slane %v5427_v38, %v5375_v32 }
  0xe3   :  { %297 = vbcast.lane.b32.xlu1 %v295_v48, 256  ;;  %458 = vbcast.lane.b32.xlu0 %v456_v47, 256  ;;  %v5153_v47 = vpop.f32.mrf.mxu0  ;;  %v5440_v48 = vpop.xlane.xlu0 %237 }
  0xe5   :  { %v196_v62 = vpop.f32.mrf.mxu0 }
  0xe7   :  { %304 = vbcast.lane.b32.xlu1 %v302_v51, 256  ;;  %472 = vbcast.lane.b32.xlu0 %v470_v49, 256  ;;  %v5442_v49 = vmul.f32 2.0, %v5153_v47  ;;  %v652_v51 = vrot.slane %v5427_v38, %v5383_v36  ;;  %v5156_v17 = vpop.f32.mrf.mxu0 }
  0xe9   :  { %v778_v52 = vrot.slane %v5442_v49, %v5359_v22  ;;  %v806_v61 = vrot.slane %v5442_v49, %v5375_v32 }
  0xeb   :  { %311 = vbcast.lane.b32.xlu1 %v309_v54, 256  ;;  %486 = vbcast.lane.b32.xlu0 %v484_v53, 256 }
  0xef   :  { %318 = vbcast.lane.b32.xlu1 %v316_v56, 256  ;;  %388 = vbcast.lane.b32.xlu0 %v386_v55, 256  ;;  %v701_v55 = vrot.slane %v246_v18, %v5372_v31  ;;  %v792_v56 = vrot.slane %v5442_v49, %v5367_v28 }
  0xf3   :  { %325 = vbcast.lane.b32.xlu1 %v323_v58, 256  ;;  %402 = vbcast.lane.b32.xlu0 %v400_v57, 256  ;;  %v8453_v57 = vmov 0  }
  0xf4   :  { %5238 = vset.pattern.permute.xlu0 %v8453_v57  ;;  %5237 = vset.pattern.permute.xlu1 %v8453_v57 }
  0xf7   :  { %451 = vbcast.lane.b32.xlu1 %v449_v59, 256  ;;  %416 = vbcast.lane.b32.xlu0 %v414_v60, 256  ;;  %v715_v60 = vrot.slane %v246_v18, %v5380_v35 }
  0xfb   :  { %465 = vbcast.lane.b32.xlu1 %v463_v63, 256  ;;  %430 = vbcast.lane.b32.xlu0 %v428_v0, 256 }
  0xff   :  { %479 = vbcast.lane.b32.xlu1 %v477_v2, 256  ;;  %556 = vbcast.lane.b32.xlu0 %v554_v1, 256  ;;  %v617_v1 = vrot.slane %v5427_v38, %v5356_v21  ;;  %v5471_v2 = vmul.f32 2.0, %v196_v62 }
 0x101   :  { %v729_v47 = vrot.slane %v5471_v2, %v5356_v21  ;;  %v757_v62 = vrot.slane %v5471_v2, %v5372_v31 }
 0x103   :  { %493 = vbcast.lane.b32.xlu1 %v491_v4, 256  ;;  %570 = vbcast.lane.b32.xlu0 %v568_v3, 256  ;;  %v820_v3 = vrot.slane %v5442_v49, %v5383_v36 }
 0x107   :  { %395 = vbcast.lane.b32.xlu1 %v393_v7, 256  ;;  %584 = vbcast.lane.b32.xlu0 %v582_v5, 256  ;;  %v722_v7 = vrot.slane %v5471_v2, %v5359_v22 }
 0x10b   :  { %409 = vbcast.lane.b32.xlu1 %v407_v10, 256  ;;  %598 = vbcast.lane.b32.xlu0 %v596_v9, 256  ;;  %v645_v10 = vrot.slane %v5427_v38, %v5372_v31 }
 0x10f   :  { %423 = vbcast.lane.b32.xlu1 %v421_v12, 256  ;;  %500 = vbcast.lane.b32.xlu0 %v498_v11, 256  ;;  %v736_v11 = vrot.slane %v5471_v2, %v5367_v28 }
 0x113   :  { %437 = vbcast.lane.b32.xlu1 %v435_v14, 256  ;;  %514 = vbcast.lane.b32.xlu0 %v512_v13, 256  ;;  %v659_v14 = vrot.slane %v5427_v38, %v5380_v35  ;;  %v813_v38 = vrot.slane %v5442_v49, %v5372_v31 }
 0x117   :  { %563 = vbcast.lane.b32.xlu1 %v561_v15, 256  ;;  %528 = vbcast.lane.b32.xlu0 %v526_v16, 256  ;;  %v785_v15 = vrot.slane %v5442_v49, %v5356_v21  ;;  %v750_v16 = vrot.slane %v5471_v2, %v5375_v32 }
 0x11b   :  { %577 = vbcast.lane.b32.xlu1 %v575_v23, 256  ;;  %542 = vbcast.lane.b32.xlu0 %v540_v24, 256  ;;  %v5505_v24 = vmul.f32 2.0, %v5156_v17 }
 0x11f   :  { %591 = vbcast.lane.b32.xlu1 %v589_v26, 256  ;;  %668 = vbcast.lane.b32.xlu0 %v666_v25, 256 }
 0x123   :  { %605 = vbcast.lane.b32.xlu1 %v603_v30, 256  ;;  %682 = vbcast.lane.b32.xlu0 %v680_v29, 256  ;;  %v799_v29 = vrot.slane %v5442_v49, %v5364_v27  ;;  %v764_v30 = vrot.slane %v5471_v2, %v5383_v36 }
 0x127   :  { %507 = vbcast.lane.b32.xlu1 %v505_v37, 256  ;;  %696 = vbcast.lane.b32.xlu0 %v694_v33, 256  ;;  %v890_v33 = vrot.slane %v5505_v24, %v5359_v22 }
 0x12b   :  { %521 = vbcast.lane.b32.xlu1 %v519_v40, 256  ;;  %710 = vbcast.lane.b32.xlu0 %v708_v39, 256  ;;  %v904_v39 = vrot.slane %v5505_v24, %v5367_v28 }
 0x12f   :  { %535 = vbcast.lane.b32.xlu1 %v533_v42, 256  ;;  %612 = vbcast.lane.b32.xlu0 %v610_v41, 256  ;;  %v827_v42 = vrot.slane %v5442_v49, %v5380_v35  ;;  %v932_v49 = vrot.slane %v5505_v24, %v5383_v36 }
 0x133   :  { %549 = vbcast.lane.b32.xlu1 %v547_v44, 256  ;;  %626 = vbcast.lane.b32.xlu0 %v624_v43, 256  ;;  %v918_v43 = vrot.slane %v5505_v24, %v5375_v32  ;;  %v206_v44 = vpop.f32.mrf.mxu0 }
 0x137   :  { %675 = vbcast.lane.b32.xlu1 %v673_v45, 256  ;;  %640 = vbcast.lane.b32.xlu0 %v638_v46, 256 }
 0x13b   :  { %689 = vbcast.lane.b32.xlu1 %v687_v50, 256  ;;  %654 = vbcast.lane.b32.xlu0 %v652_v51, 256  ;;  %v5539_v50 = vmul.f32 2.0, %v206_v44 }
 0x13d   :  { %v5449_v53 = vpop.permute.xlu1 %339  ;;  %v5451_v54 = vpop.permute.xlu0 %332 }
 0x13f   :  { %703 = vbcast.lane.b32.xlu1 %v701_v55, 256  ;;  %780 = vbcast.lane.b32.xlu0 %v778_v52, 256  ;;  %v743_v55 = vrot.slane %v5471_v2, %v5364_v27 }
 0x141   :  { %v5458_v58 = vpop.permute.xlu1 %353  ;;  %v5460_v59 = vpop.permute.xlu0 %346 }
 0x143   :  { %717 = vbcast.lane.b32.xlu1 %v715_v60, 256  ;;  %794 = vbcast.lane.b32.xlu0 %v792_v56, 256  ;;  %v834_v56 = vrot.slane %v5539_v50, %v5359_v22 }
 0x145   :  { %v5465_v63 = vpop.permute.xlu1 %367  ;;  %v5467_v0 = vpop.permute.xlu0 %360 }
 0x147   :  { %619 = vbcast.lane.b32.xlu1 %v617_v1, 256  ;;  %808 = vbcast.lane.b32.xlu0 %v806_v61, 256  ;;  %v848_v1 = vrot.slane %v5539_v50, %v5367_v28 }
 0x149   :  { %v5475_v4 = vpop.permute.xlu1 %381  ;;  %v5477_v5 = vpop.permute.xlu0 %374 }
 0x14b   :  { %633 = vbcast.lane.b32.xlu1 %v631_v6, 256  ;;  %822 = vbcast.lane.b32.xlu0 %v820_v3, 256 }
 0x14d   :  { %v5483_v8 = vpop.permute.xlu1 %283  ;;  %v5485_v9 = vpop.permute.xlu0 %276 }
 0x14f   :  { %647 = vbcast.lane.b32.xlu1 %v645_v10, 256  ;;  %724 = vbcast.lane.b32.xlu0 %v722_v7, 256  ;;  %v771_v7 = vrot.slane %v5471_v2, %v5380_v35  ;;  %v897_v10 = vrot.slane %v5505_v24, %v5356_v21 }
 0x151   :  { %v5491_v12 = vpop.permute.xlu1 %290  ;;  %v5493_v13 = vpop.permute.xlu0 %444 }
 0x153   :  { %661 = vbcast.lane.b32.xlu1 %v659_v14, 256  ;;  %738 = vbcast.lane.b32.xlu0 %v736_v11, 256  ;;  %v862_v11 = vrot.slane %v5539_v50, %v5375_v32  ;;  %v5159_v14 = vpop.f32.mrf.mxu0 }
 0x154   :  { %v5573_v17 = vmul.f32 2.0, %v5159_v14 }
 0x155   :  { %v5501_v18 = vpop.permute.xlu1 %297  ;;  %v5503_v23 = vpop.permute.xlu0 %458 }
 0x156   :  { %v1016_v44 = vrot.slane %v5573_v17, %v5367_v28  ;;  %v1009_v57 = vrot.slane %v5573_v17, %v5356_v21 }
 0x157   :  { %787 = vbcast.lane.b32.xlu1 %v785_v15, 256  ;;  %752 = vbcast.lane.b32.xlu0 %v750_v16, 256 }
 0x159   :  { %v5507_v25 = vpop.permute.xlu1 %304  ;;  %v5509_v26 = vpop.permute.xlu0 %472 }
 0x15b   :  { %801 = vbcast.lane.b32.xlu1 %v799_v29, 256  ;;  %766 = vbcast.lane.b32.xlu0 %v764_v30, 256  ;;  %v911_v30 = vrot.slane %v5505_v24, %v5364_v27 }
 0x15d   :  { %v5517_v34 = vpop.permute.xlu1 %311  ;;  %v5519_v37 = vpop.permute.xlu0 %486 }
 0x15f   :  { %815 = vbcast.lane.b32.xlu1 %v813_v38, 256  ;;  %892 = vbcast.lane.b32.xlu0 %v890_v33, 256  ;;  %v876_v33 = vrot.slane %v5539_v50, %v5383_v36  ;;  %v1002_v38 = vrot.slane %v5573_v17, %v5359_v22 }
 0x161   :  { %v5525_v40 = vpop.permute.xlu1 %318  ;;  %v5527_v41 = vpop.permute.xlu0 %388 }
 0x163   :  { %829 = vbcast.lane.b32.xlu1 %v827_v42, 256  ;;  %906 = vbcast.lane.b32.xlu0 %v904_v39, 256 }
 0x165   :  { %v5533_v45 = vpop.permute.xlu1 %325  ;;  %v5535_v46 = vpop.permute.xlu0 %402 }
 0x167   :  { %731 = vbcast.lane.b32.xlu1 %v729_v47, 256  ;;  %920 = vbcast.lane.b32.xlu0 %v918_v43, 256  ;;  %v925_v43 = vrot.slane %v5505_v24, %v5372_v31  ;;  %v216_v47 = vpop.f32.mrf.mxu0 }
 0x169   :  { %v5543_v51 = vpop.permute.xlu1 %451  ;;  %v5545_v52 = vpop.permute.xlu0 %416 }
 0x16b   :  { %745 = vbcast.lane.b32.xlu1 %v743_v55, 256  ;;  %934 = vbcast.lane.b32.xlu0 %v932_v49, 256 }
 0x16d   :  { %v5551_v60 = vpop.permute.xlu1 %465  ;;  %v5553_v61 = vpop.permute.xlu0 %430 }
 0x16f   :  { %759 = vbcast.lane.b32.xlu1 %v757_v62, 256  ;;  %836 = vbcast.lane.b32.xlu0 %v834_v56, 256  ;;  %v939_v56 = vrot.slane %v5505_v24, %v5380_v35  ;;  %v5599_v62 = vmul.f32 2.0, %v216_v47  ;;  %v869_v47 = vrot.slane %v5539_v50, %v5372_v31 }
 0x171   :  { %v5559_v3 = vpop.permute.xlu1 %479  ;;  %v5561_v6 = vpop.permute.xlu0 %556  ;;  %v946_v14 = vrot.slane %v5599_v62, %v5359_v22 }
 0x172   :  { %8601 = vst [vmem:[#allocation13_spill] sm:$0xff] %v5561_v6 }
 0x173   :  { %773 = vbcast.lane.b32.xlu1 %v771_v7, 256  ;;  %850 = vbcast.lane.b32.xlu0 %v848_v1, 256  ;;  %v1030_v1 = vrot.slane %v5573_v17, %v5375_v32 }
 0x175   :  { %v5569_v15 = vpop.permute.xlu1 %493  ;;  %v5571_v16 = vpop.permute.xlu0 %570 }
 0x176   :  { %8602 = vst [vmem:[#allocation14_spill] sm:$0xff] %v5571_v16 }
 0x177   :  { %899 = vbcast.lane.b32.xlu1 %v897_v10, 256  ;;  %864 = vbcast.lane.b32.xlu0 %v862_v11, 256  ;;  %v841_v11 = vrot.slane %v5539_v50, %v5356_v21 }
 0x179   :  { %v5575_v29 = vpop.permute.xlu1 %395  ;;  %v5577_v2 = vpop.permute.xlu0 %584 }
 0x17a   :  { %8603 = vst [vmem:[#allocation15_spill] sm:$0xff] %v5577_v2 }
 0x17b   :  { %913 = vbcast.lane.b32.xlu1 %v911_v30, 256  ;;  %878 = vbcast.lane.b32.xlu0 %v876_v33, 256  ;;  %v855_v33 = vrot.slane %v5539_v50, %v5364_v27 }
 0x17d   :  { %v5585_v39 = vpop.permute.xlu1 %409  ;;  %v5587_v42 = vpop.permute.xlu0 %598 }
 0x17e   :  { %8604 = vst [vmem:[#allocation16_spill] sm:$0xff] %v5587_v42 }
 0x17f   :  { %927 = vbcast.lane.b32.xlu1 %v925_v43, 256  ;;  %1004 = vbcast.lane.b32.xlu0 %v1002_v38, 256  ;;  %v960_v38 = vrot.slane %v5599_v62, %v5367_v28 }
 0x181   :  { %v5593_v49 = vpop.permute.xlu1 %423  ;;  %v5595_v55 = vpop.permute.xlu0 %500 }
 0x183   :  { %941 = vbcast.lane.b32.xlu1 %v939_v56, 256  ;;  %1018 = vbcast.lane.b32.xlu0 %v1016_v44, 256  ;;  %v974_v56 = vrot.slane %v5599_v62, %v5375_v32 }
 0x185   :  { %v5603_v7 = vpop.permute.xlu1 %437  ;;  %v5605_v10 = vpop.permute.xlu0 %514 }
 0x187   :  { %843 = vbcast.lane.b32.xlu1 %v841_v11, 256  ;;  %1032 = vbcast.lane.b32.xlu0 %v1030_v1, 256  ;;  %v5162_v1 = vpop.f32.mrf.mxu0 }
 0x189   :  { %v5611_v24 = vpop.permute.xlu1 %563  ;;  %v5613_v30 = vpop.permute.xlu0 %528 }
 0x18a   :  { %8605 = vst [vmem:[#allocation17_spill] sm:$0xff] %v5613_v30 }
 0x18b   :  { %857 = vbcast.lane.b32.xlu1 %v855_v33, 256  ;;  %948 = vbcast.lane.b32.xlu0 %v946_v14, 256  ;;  %v883_v14 = vrot.slane %v5539_v50, %v5380_v35 }
 0x18d   :  { %v5619_v43 = vpop.permute.xlu1 %577  ;;  %v5621_v44 = vpop.permute.xlu0 %542 }
 0x18e   :  { %8606 = vst [vmem:[#allocation18_spill] sm:$0xff] %v5621_v44 }
 0x18f   :  { %871 = vbcast.lane.b32.xlu1 %v869_v47, 256  ;;  %962 = vbcast.lane.b32.xlu0 %v960_v38, 256  ;;  %v988_v47 = vrot.slane %v5599_v62, %v5383_v36  ;;  %v226_v38 = vpop.f32.mrf.mxu0 }
 0x190   :  { %v5641_v42 = vmul.f32 2.0, %v226_v38 }
 0x191   :  { %v5627_v11 = vpop.permute.xlu1 %591  ;;  %v5629_v33 = vpop.permute.xlu0 %668 }
 0x192   :  { %8607 = vst [vmem:[#allocation19_spill] sm:$0xff] %v5629_v33  ;;  %v1058_v2 = vrot.slane %v5641_v42, %v5359_v22  ;;  %v1072_v38 = vrot.slane %v5641_v42, %v5367_v28 }
 0x193   :  { %885 = vbcast.lane.b32.xlu1 %v883_v14, 256  ;;  %976 = vbcast.lane.b32.xlu0 %v974_v56, 256  ;;  %v1023_v56 = vrot.slane %v5573_v17, %v5364_v27  ;;  %v1044_v14 = vrot.slane %v5573_v17, %v5383_v36 }
 0x195   :  { %v5637_v19 = vpop.permute.xlu1 %605  ;;  %v5639_v20 = vpop.permute.xlu0 %682 }
 0x196   :  { %8608 = vst [vmem:[#allocation20_spill] sm:$0xff] %v5639_v20 }
 0x197   :  { %1011 = vbcast.lane.b32.xlu1 %v1009_v57, 256  ;;  %990 = vbcast.lane.b32.xlu0 %v988_v47, 256  ;;  %v1037_v47 = vrot.slane %v5573_v17, %v5372_v31 }
 0x199   :  { %v5643_v33 = vpop.permute.xlu1 %507  ;;  %v5645_v50 = vpop.permute.xlu0 %696 }
 0x19a   :  { %8609 = vst [vmem:[#allocation21_spill] sm:$0xff] %v5645_v50 }
 0x19b   :  { %1025 = vbcast.lane.b32.xlu1 %v1023_v56, 256  ;;  %1046 = vbcast.lane.b32.xlu0 %v1044_v14, 256  ;;  %v953_v56 = vrot.slane %v5599_v62, %v5356_v21  ;;  %v1086_v14 = vrot.slane %v5641_v42, %v5375_v32 }
 0x19d   :  { %v5653_v20 = vpop.permute.xlu1 %521  ;;  %v5655_v57 = vpop.permute.xlu0 %710 }
 0x19e   :  { %8610 = vst [vmem:[#allocation22_spill] sm:$0xff] %v5655_v57 }
 0x19f   :  { %1039 = vbcast.lane.b32.xlu1 %v1037_v47, 256  ;;  %1060 = vbcast.lane.b32.xlu0 %v1058_v2, 256  ;;  %v967_v2 = vrot.slane %v5599_v62, %v5364_v27  ;;  %v5675_v47 = vmul.f32 2.0, %v5162_v1 }
 0x1a1   :  { %v5661_v50 = vpop.permute.xlu1 %535  ;;  %v5663_v16 = vpop.permute.xlu0 %612 }
 0x1a2   :  { %8611 = vst [vmem:[#allocation23_spill] sm:$0xff] %v5663_v16  ;;  %v1100_v16 = vrot.slane %v5641_v42, %v5383_v36 }
 0x1a3   :  { %955 = vbcast.lane.b32.xlu1 %v953_v56, 256  ;;  %1074 = vbcast.lane.b32.xlu0 %v1072_v38, 256  ;;  %v981_v56 = vrot.slane %v5599_v62, %v5372_v31 }
 0x1a5   :  { %v5669_v57 = vpop.permute.xlu1 %549  ;;  %v5671_v6 = vpop.permute.xlu0 %626 }
 0x1a6   :  { %8612 = vst [vmem:[#allocation24_spill] sm:$0xff] %v5671_v6  ;;  %v1114_v6 = vrot.slane %v5675_v47, %v5359_v22 }
 0x1a7   :  { %969 = vbcast.lane.b32.xlu1 %v967_v2, 256  ;;  %1088 = vbcast.lane.b32.xlu0 %v1086_v14, 256  ;;  %v995_v14 = vrot.slane %v5599_v62, %v5380_v35  ;;  %v1128_v2 = vrot.slane %v5675_v47, %v5367_v28  ;;  %v1065_v62 = vrot.slane %v5641_v42, %v5356_v21 }
 0x1a9   :  { %v5679_v44 = vpop.permute.xlu1 %675  ;;  %v5681_v38 = vpop.permute.xlu0 %640 }
 0x1aa   :  { %8613 = vst [vmem:[#allocation25_spill] sm:$0xff] %v5679_v44  ;;  %8614 = vst [vmem:[#allocation26_spill] sm:$0xff] %v5681_v38 }
 0x1ab   :  { %983 = vbcast.lane.b32.xlu1 %v981_v56, 256  ;;  %1102 = vbcast.lane.b32.xlu0 %v1100_v16, 256  ;;  %v1051_v16 = vrot.slane %v5573_v17, %v5380_v35  ;;  %v1079_v17 = vrot.slane %v5641_v42, %v5364_v27 }
 0x1ad   :  { %v5687_v30 = vpop.permute.xlu1 %689  ;;  %v5689_v1 = vpop.permute.xlu0 %654 }
 0x1af   :  { %997 = vbcast.lane.b32.xlu1 %v995_v14, 256  ;;  %1116 = vbcast.lane.b32.xlu0 %v1114_v6, 256  ;;  %v1142_v6 = vrot.slane %v5675_v47, %v5375_v32  ;;  %v5730_v32 = vsub.f32 %v5440_v48, %v5458_v58  ;;  %v1121_v58 = vrot.slane %v5675_v47, %v5356_v21 }
 0x1b0   :  { %v5763_v21 = vsub.f32 %v5440_v48, %v5485_v9  ;;  %v1163_v9 = vrot.slane %v5675_v47, %v5380_v35 }
 0x1b1   :  { %v5695_v38 = vpop.permute.xlu1 %703  ;;  %v5697_v44 = vpop.permute.xlu0 %780  ;;  %8617 = vst [vmem:[#allocation29_spill] sm:$0xff] %v5730_v32 }
 0x1b2   :  { %8620 = vst [vmem:[#allocation32_spill] sm:$0xff] %v5763_v21 }
 0x1b3   :  { %1053 = vbcast.lane.b32.xlu1 %v1051_v16, 256  ;;  %1130 = vbcast.lane.b32.xlu0 %v1128_v2, 256  ;;  %v1156_v2 = vrot.slane %v5675_v47, %v5383_v36  ;;  %v5719_v16 = vsub.f32 %v5440_v48, %v5449_v53  ;;  %v1107_v53 = vrot.slane %v5641_v42, %v5380_v35 }
 0x1b4   :  { %v5741_v36 = vsub.f32 %v5440_v48, %v5465_v63  ;;  %v1135_v63 = vrot.slane %v5675_v47, %v5364_v27  ;;  %v5774_v27 = vsub.f32 %v5440_v48, %v5501_v18  ;;  %v5813_v35 = vsub.f32 %v5440_v48, %v5467_v0 }
 0x1b5   :  { %v5701_v56 = vpop.permute.xlu1 %717  ;;  %v5703_v22 = vpop.permute.xlu0 %794  ;;  %8616 = vst [vmem:[#allocation28_spill] sm:$0xff] %v5719_v16  ;;  %v5831_v0 = vsub.f32 %v5440_v48, %v5551_v60 }
 0x1b6   :  { %8615 = vst [vmem:[#allocation27_spill] sm:$0xff] %v5703_v22  ;;  %8618 = vst [vmem:[#allocation30_spill] sm:$0xff] %v5741_v36 }
 0x1b7   :  { %1067 = vbcast.lane.b32.xlu1 %v1065_v62, 256  ;;  %1144 = vbcast.lane.b32.xlu0 %v1142_v6, 256  ;;  %v1093_v6 = vrot.slane %v5641_v42, %v5372_v31  ;;  %v5752_v42 = vsub.f32 %v5440_v48, %v5475_v4  ;;  %v1149_v4 = vrot.slane %v5675_v47, %v5372_v31 }
 0x1b8   :  { %8621 = vst [vmem:[#allocation33_spill] sm:$0xff] %v5774_v27  ;;  %v5785_v31 = vsub.f32 %v5440_v48, %v5451_v54  ;;  %v5799_v47 = vsub.f32 %v5440_v48, %v5460_v59  ;;  %v5803_v54 = vsub.f32 %v5440_v48, %v5533_v45  ;;  %8626 = vst [vmem:[#allocation38_spill] sm:$0xff] %v5813_v35 }
 0x1b9   :  { %v5709_v14 = vpop.permute.xlu1 %619  ;;  %v5711_v28 = vpop.permute.xlu0 %808  ;;  %8619 = vst [vmem:[#allocation31_spill] sm:$0xff] %v5752_v42  ;;  %v5817_v59 = vsub.f32 %v5440_v48, %v5543_v51  ;;  %8629 = vst [vmem:[#allocation41_spill] sm:$0xff] %v5831_v0 }
 0x1ba   :  { %8622 = vst [vmem:[#allocation34_spill] sm:$0xff] %v5785_v31  ;;  %8624 = vst [vmem:[#allocation36_spill] sm:$0xff] %v5799_v47 }
 0x1bb   :  { %1081 = vbcast.lane.b32.xlu1 %v1079_v17, 256  ;;  %1158 = vbcast.lane.b32.xlu0 %v1156_v2, 256  ;;  %8625 = vst [vmem:[#allocation37_spill] sm:$0xff] %v5803_v54  ;;  %8627 = vst [vmem:[#allocation39_spill] sm:$0xff] %v5817_v59 }
 0x1bd   :  { %v5721_v22 = vpop.permute.xlu1 %633  ;;  %v5723_v62 = vpop.permute.xlu0 %822 }
 0x1bf   :  { %1095 = vbcast.lane.b32.xlu1 %v1093_v6, 256  ;;  %1579 = vperm.xlu0 %5238, %v5719_v16  }
 0x1c1   :  { %v5732_v17 = vpop.permute.xlu1 %647  ;;  %v5734_v2 = vpop.permute.xlu0 %724 }
 0x1c3   :  { %1109 = vbcast.lane.b32.xlu1 %v1107_v53, 256  ;;  %1585 = vperm.xlu0 %5238, %v5730_v32  }
 0x1c5   :  { %v5743_v6 = vpop.permute.xlu1 %661  ;;  %v5745_v16 = vpop.permute.xlu0 %738 }
 0x1c7   :  { %1123 = vbcast.lane.b32.xlu1 %v1121_v58, 256  ;;  %1591 = vperm.xlu0 %5238, %v5741_v36  }
 0x1c9   :  { %v5754_v53 = vpop.permute.xlu1 %787  ;;  %v5756_v32 = vpop.permute.xlu0 %752 }
 0x1cb   :  { %1137 = vbcast.lane.b32.xlu1 %v1135_v63, 256  ;;  %1597 = vperm.xlu0 %5238, %v5752_v42  }
 0x1cd   :  { %v5765_v58 = vpop.permute.xlu1 %801  ;;  %v5767_v36 = vpop.permute.xlu0 %766 }
 0x1cf   :  { %1151 = vbcast.lane.b32.xlu1 %v1149_v4, 256  ;;  %1552 = vperm.xlu0 %5238, %v5763_v21   ;;  %v5789_v4 = vsub.f32 %v5440_v48, %v5517_v34 }
 0x1d1   :  { %v5776_v63 = vpop.permute.xlu1 %815  ;;  %v5778_v42 = vpop.permute.xlu0 %892  ;;  %8623 = vst [vmem:[#allocation35_spill] sm:$0xff] %v5789_v4 }
 0x1d3   :  { %1165 = vbcast.lane.b32.xlu1 %v1163_v9, 256  ;;  %1561 = vperm.xlu0 %5238, %v5774_v27   ;;  %v5827_v27 = vsub.f32 %v5440_v48, %v5477_v5  ;;  %v5845_v5 = vsub.f32 %v5440_v48, %v5559_v3 }
 0x1d5   :  { %v5791_v18 = vpop.permute.xlu1 %829  ;;  %v5793_v21 = vpop.permute.xlu0 %906  ;;  %8628 = vst [vmem:[#allocation40_spill] sm:$0xff] %v5827_v27  ;;  %8631 = vst [vmem:[#allocation43_spill] sm:$0xff] %v5845_v5 }
 0x1d7   :  { %1576 = vperm.xlu1 %5237, %v5785_v31   ;;  %1567 = vperm.xlu0 %5238, %v5789_v4   ;;  %v5897_v31 = vsub.f32 %v5440_v48, %v5493_v13  ;;  %v5915_v13 = vsub.f32 %v5440_v48, %v5569_v15 }
 0x1d9   :  { %v5805_v9 = vpop.permute.xlu1 %731  ;;  %v5807_v34 = vpop.permute.xlu0 %920  ;;  %8638 = vst [vmem:[#allocation50_spill] sm:$0xff] %v5897_v31  ;;  %8641 = vst [vmem:[#allocation53_spill] sm:$0xff] %v5915_v13 }
 0x1db   :  { %1582 = vperm.xlu1 %5237, %v5799_v47   ;;  %1573 = vperm.xlu0 %5238, %v5803_v54   ;;  %v5883_v47 = vsub.f32 %v5440_v48, %v5525_v40  ;;  %v5901_v40 = vsub.f32 %v5440_v48, %v5603_v7 }
 0x1dd   :  { %v5819_v4 = vpop.permute.xlu1 %745  ;;  %v5821_v45 = vpop.permute.xlu0 %934  ;;  %8636 = vst [vmem:[#allocation48_spill] sm:$0xff] %v5883_v47  ;;  %8639 = vst [vmem:[#allocation51_spill] sm:$0xff] %v5901_v40 }
 0x1df   :  { %1588 = vperm.xlu1 %5237, %v5813_v35   ;;  %1627 = vperm.xlu0 %5238, %v5817_v59   ;;  %v5841_v35 = vsub.f32 %v5440_v48, %v5483_v8  ;;  %v5859_v8 = vsub.f32 %v5440_v48, %v5575_v29 }
 0x1e1   :  { %v5833_v54 = vpop.permute.xlu1 %759  ;;  %v5835_v51 = vpop.permute.xlu0 %836  ;;  %8630 = vst [vmem:[#allocation42_spill] sm:$0xff] %v5841_v35  ;;  %8633 = vst [vmem:[#allocation45_spill] sm:$0xff] %v5859_v8 }
 0x1e3   :  { %1594 = vperm.xlu1 %5237, %v5827_v27   ;;  %1633 = vperm.xlu0 %5238, %v5831_v0   ;;  %v5855_v27 = vsub.f32 %v5440_v48, %v5491_v12  ;;  %v5873_v12 = vsub.f32 %v5440_v48, %v5585_v39 }
 0x1e5   :  { %v5847_v59 = vpop.permute.xlu1 %773  ;;  %v5849_v60 = vpop.permute.xlu0 %850  ;;  %8632 = vst [vmem:[#allocation44_spill] sm:$0xff] %v5855_v27  ;;  %8635 = vst [vmem:[#allocation47_spill] sm:$0xff] %v5873_v12 }
 0x1e7   :  { %1555 = vperm.xlu1 %5237, %v5841_v35   ;;  %1639 = vperm.xlu0 %5238, %v5845_v5   ;;  %v5869_v35 = vsub.f32 %v5440_v48, %v5507_v25  ;;  %v5887_v25 = vsub.f32 %v5440_v48, %v5593_v49 }
 0x1e9   :  { %v5861_v0 = vpop.permute.xlu1 %899  ;;  %v5863_v3 = vpop.permute.xlu0 %864  ;;  %8634 = vst [vmem:[#allocation46_spill] sm:$0xff] %v5869_v35  ;;  %8637 = vst [vmem:[#allocation49_spill] sm:$0xff] %v5887_v25 }
 0x1eb   :  { %1558 = vperm.xlu1 %5237, %v5855_v27   ;;  %1603 = vperm.xlu0 %5238, %v5859_v8   ;;  %v8663_v27 = vld [vmem:[#allocation18_spill] sm:$0xff] }
 0x1ed   :  { %v5875_v5 = vpop.permute.xlu1 %913  ;;  %v5877_v29 = vpop.permute.xlu0 %878 }
 0x1ef   :  { %1564 = vperm.xlu1 %5237, %v5869_v35   ;;  %1609 = vperm.xlu0 %5238, %v5873_v12   ;;  %v8659_v35 = vld [vmem:[#allocation17_spill] sm:$0xff] }
 0x1f1   :  { %v5889_v8 = vpop.permute.xlu1 %927  ;;  %v5891_v39 = vpop.permute.xlu0 %1004 }
 0x1f3   :  { %1570 = vperm.xlu1 %5237, %v5883_v47   ;;  %1615 = vperm.xlu0 %5238, %v5887_v25   ;;  %v5911_v47 = vsub.f32 %v5440_v48, %v5503_v23  ;;  %v5929_v23 = vsub.f32 %v5440_v48, %v5643_v33 }
 0x1f5   :  { %v5903_v12 = vpop.permute.xlu1 %941  ;;  %v5905_v49 = vpop.permute.xlu0 %1018  ;;  %8640 = vst [vmem:[#allocation52_spill] sm:$0xff] %v5911_v47  ;;  %8643 = vst [vmem:[#allocation55_spill] sm:$0xff] %v5929_v23 }
 0x1f7   :  { %1624 = vperm.xlu1 %5237, %v5897_v31   ;;  %1621 = vperm.xlu0 %5238, %v5901_v40   ;;  %v5925_v31 = vsub.f32 %v5440_v48, %v5509_v26  ;;  %v5943_v26 = vsub.f32 %v5440_v48, %v5653_v20 }
 0x1f9   :  { %v5917_v25 = vpop.permute.xlu1 %843  ;;  %v5919_v7 = vpop.permute.xlu0 %1032  ;;  %8642 = vst [vmem:[#allocation54_spill] sm:$0xff] %v5925_v31  ;;  %8645 = vst [vmem:[#allocation57_spill] sm:$0xff] %v5943_v26 }
 0x1fb   :  { %1630 = vperm.xlu1 %5237, %v5911_v47   ;;  %1645 = vperm.xlu0 %5238, %v5915_v13   ;;  %v5939_v47 = vsub.f32 %v5440_v48, %v5527_v41  ;;  %v5957_v41 = vsub.f32 %v5440_v48, %v5661_v50 }
 0x1fd   :  { %v5931_v40 = vpop.permute.xlu1 %857  ;;  %v5933_v15 = vpop.permute.xlu0 %948  ;;  %8644 = vst [vmem:[#allocation56_spill] sm:$0xff] %v5939_v47  ;;  %8647 = vst [vmem:[#allocation59_spill] sm:$0xff] %v5957_v41 }
 0x1ff   :  { %1636 = vperm.xlu1 %5237, %v5925_v31   ;;  %1651 = vperm.xlu0 %5238, %v5929_v23   ;;  %v5953_v31 = vsub.f32 %v5440_v48, %v5535_v46  ;;  %v5971_v46 = vsub.f32 %v5440_v48, %v5669_v57 }
 0x201   :  { %v5945_v13 = vpop.permute.xlu1 %871  ;;  %v5947_v33 = vpop.permute.xlu0 %962  ;;  %8646 = vst [vmem:[#allocation58_spill] sm:$0xff] %v5953_v31  ;;  %8649 = vst [vmem:[#allocation61_spill] sm:$0xff] %v5971_v46 }
 0x203   :  { %1600 = vperm.xlu1 %5237, %v5939_v47   ;;  %1657 = vperm.xlu0 %5238, %v5943_v26   ;;  %v5967_v47 = vsub.f32 %v5440_v48, %v5545_v52  ;;  %v5985_v52 = vsub.f32 %v5440_v48, %v5611_v24 }
 0x205   :  { %v5959_v23 = vpop.permute.xlu1 %885  ;;  %v5961_v20 = vpop.permute.xlu0 %976  ;;  %8648 = vst [vmem:[#allocation60_spill] sm:$0xff] %v5967_v47  ;;  %8651 = vst [vmem:[#allocation63_spill] sm:$0xff] %v5985_v52 }
 0x207   :  { %1606 = vperm.xlu1 %5237, %v5953_v31   ;;  %1663 = vperm.xlu0 %5238, %v5957_v41   ;;  %v5981_v31 = vsub.f32 %v5440_v48, %v5553_v61  ;;  %v5999_v61 = vsub.f32 %v5440_v48, %v5619_v43 }
 0x209   :  { %v5973_v26 = vpop.permute.xlu1 %1011  ;;  %v5975_v50 = vpop.permute.xlu0 %990  ;;  %8650 = vst [vmem:[#allocation62_spill] sm:$0xff] %v5981_v31  ;;  %8653 = vst [vmem:[#allocation65_spill] sm:$0xff] %v5999_v61 }
 0x20b   :  { %1612 = vperm.xlu1 %5237, %v5967_v47   ;;  %1669 = vperm.xlu0 %5238, %v5971_v46   ;;  %v5995_v47 = vsub.f32 %v5440_v48, %v5519_v37  ;;  %v6013_v37 = vsub.f32 %v5440_v48, %v5627_v11 }
 0x20d   :  { %v5987_v41 = vpop.permute.xlu1 %1025  ;;  %v5989_v57 = vpop.permute.xlu0 %1046  ;;  %8652 = vst [vmem:[#allocation64_spill] sm:$0xff] %v5995_v47  ;;  %8655 = vst [vmem:[#allocation67_spill] sm:$0xff] %v6013_v37 }
 0x20f   :  { %1618 = vperm.xlu1 %5237, %v5981_v31   ;;  %1675 = vperm.xlu0 %5238, %v5985_v52   ;;  %v6009_v31 = vsub.f32 %v5440_v48, %v5595_v55  ;;  %v6027_v55 = vsub.f32 %v5440_v48, %v5637_v19 }
 0x211   :  { %v6001_v46 = vpop.permute.xlu1 %1039  ;;  %v6003_v24 = vpop.permute.xlu0 %1060  ;;  %8654 = vst [vmem:[#allocation66_spill] sm:$0xff] %v6009_v31  ;;  %8657 = vst [vmem:[#allocation69_spill] sm:$0xff] %v6027_v55 }
 0x213   :  { %1642 = vperm.xlu1 %5237, %v5995_v47   ;;  %1681 = vperm.xlu0 %5238, %v5999_v61   ;;  %v6023_v47 = vsub.f32 %v5440_v48, %v5605_v10  ;;  %v6041_v10 = vsub.f32 %v5440_v48, %v5709_v14 }
 0x215   :  { %v6015_v52 = vpop.permute.xlu1 %955  ;;  %v6017_v43 = vpop.permute.xlu0 %1074  ;;  %8656 = vst [vmem:[#allocation68_spill] sm:$0xff] %v6023_v47  ;;  %8661 = vst [vmem:[#allocation71_spill] sm:$0xff] %v6041_v10 }
 0x217   :  { %1648 = vperm.xlu1 %5237, %v6009_v31   ;;  %1687 = vperm.xlu0 %5238, %v6013_v37   ;;  %v6037_v31 = vsub.f32 %v5440_v48, %v8659_v35  ;;  %v6055_v35 = vsub.f32 %v5440_v48, %v5721_v22  ;;  %v8670_v22 = vld [vmem:[#allocation14_spill] sm:$0xff] }
 0x219   :  { %v6029_v61 = vpop.permute.xlu1 %969  ;;  %v6031_v11 = vpop.permute.xlu0 %1088  ;;  %8660 = vst [vmem:[#allocation17_spill] sm:$0xff] %v6037_v31  ;;  %8665 = vst [vmem:[#allocation73_spill] sm:$0xff] %v6055_v35 }
 0x21a   :  { %8658 = vst [vmem:[#allocation70_spill] sm:$0xff] %v6031_v11 }
 0x21b   :  { %1654 = vperm.xlu1 %5237, %v6023_v47   ;;  %1693 = vperm.xlu0 %5238, %v6027_v55   ;;  %v6051_v47 = vsub.f32 %v5440_v48, %v8663_v27  ;;  %v6069_v27 = vsub.f32 %v5440_v48, %v5732_v17  ;;  %v8674_v17 = vld [vmem:[#allocation15_spill] sm:$0xff] }
 0x21d   :  { %v6043_v37 = vpop.permute.xlu1 %983  ;;  %v6045_v19 = vpop.permute.xlu0 %1102  ;;  %8664 = vst [vmem:[#allocation18_spill] sm:$0xff] %v6051_v47  ;;  %8669 = vst [vmem:[#allocation75_spill] sm:$0xff] %v6069_v27 }
 0x21e   :  { %8662 = vst [vmem:[#allocation72_spill] sm:$0xff] %v6045_v19  ;;  %v8667_v19 = vld [vmem:[#allocation13_spill] sm:$0xff] }
 0x21f   :  { %1660 = vperm.xlu1 %5237, %v6037_v31   ;;  %1699 = vperm.xlu0 %5238, %v6041_v10   ;;  %v6065_v31 = vsub.f32 %v5440_v48, %v8667_v19 }
 0x221   :  { %v6057_v55 = vpop.permute.xlu1 %997  ;;  %v6061_v14 = vpop.permute.xlu0 %1116  ;;  %8668 = vst [vmem:[#allocation13_spill] sm:$0xff] %v6065_v31 }
 0x222   :  { %8666 = vst [vmem:[#allocation74_spill] sm:$0xff] %v6061_v14 }
 0x223   :  { %1666 = vperm.xlu1 %5237, %v6051_v47   ;;  %1705 = vperm.xlu0 %5238, %v6055_v35   ;;  %v6077_v47 = vsub.f32 %v5440_v48, %v8670_v22  ;;  %v6081_v35 = vsub.f32 %v5440_v48, %v5743_v6 }
 0x225   :  { %v6071_v10 = vpop.permute.xlu1 %1053  ;;  %8671 = vst [vmem:[#allocation14_spill] sm:$0xff] %v6077_v47  ;;  %8672 = vst [vmem:[#allocation76_spill] sm:$0xff] %v6081_v35  ;;  %v6085_v14 = vpop.permute.xlu0 %1130 }
 0x226   :  { %8673 = vst [vmem:[#allocation77_spill] sm:$0xff] %v6085_v14  ;;  %v8679_v14 = vld [vmem:[#allocation16_spill] sm:$0xff] }
 0x227   :  { %1672 = vperm.xlu1 %5237, %v6065_v31   ;;  %1711 = vperm.xlu0 %5238, %v6069_v27   ;;  %v6091_v31 = vsub.f32 %v5440_v48, %v8674_v17  ;;  %v8676_v27 = vld [vmem:[#allocation25_spill] sm:$0xff]  ;;  %v6109_v17 = vsub.f32 %v5440_v48, %v5687_v30  ;;  %v8686_v30 = vld [vmem:[#allocation24_spill] sm:$0xff] }
 0x228   :  { %v6095_v22 = vsub.f32 %v5440_v48, %v8676_v27  ;;  %v8682_v27 = vld [vmem:[#allocation23_spill] sm:$0xff] }
 0x229   :  { %v6083_v19 = vpop.permute.xlu1 %1067  ;;  %8675 = vst [vmem:[#allocation15_spill] sm:$0xff] %v6091_v31  ;;  %v6101_v6 = vpop.permute.xlu0 %1144  ;;  %8681 = vst [vmem:[#allocation79_spill] sm:$0xff] %v6109_v17 }
 0x22a   :  { %8677 = vst [vmem:[#allocation25_spill] sm:$0xff] %v6095_v22  ;;  %8678 = vst [vmem:[#allocation78_spill] sm:$0xff] %v6101_v6 }
 0x22b   :  { %1678 = vperm.xlu1 %5237, %v6077_v47   ;;  %1717 = vperm.xlu0 %5238, %v6081_v35   ;;  %v6105_v47 = vsub.f32 %v5440_v48, %v8679_v14 }
 0x22d   :  { %v6097_v11 = vpop.permute.xlu1 %1081  ;;  %8680 = vst [vmem:[#allocation16_spill] sm:$0xff] %v6105_v47  ;;  %v6123_v14 = vpop.permute.xlu0 %1158 }
 0x22e   :  { %8685 = vst [vmem:[#allocation81_spill] sm:$0xff] %v6123_v14  ;;  %v8690_v14 = vld [vmem:[#allocation26_spill] sm:$0xff] }
 0x22f   :  { %1684 = vperm.xlu1 %5237, %v6091_v31   ;;  %1723 = vperm.xlu0 %5238, %v6095_v22   ;;  %v6117_v31 = vsub.f32 %v5440_v48, %v8682_v27  ;;  %v6121_v22 = vsub.f32 %v5440_v48, %v5695_v38  ;;  %v6135_v27 = vsub.f32 %v5440_v48, %v5701_v56 }
 0x230   :  { %v6157_v56 = vsub.f32 %v5440_v48, %v5689_v1  ;;  %v6175_v1 = vsub.f32 %v5440_v48, %v5833_v54  ;;  %v8703_v54 = vld [vmem:[#allocation21_spill] sm:$0xff] }
 0x231   :  { %v6111_v35 = vpop.permute.xlu1 %1095  ;;  %8683 = vst [vmem:[#allocation23_spill] sm:$0xff] %v6117_v31  ;;  %8684 = vst [vmem:[#allocation80_spill] sm:$0xff] %v6121_v22 }
 0x232   :  { %8688 = vst [vmem:[#allocation82_spill] sm:$0xff] %v6135_v27  ;;  %8693 = vst [vmem:[#allocation85_spill] sm:$0xff] %v6157_v56 }
 0x233   :  { %1690 = vperm.xlu1 %5237, %v6105_v47   ;;  %1729 = vperm.xlu0 %5238, %v6109_v17   ;;  %v6131_v47 = vsub.f32 %v5440_v48, %v8686_v30  ;;  %v6149_v30 = vsub.f32 %v5440_v48, %v5805_v9  ;;  %v8696_v9 = vld [vmem:[#allocation19_spill] sm:$0xff]  ;;  %8698 = vst [vmem:[#allocation88_spill] sm:$0xff] %v6175_v1 }
 0x235   :  { %v6125_v6 = vpop.permute.xlu1 %1109  ;;  %8687 = vst [vmem:[#allocation24_spill] sm:$0xff] %v6131_v47  ;;  %8692 = vst [vmem:[#allocation84_spill] sm:$0xff] %v6149_v30 }
 0x237   :  { %1696 = vperm.xlu1 %5237, %v6117_v31   ;;  %1735 = vperm.xlu0 %5238, %v6121_v22   ;;  %v6145_v31 = vsub.f32 %v5440_v48, %v8690_v14 }
 0x239   :  { %v6141_v38 = vpop.permute.xlu1 %1123  ;;  %8691 = vst [vmem:[#allocation26_spill] sm:$0xff] %v6145_v31 }
 0x23a   :  { %v6137_v17 = vpop.permute.xlu0 %1579  ;;  %8689 = vst [vmem:[#allocation83_spill] sm:$0xff] %v6141_v38 }
 0x23b   :  { %1702 = vperm.xlu1 %5237, %v6131_v47   ;;  %1741 = vperm.xlu0 %5238, %v6135_v27   ;;  %v6161_v27 = vsub.f32 %v5440_v48, %v5819_v4 }
 0x23d   :  { %8694 = vst [vmem:[#allocation86_spill] sm:$0xff] %v6161_v27  ;;  %v6163_v14 = vpop.permute.xlu1 %1137 }
 0x23e   :  { %v6151_v22 = vpop.permute.xlu0 %1585  ;;  %8695 = vst [vmem:[#allocation87_spill] sm:$0xff] %v6163_v14  ;;  %v8700_v14 = vld [vmem:[#allocation20_spill] sm:$0xff] }
 0x23f   :  { %1708 = vperm.xlu1 %5237, %v6145_v31   ;;  %1747 = vperm.xlu0 %5238, %v6149_v30   ;;  %v6171_v31 = vsub.f32 %v5440_v48, %v8696_v9  ;;  %v6189_v9 = vsub.f32 %v5440_v48, %v5847_v59  ;;  %v8707_v59 = vld [vmem:[#allocation22_spill] sm:$0xff] }
 0x241   :  { %8697 = vst [vmem:[#allocation19_spill] sm:$0xff] %v6171_v31  ;;  %v6181_v4 = vpop.permute.xlu1 %1151  ;;  %8702 = vst [vmem:[#allocation90_spill] sm:$0xff] %v6189_v9 }
 0x242   :  { %v6165_v47 = vpop.permute.xlu0 %1591  ;;  %8699 = vst [vmem:[#allocation89_spill] sm:$0xff] %v6181_v4 }
 0x243   :  { %1714 = vperm.xlu1 %5237, %v6157_v56   ;;  %1753 = vperm.xlu0 %5238, %v6161_v27   ;;  %v6185_v56 = vsub.f32 %v5440_v48, %v8700_v14 }
 0x245   :  { %8701 = vst [vmem:[#allocation20_spill] sm:$0xff] %v6185_v56  ;;  %v6203_v14 = vpop.permute.xlu1 %1165 }
 0x246   :  { %v6177_v30 = vpop.permute.xlu0 %1597  ;;  %8706 = vst [vmem:[#allocation92_spill] sm:$0xff] %v6203_v14  ;;  %v8720_v14 = vld [vmem:[#allocation27_spill] sm:$0xff] }
 0x247   :  { %1720 = vperm.xlu1 %5237, %v6171_v31   ;;  %1759 = vperm.xlu0 %5238, %v6175_v1   ;;  %v6197_v31 = vsub.f32 %v5440_v48, %v8703_v54  ;;  %v6201_v1 = vsub.f32 %v5440_v48, %v5754_v53  ;;  %v6215_v54 = vsub.f32 %v5440_v48, %v5765_v58 }
 0x249   :  { %8704 = vst [vmem:[#allocation21_spill] sm:$0xff] %v6197_v31  ;;  %8705 = vst [vmem:[#allocation91_spill] sm:$0xff] %v6201_v1 }
 0x24a   :  { %v6191_v27 = vpop.permute.xlu0 %1552  ;;  %8709 = vst [vmem:[#allocation93_spill] sm:$0xff] %v6215_v54 }
 0x24b   :  { %1726 = vperm.xlu1 %5237, %v6185_v56   ;;  %1765 = vperm.xlu0 %5238, %v6189_v9   ;;  %v6211_v56 = vsub.f32 %v5440_v48, %v8707_v59  ;;  %v6229_v59 = vsub.f32 %v5440_v48, %v5776_v63 }
 0x24d   :  { %8708 = vst [vmem:[#allocation22_spill] sm:$0xff] %v6211_v56  ;;  %8711 = vst [vmem:[#allocation95_spill] sm:$0xff] %v6229_v59 }
 0x24e   :  { %v6205_v4 = vpop.permute.xlu0 %1561 }
 0x24f   :  { %1732 = vperm.xlu1 %5237, %v6197_v31   ;;  %1771 = vperm.xlu0 %5238, %v6201_v1   ;;  %v6225_v31 = vsub.f32 %v5440_v48, %v5734_v2  ;;  %v6243_v2 = vsub.f32 %v5440_v48, %v5791_v18 }
 0x251   :  { %8710 = vst [vmem:[#allocation94_spill] sm:$0xff] %v6225_v31  ;;  %8713 = vst [vmem:[#allocation97_spill] sm:$0xff] %v6243_v2 }
 0x252   :  { %v6217_v9 = vpop.permute.xlu1 %1576  ;;  %v6219_v53 = vpop.permute.xlu0 %1567 }
 0x253   :  { %1738 = vperm.xlu1 %5237, %v6211_v56   ;;  %1777 = vperm.xlu0 %5238, %v6215_v54   ;;  %v6239_v56 = vsub.f32 %v5440_v48, %v5745_v16  ;;  %v6257_v16 = vsub.f32 %v5440_v48, %v5917_v25 }
 0x255   :  { %8712 = vst [vmem:[#allocation96_spill] sm:$0xff] %v6239_v56  ;;  %8715 = vst [vmem:[#allocation99_spill] sm:$0xff] %v6257_v16 }
 0x256   :  { %v6231_v1 = vpop.permute.xlu1 %1582  ;;  %v6233_v58 = vpop.permute.xlu0 %1573 }
 0x257   :  { %1744 = vperm.xlu1 %5237, %v6225_v31   ;;  %1783 = vperm.xlu0 %5238, %v6229_v59   ;;  %v6253_v31 = vsub.f32 %v5440_v48, %v5756_v32  ;;  %v6271_v32 = vsub.f32 %v5440_v48, %v5931_v40 }
 0x259   :  { %8714 = vst [vmem:[#allocation98_spill] sm:$0xff] %v6253_v31  ;;  %8717 = vst [vmem:[#allocation101_spill] sm:$0xff] %v6271_v32 }
 0x25a   :  { %v6245_v54 = vpop.permute.xlu1 %1588  ;;  %v6247_v63 = vpop.permute.xlu0 %1627 }
 0x25b   :  { %1750 = vperm.xlu1 %5237, %v6239_v56   ;;  %1789 = vperm.xlu0 %5238, %v6243_v2   ;;  %v6267_v56 = vsub.f32 %v5440_v48, %v5767_v36  ;;  %v6285_v36 = vsub.f32 %v5440_v48, %v5945_v13 }
 0x25d   :  { %8716 = vst [vmem:[#allocation100_spill] sm:$0xff] %v6267_v56  ;;  %8719 = vst [vmem:[#allocation103_spill] sm:$0xff] %v6285_v36 }
 0x25e   :  { %v6259_v59 = vpop.permute.xlu1 %1594  ;;  %v6261_v18 = vpop.permute.xlu0 %1633 }
 0x25f   :  { %1756 = vperm.xlu1 %5237, %v6253_v31   ;;  %1795 = vperm.xlu0 %5238, %v6257_v16   ;;  %v6281_v31 = vsub.f32 %v5440_v48, %v5697_v44  ;;  %v6299_v44 = vsub.f32 %v5440_v48, %v5959_v23 }
 0x261   :  { %8718 = vst [vmem:[#allocation102_spill] sm:$0xff] %v6281_v31  ;;  %8722 = vst [vmem:[#allocation104_spill] sm:$0xff] %v6299_v44 }
 0x262   :  { %v6273_v2 = vpop.permute.xlu1 %1555  ;;  %v6275_v25 = vpop.permute.xlu0 %1639 }
 0x263   :  { %1762 = vperm.xlu1 %5237, %v6267_v56   ;;  %1801 = vperm.xlu0 %5238, %v6271_v32   ;;  %v6295_v56 = vsub.f32 %v5440_v48, %v8720_v14  ;;  %v6313_v14 = vsub.f32 %v5440_v48, %v5861_v0 }
 0x265   :  { %8721 = vst [vmem:[#allocation27_spill] sm:$0xff] %v6295_v56  ;;  %8724 = vst [vmem:[#allocation106_spill] sm:$0xff] %v6313_v14 }
 0x266   :  { %v6287_v16 = vpop.permute.xlu1 %1558  ;;  %v6289_v40 = vpop.permute.xlu0 %1603 }
 0x267   :  { %1768 = vperm.xlu1 %5237, %v6281_v31   ;;  %1807 = vperm.xlu0 %5238, %v6285_v36   ;;  %v6309_v31 = vsub.f32 %v5440_v48, %v5711_v28  ;;  %v6327_v28 = vsub.f32 %v5440_v48, %v5875_v5 }
 0x269   :  { %8723 = vst [vmem:[#allocation105_spill] sm:$0xff] %v6309_v31  ;;  %8726 = vst [vmem:[#allocation108_spill] sm:$0xff] %v6327_v28 }
 0x26a   :  { %v6301_v32 = vpop.permute.xlu1 %1564  ;;  %v6303_v13 = vpop.permute.xlu0 %1609 }
 0x26b   :  { %1774 = vperm.xlu1 %5237, %v6295_v56   ;;  %1813 = vperm.xlu0 %5238, %v6299_v44   ;;  %v6323_v56 = vsub.f32 %v5440_v48, %v5723_v62  ;;  %v6341_v62 = vsub.f32 %v5440_v48, %v5889_v8 }
 0x26d   :  { %8725 = vst [vmem:[#allocation107_spill] sm:$0xff] %v6323_v56  ;;  %8728 = vst [vmem:[#allocation110_spill] sm:$0xff] %v6341_v62 }
 0x26e   :  { %v6315_v36 = vpop.permute.xlu1 %1570  ;;  %v6317_v23 = vpop.permute.xlu0 %1615 }
 0x26f   :  { %1780 = vperm.xlu1 %5237, %v6309_v31   ;;  %1819 = vperm.xlu0 %5238, %v6313_v14   ;;  %v6337_v31 = vsub.f32 %v5440_v48, %v5835_v51  ;;  %v6355_v51 = vsub.f32 %v5440_v48, %v5903_v12 }
 0x271   :  { %8727 = vst [vmem:[#allocation109_spill] sm:$0xff] %v6337_v31  ;;  %8730 = vst [vmem:[#allocation112_spill] sm:$0xff] %v6355_v51 }
 0x272   :  { %v6329_v44 = vpop.permute.xlu1 %1624  ;;  %v6331_v0 = vpop.permute.xlu0 %1621 }
 0x273   :  { %1786 = vperm.xlu1 %5237, %v6323_v56   ;;  %1825 = vperm.xlu0 %5238, %v6327_v28   ;;  %v6351_v56 = vsub.f32 %v5440_v48, %v5849_v60  ;;  %v6369_v60 = vsub.f32 %v5440_v48, %v6015_v52 }
 0x275   :  { %8729 = vst [vmem:[#allocation111_spill] sm:$0xff] %v6351_v56  ;;  %8732 = vst [vmem:[#allocation114_spill] sm:$0xff] %v6369_v60 }
 0x276   :  { %v6343_v14 = vpop.permute.xlu1 %1630  ;;  %v6345_v5 = vpop.permute.xlu0 %1645 }
 0x277   :  { %1792 = vperm.xlu1 %5237, %v6337_v31   ;;  %1831 = vperm.xlu0 %5238, %v6341_v62   ;;  %v6365_v31 = vsub.f32 %v5440_v48, %v5863_v3  ;;  %v6383_v3 = vsub.f32 %v5440_v48, %v6029_v61 }
 0x279   :  { %8731 = vst [vmem:[#allocation113_spill] sm:$0xff] %v6365_v31  ;;  %8734 = vst [vmem:[#allocation116_spill] sm:$0xff] %v6383_v3 }
 0x27a   :  { %v6357_v28 = vpop.permute.xlu1 %1636  ;;  %v6359_v8 = vpop.permute.xlu0 %1651 }
 0x27b   :  { %1798 = vperm.xlu1 %5237, %v6351_v56   ;;  %1837 = vperm.xlu0 %5238, %v6355_v51   ;;  %v6379_v56 = vsub.f32 %v5440_v48, %v5877_v29  ;;  %v6397_v29 = vsub.f32 %v5440_v48, %v6043_v37 }
 0x27d   :  { %8733 = vst [vmem:[#allocation115_spill] sm:$0xff] %v6379_v56  ;;  %8736 = vst [vmem:[#allocation118_spill] sm:$0xff] %v6397_v29 }
 0x27e   :  { %v6371_v62 = vpop.permute.xlu1 %1600  ;;  %v6373_v12 = vpop.permute.xlu0 %1657 }
 0x27f   :  { %1804 = vperm.xlu1 %5237, %v6365_v31   ;;  %1843 = vperm.xlu0 %5238, %v6369_v60   ;;  %v6393_v31 = vsub.f32 %v5440_v48, %v5778_v42  ;;  %v6411_v42 = vsub.f32 %v5440_v48, %v6057_v55 }
 0x281   :  { %8735 = vst [vmem:[#allocation117_spill] sm:$0xff] %v6393_v31  ;;  %8738 = vst [vmem:[#allocation120_spill] sm:$0xff] %v6411_v42 }
 0x282   :  { %v6385_v51 = vpop.permute.xlu1 %1606  ;;  %v6387_v52 = vpop.permute.xlu0 %1663 }
 0x283   :  { %1810 = vperm.xlu1 %5237, %v6379_v56   ;;  %1849 = vperm.xlu0 %5238, %v6383_v3   ;;  %v6407_v56 = vsub.f32 %v5440_v48, %v5793_v21  ;;  %v6425_v21 = vsub.f32 %v5440_v48, %v5973_v26 }
 0x285   :  { %8737 = vst [vmem:[#allocation119_spill] sm:$0xff] %v6407_v56  ;;  %8740 = vst [vmem:[#allocation122_spill] sm:$0xff] %v6425_v21 }
 0x286   :  { %v6399_v60 = vpop.permute.xlu1 %1612  ;;  %v6401_v61 = vpop.permute.xlu0 %1669 }
 0x287   :  { %1816 = vperm.xlu1 %5237, %v6393_v31   ;;  %1855 = vperm.xlu0 %5238, %v6397_v29   ;;  %v6421_v31 = vsub.f32 %v5440_v48, %v5807_v34  ;;  %v6439_v34 = vsub.f32 %v5440_v48, %v5987_v41 }
 0x289   :  { %8739 = vst [vmem:[#allocation121_spill] sm:$0xff] %v6421_v31  ;;  %8742 = vst [vmem:[#allocation124_spill] sm:$0xff] %v6439_v34 }
 0x28a   :  { %v6413_v3 = vpop.permute.xlu1 %1618  ;;  %v6415_v37 = vpop.permute.xlu0 %1675 }
 0x28b   :  { %1822 = vperm.xlu1 %5237, %v6407_v56   ;;  %1861 = vperm.xlu0 %5238, %v6411_v42   ;;  %v6435_v56 = vsub.f32 %v5440_v48, %v5821_v45  ;;  %v6453_v45 = vsub.f32 %v5440_v48, %v6001_v46 }
 0x28d   :  { %8741 = vst [vmem:[#allocation123_spill] sm:$0xff] %v6435_v56  ;;  %8745 = vst [vmem:[#allocation127_spill] sm:$0xff] %v6453_v45 }
 0x28e   :  { %v6427_v29 = vpop.permute.xlu1 %1642  ;;  %v6429_v55 = vpop.permute.xlu0 %1681 }
 0x28f   :  { %1828 = vperm.xlu1 %5237, %v6421_v31   ;;  %1867 = vperm.xlu0 %5238, %v6425_v21   ;;  %v6449_v31 = vsub.f32 %v5440_v48, %v5933_v15  ;;  %v6467_v15 = vsub.f32 %v5440_v48, %v6071_v10 }
 0x291   :  { %8744 = vst [vmem:[#allocation126_spill] sm:$0xff] %v6449_v31  ;;  %8748 = vst [vmem:[#allocation130_spill] sm:$0xff] %v6467_v15 }
 0x292   :  { %v6441_v42 = vpop.permute.xlu1 %1648  ;;  %v6443_v26 = vpop.permute.xlu0 %1687 }
 0x293   :  { %8743 = vst [vmem:[#allocation125_spill] sm:$0xff] %v6443_v26  ;;  %1834 = vperm.xlu1 %5237, %v6435_v56   ;;  %1873 = vperm.xlu0 %5238, %v6439_v34   ;;  %v6463_v56 = vsub.f32 %v5440_v48, %v5947_v33  ;;  %v6481_v33 = vsub.f32 %v5440_v48, %v6083_v19 }
 0x295   :  { %8747 = vst [vmem:[#allocation129_spill] sm:$0xff] %v6463_v56  ;;  %8750 = vst [vmem:[#allocation132_spill] sm:$0xff] %v6481_v33 }
 0x296   :  { %v6455_v21 = vpop.permute.xlu1 %1654  ;;  %v6457_v41 = vpop.permute.xlu0 %1693 }
 0x297   :  { %8746 = vst [vmem:[#allocation128_spill] sm:$0xff] %v6457_v41  ;;  %1840 = vperm.xlu1 %5237, %v6449_v31   ;;  %1879 = vperm.xlu0 %5238, %v6453_v45   ;;  %v6477_v31 = vsub.f32 %v5440_v48, %v5961_v20  ;;  %v6495_v20 = vsub.f32 %v5440_v48, %v6097_v11 }
 0x299   :  { %8749 = vst [vmem:[#allocation131_spill] sm:$0xff] %v6477_v31  ;;  %8752 = vst [vmem:[#allocation134_spill] sm:$0xff] %v6495_v20 }
 0x29a   :  { %v6469_v34 = vpop.permute.xlu1 %1660  ;;  %v6471_v46 = vpop.permute.xlu0 %1699 }
 0x29b   :  { %1846 = vperm.xlu1 %5237, %v6463_v56   ;;  %1885 = vperm.xlu0 %5238, %v6467_v15   ;;  %v6491_v56 = vsub.f32 %v5440_v48, %v5975_v50  ;;  %v6509_v50 = vsub.f32 %v5440_v48, %v6111_v35 }
 0x29d   :  { %8751 = vst [vmem:[#allocation133_spill] sm:$0xff] %v6491_v56  ;;  %8754 = vst [vmem:[#allocation136_spill] sm:$0xff] %v6509_v50 }
 0x29e   :  { %v6483_v45 = vpop.permute.xlu1 %1666  ;;  %v6485_v10 = vpop.permute.xlu0 %1705 }
 0x29f   :  { %1852 = vperm.xlu1 %5237, %v6477_v31   ;;  %1891 = vperm.xlu0 %5238, %v6481_v33   ;;  %v6505_v31 = vsub.f32 %v5440_v48, %v5891_v39  ;;  %v6523_v39 = vsub.f32 %v5440_v48, %v6125_v6  ;;  %v6545_v6 = vsub.f32 %v5440_v48, %v5989_v57 }
 0x2a1   :  { %8753 = vst [vmem:[#allocation135_spill] sm:$0xff] %v6505_v31  ;;  %8756 = vst [vmem:[#allocation138_spill] sm:$0xff] %v6523_v39 }
 0x2a2   :  { %v6497_v15 = vpop.permute.xlu1 %1672  ;;  %v6499_v19 = vpop.permute.xlu0 %1711  ;;  %8761 = vst [vmem:[#allocation142_spill] sm:$0xff] %v6545_v6 }
 0x2a3   :  { %1858 = vperm.xlu1 %5237, %v6491_v56   ;;  %1897 = vperm.xlu0 %5238, %v6495_v20   ;;  %v6519_v56 = vsub.f32 %v5440_v48, %v5905_v49 }
 0x2a5   :  { %8755 = vst [vmem:[#allocation137_spill] sm:$0xff] %v6519_v56 }
 0x2a6   :  { %v6511_v33 = vpop.permute.xlu1 %1678  ;;  %v6513_v11 = vpop.permute.xlu0 %1717 }
 0x2a7   :  { %1864 = vperm.xlu1 %5237, %v6505_v31   ;;  %1903 = vperm.xlu0 %5238, %v6509_v50   ;;  %v6533_v31 = vsub.f32 %v5440_v48, %v5919_v7  ;;  %v8758_v50 = vlaneseq }
 0x2a9   :  { %8757 = vst [vmem:[#allocation139_spill] sm:$0xff] %v6533_v31  ;;  %v6536_v38 = vand.u32 127, %v8758_v50 }
 0x2aa   :  { %v6525_v20 = vpop.permute.xlu1 %1684  ;;  %v6527_v35 = vpop.permute.xlu0 %1723 }
 0x2ab   :  { %1870 = vperm.xlu1 %5237, %v6519_v56   ;;  %1909 = vperm.xlu0 %5238, %v6523_v39   ;;  %8759 = vst [vmem:[#allocation140_spill] sm:$0xff] %v6536_v38  ;;  %v8762_v56 = vld [vmem:[#allocation4_spill] sm:$0xff] }
 0x2ac   :  { %v6549_v39 = vsub.s32 %v6536_v38, %v8762_v56 }
 0x2ae   :  { %v6538_v49 = vpop.permute.xlu1 %1690  ;;  %v6540_v41 = vpop.permute.xlu0 %1729  ;;  %v1972_v50 = vrot.slane %v6217_v9, %v6549_v39  ;;  %v1980_v57 = vrot.slane %v6231_v1, %v6549_v39  ;;  %v1976_v56 = vrot.slane %v6137_v17, %v6549_v39  ;;  %v1988_v1 = vrot.slane %v6245_v54, %v6549_v39 }
 0x2af   :  { %8760 = vst [vmem:[#allocation141_spill] sm:$0xff] %v6540_v41  ;;  %1876 = vperm.xlu1 %5237, %v6533_v31   ;;  %v6560_v31 = vsub.f32 %v5440_v48, %v6003_v24  ;;  %v6574_v24 = vsub.f32 %v5440_v48, %v6017_v43  ;;  %v2004_v17 = vrot.slane %v6371_v62, %v6549_v39  ;;  %v8767_v62 = vld [vmem:[#allocation70_spill] sm:$0xff] }
 0x2b0   :  { %v2463_v9 = vsel %vm2449_vm1, %v1976_v56, %v1972_v50  ;;  %v2012_v50 = vrot.slane %v6385_v51, %v6549_v39  ;;  %v2008_v43 = vrot.slane %v6289_v40, %v6549_v39  ;;  %v1996_v51 = vrot.slane %v6259_v59, %v6549_v39 }
 0x2b1   :  { %8764 = vst [vmem:[#allocation143_spill] sm:$0xff] %v6560_v31  ;;  %8766 = vst [vmem:[#allocation145_spill] sm:$0xff] %v6574_v24  ;;  %v1992_v40 = vrot.slane %v6165_v47, %v6549_v39  ;;  %v2016_v59 = vrot.slane %v6303_v13, %v6549_v39  ;;  %v2072_v47 = vrot.slane %v6359_v8, %v6549_v39 }
 0x2b2   :  { %v6551_v26 = vpop.permute.xlu1 %1696  ;;  %v6553_v7 = vpop.permute.xlu0 %1735 }
 0x2b3   :  { %8763 = vst [vmem:[#allocation4_spill] sm:$0xff] %v6553_v7  ;;  %1882 = vperm.xlu1 %5237, %v6545_v6   ;;  %v2464_v6 = vsel %vm2451_vm2, %v1980_v57, %v2463_v9  ;;  %v2470_v9 = vsel %vm2449_vm1, %v2008_v43, %v2004_v17  ;;  %v8768_v17 = vld [vmem:[#allocation72_spill] sm:$0xff]  ;;  %v2132_v8 = vrot.slane %v6551_v26, %v6549_v39 }
 0x2b4   :  { %v2000_v26 = vrot.slane %v6177_v30, %v6549_v39 }
 0x2b6   :  { %v6566_v38 = vpop.permute.xlu1 %1702  ;;  %v6568_v7 = vpop.permute.xlu0 %1741 }
 0x2b7   :  { %8765 = vst [vmem:[#allocation144_spill] sm:$0xff] %v6568_v7  ;;  %1888 = vperm.xlu1 %5237, %v6560_v31   ;;  %v1984_v7 = vrot.slane %v6151_v22, %v6549_v39  ;;  %v6595_v22 = vsub.f32 %v5440_v48, %v8767_v62 }
 0x2b9   :  { %v2465_v54 = vsel %vm2453_vm3, %v1984_v7, %v2464_v6  ;;  %v2020_v6 = vrot.slane %v6399_v60, %v6549_v39  ;;  %v2068_v7 = vrot.slane %v6441_v42, %v6549_v39  ;;  %v6622_v42 = vsub.f32 %v5440_v48, %v8768_v17 }
 0x2ba   :  { %v6585_v56 = vpop.permute.xlu1 %1708  ;;  %v6587_v31 = vpop.permute.xlu0 %1747  ;;  %v2466_v57 = vsel %vm2455_vm4, %v1988_v1, %v2465_v54  ;;  %v2076_v1 = vrot.slane %v6455_v21, %v6549_v39  ;;  %v2028_v21 = vrot.slane %v6413_v3, %v6549_v39  ;;  %v2140_v3 = vrot.slane %v6566_v38, %v6549_v39 }
 0x2bb   :  { %1894 = vperm.xlu1 %5237, %v6574_v24   ;;  %v2471_v24 = vsel %vm2451_vm2, %v2012_v50, %v2470_v9  ;;  %v2467_v60 = vsel %vm2457_vm5, %v1992_v40, %v2466_v57  ;;  %v2484_v54 = vsel %vm2449_vm1, %v2072_v47, %v2068_v7  ;;  %v2136_v7 = vrot.slane %v6471_v46, %v6549_v39 }
 0x2bc   :  { %v2472_v50 = vsel %vm2453_vm3, %v2016_v59, %v2471_v24  ;;  %v2468_v43 = vsel %vm2459_vm6, %v1996_v51, %v2467_v60  ;;  %v2024_v24 = vrot.slane %v6317_v23, %v6549_v39  ;;  %v2485_v40 = vsel %vm2451_vm2, %v2076_v1, %v2484_v54  ;;  %v8769_v23 = vld [vmem:[#allocation74_spill] sm:$0xff] }
 0x2bd   :  { %v2473_v13 = vsel %vm2455_vm4, %v2020_v6, %v2472_v50  ;;  %v2084_v51 = vrot.slane %v6469_v34, %v6549_v39  ;;  %v2080_v6 = vrot.slane %v6373_v12, %v6549_v39  ;;  %v6652_v59 = vsub.f32 %v5440_v48, %v8769_v23  ;;  %v8771_v23 = vld [vmem:[#allocation78_spill] sm:$0xff] }
 0x2be   :  { %v6608_v62 = vpop.permute.xlu1 %1714  ;;  %v6610_v41 = vpop.permute.xlu0 %1753  ;;  %v2474_v34 = vsel %vm2457_vm5, %v2024_v24, %v2473_v13  ;;  %v2498_v1 = vsel %vm2449_vm1, %v2136_v7, %v2132_v8  ;;  %v2469_v12 = vsel %vm2461_vm7, %v2000_v26, %v2468_v43  ;;  %v2092_v17 = vrot.slane %v6483_v45, %v6549_v39  ;;  %v8770_v8 = vld [vmem:[#allocation77_spill] sm:$0xff] }
 0x2bf   :  { %1900 = vperm.xlu1 %5237, %v6595_v22   ;;  %v2486_v38 = vsel %vm2453_vm3, %v2080_v6, %v2485_v40  ;;  %v2475_v60 = vsel %vm2459_vm6, %v2028_v21, %v2474_v34  ;;  %v2499_v50 = vsel %vm2451_vm2, %v2140_v3, %v2498_v1  ;;  %v2148_v13 = vrot.slane %v6585_v56, %v6549_v39 }
 0x2c0   :  { %v2487_v46 = vsel %vm2455_vm4, %v2084_v51, %v2486_v38  ;;  %v2032_v54 = vrot.slane %v6331_v0, %v6549_v39  ;;  %v2088_v43 = vrot.slane %v6387_v52, %v6549_v39  ;;  %v2144_v21 = vrot.slane %v6485_v10, %v6549_v39 }
 0x2c1   :  { %v6678_v24 = vsub.f32 %v5440_v48, %v8770_v8  ;;  %v2588_v45 = vsel %vm2584_vm8, %v2469_v12, inf  ;;  %v2156_v10 = vrot.slane %v6608_v62, %v6549_v39  ;;  %v2096_v6 = vrot.slane %v6401_v61, %v6549_v39 }
 0x2c2   :  { %v6632_v57 = vpop.permute.xlu1 %1720  ;;  %v6634_v9 = vpop.permute.xlu0 %1759  ;;  %v2500_v40 = vsel %vm2453_vm3, %v2144_v21, %v2499_v50  ;;  %v2476_v0 = vsel %vm2461_vm7, %v2032_v54, %v2475_v60  ;;  %v2488_v52 = vsel %vm2457_vm5, %v2088_v43, %v2487_v46  ;;  %v2152_v7 = vrot.slane %v6499_v19, %v6549_v39  ;;  %v8772_v46 = vld [vmem:[#allocation81_spill] sm:$0xff] }
 0x2c3   :  { %1906 = vperm.xlu1 %5237, %v6622_v42   ;;  %v2501_v3 = vsel %vm2455_vm4, %v2148_v13, %v2500_v40  ;;  %v2489_v26 = vsel %vm2459_vm6, %v2092_v17, %v2488_v52  ;;  %v6699_v34 = vsub.f32 %v5440_v48, %v8771_v23  ;;  %v2591_v38 = vsel %vm2584_vm8, %v2476_v0, inf }
 0x2c4   :  { %v2490_v12 = vsel %vm2461_vm7, %v2096_v6, %v2489_v26  ;;  %v2502_v60 = vsel %vm2457_vm5, %v2152_v7, %v2501_v3  ;;  %v2160_v19 = vrot.slane %v6513_v11, %v6549_v39  ;;  %v6714_v17 = vsub.f32 %v5440_v48, %v8772_v46 }
 0x2c5   :  { %v2503_v61 = vsel %vm2459_vm6, %v2156_v10, %v2502_v60  ;;  %v2597_v50 = vsel %vm2584_vm8, %v2490_v12, inf  ;;  %v2200_v11 = vrot.slane %v6587_v31, %v6549_v39  ;;  %v2208_v10 = vrot.slane %v6610_v41, %v6549_v39 }
 0x2c6   :  { %v6657_v47 = vpop.permute.xlu1 %1726  ;;  %v6659_v30 = vpop.permute.xlu0 %1765  ;;  %v2504_v43 = vsel %vm2461_vm7, %v2160_v19, %v2503_v61  ;;  %v1944_v61 = vrot.slane %v6273_v2, %v6549_v39  ;;  %v1948_v19 = vrot.slane %v6287_v16, %v6549_v39 }
 0x2c7   :  { %1912 = vperm.xlu1 %5237, %v6652_v59   ;;  %v2603_v8 = vsel %vm2584_vm8, %v2504_v43, inf  ;;  %v2224_v46 = vrot.slane %v6659_v30, %v6549_v39  ;;  %v1956_v30 = vrot.slane %v6301_v32, %v6549_v39 }
 0x2ca   :  { %v6682_v56 = vpop.permute.xlu1 %1732  ;;  %2589 = vmin.xlane.f32.xlu0 %v2588_v45  ;;  %v6684_v51 = vpop.permute.xlu0 %1771 }
 0x2cb   :  { %1918 = vperm.xlu1 %5237, %v6678_v24  }
 0x2ce   :  { %v6702_v1 = vpop.permute.xlu1 %1738  ;;  %2592 = vmin.xlane.f32.xlu0 %v2591_v38  ;;  %v6704_v62 = vpop.permute.xlu0 %1777  ;;  %v2216_v38 = vrot.slane %v6634_v9, %v6549_v39 }
 0x2cf   :  { %1924 = vperm.xlu1 %5237, %v6699_v34  }
 0x2d2   :  { %v1745_v13 = vpop.permute.xlu1 %1744  ;;  %2598 = vmin.xlane.f32.xlu0 %v2597_v50  ;;  %v6717_v54 = vpop.permute.xlu0 %1783 }
 0x2d3   :  { %1930 = vperm.xlu1 %5237, %v6714_v17   ;;  %v2196_v21 = vrot.slane %v1745_v13, %v6549_v39  ;;  %v1940_v13 = vrot.slane %v6191_v27, %v6549_v39  ;;  %v2036_v27 = vrot.slane %v6329_v44, %v6549_v39 }
 0x2d5   :  { %v2512_v52 = vsel %vm2449_vm1, %v2200_v11, %v2196_v21 }
 0x2d6   :  { %v1751_v45 = vpop.permute.xlu1 %1750  ;;  %2604 = vmin.xlane.f32.xlu0 %v2603_v8  ;;  %v6725_v40 = vpop.permute.xlu0 %1789  ;;  %v2450_v8 = vsel %vm2449_vm1, %v1944_v61, %v1940_v13  ;;  %v2104_v61 = vrot.slane %v6415_v37, %v6549_v39  ;;  %v2164_v37 = vrot.slane %v6632_v57, %v6549_v39 }
 0x2d7   :  { %v2204_v0 = vrot.slane %v1751_v45, %v6549_v39  ;;  %v2452_v11 = vsel %vm2451_vm2, %v1948_v19, %v2450_v8  ;;  %v1952_v45 = vrot.slane %v6205_v4, %v6549_v39  ;;  %v2172_v8 = vrot.slane %v6657_v47, %v6549_v39 }
 0x2d9   :  { %v2513_v3 = vsel %vm2451_vm2, %v2204_v0, %v2512_v52  ;;  %v2044_v0 = vrot.slane %v6343_v14, %v6549_v39  ;;  %v2040_v52 = vrot.slane %v6247_v63, %v6549_v39  ;;  %v2052_v14 = vrot.slane %v6357_v28, %v6549_v39 }
 0x2da   :  { %v1757_v26 = vpop.permute.xlu1 %1756  ;;  %v6732_v6 = vpop.permute.xlu0 %1795  ;;  %v2514_v31 = vsel %vm2453_vm3, %v2208_v10, %v2513_v3  ;;  %v2100_v63 = vrot.slane %v6497_v15, %v6549_v39 }
 0x2db   :  { %v2212_v7 = vrot.slane %v1757_v26, %v6549_v39  ;;  %v2454_v26 = vsel %vm2453_vm3, %v1952_v45, %v2452_v11  ;;  %v2477_v44 = vsel %vm2449_vm1, %v2040_v52, %v2036_v27  ;;  %v8773_v52 = vld [vmem:[#allocation125_spill] sm:$0xff] }
 0x2dc   :  { %v2456_v32 = vsel %vm2455_vm4, %v1956_v30, %v2454_v26  ;;  %v2478_v4 = vsel %vm2451_vm2, %v2044_v0, %v2477_v44  ;;  %v2180_v0 = vrot.slane %v6682_v56, %v6549_v39  ;;  %v2120_v26 = vrot.slane %v8773_v52, %v6549_v39 }
 0x2dd   :  { %v2515_v23 = vsel %vm2455_vm4, %v2212_v7, %v2514_v31  ;;  %v1964_v7 = vrot.slane %v6315_v36, %v6549_v39  ;;  %v1960_v31 = vrot.slane %v6219_v53, %v6549_v39  ;;  %v2491_v53 = vsel %vm2449_vm1, %v2104_v61, %v2100_v63 }
 0x2de   :  { %v1763_v12 = vpop.permute.xlu1 %1762  ;;  %v6739_v60 = vpop.permute.xlu0 %1801  ;;  %v2516_v50 = vsel %vm2457_vm5, %v2216_v38, %v2515_v23  ;;  %v2048_v23 = vrot.slane %v6261_v18, %v6549_v39  ;;  %v2108_v38 = vrot.slane %v6511_v33, %v6549_v39  ;;  %v2060_v33 = vrot.slane %v6427_v29, %v6549_v39 }
 0x2df   :  { %v2220_v41 = vrot.slane %v1763_v12, %v6549_v39  ;;  %v2458_v15 = vsel %vm2457_vm5, %v1960_v31, %v2456_v32  ;;  %v2112_v29 = vrot.slane %v6429_v55, %v6549_v39  ;;  %v8774_v32 = vld [vmem:[#allocation141_spill] sm:$0xff] }
 0x2e0   :  { %v2479_v28 = vsel %vm2453_vm3, %v2048_v23, %v2478_v4  ;;  %v2460_v18 = vsel %vm2459_vm6, %v1964_v7, %v2458_v15  ;;  %v2492_v19 = vsel %vm2451_vm2, %v2108_v38, %v2491_v53  ;;  %v2176_v44 = vrot.slane %v8774_v32, %v6549_v39 }
 0x2e1   :  { %v2517_v9 = vsel %vm2459_vm6, %v2220_v41, %v2516_v50  ;;  %v2480_v41 = vsel %vm2455_vm4, %v2052_v14, %v2479_v28  ;;  %v2493_v57 = vsel %vm2453_vm3, %v2112_v29, %v2492_v19  ;;  %v2188_v15 = vrot.slane %v6702_v1, %v6549_v39  ;;  %v8776_v19 = vld [vmem:[#allocation4_spill] sm:$0xff] }
 0x2e2   :  { %v6752_v43 = vpop.permute.xlu1 %1768  ;;  %v6754_v21 = vpop.permute.xlu0 %1807  ;;  %v2518_v2 = vsel %vm2461_vm7, %v2224_v46, %v2517_v9  ;;  %v2116_v46 = vrot.slane %v6525_v20, %v6549_v39  ;;  %v1968_v9 = vrot.slane %v6233_v58, %v6549_v39  ;;  %v2168_v20 = vrot.slane %v6527_v35, %v6549_v39 }
 0x2e3   :  { %v2609_v16 = vsel %vm2584_vm8, %v2518_v2, inf  ;;  %v2056_v2 = vrot.slane %v6275_v25, %v6549_v39  ;;  %v2064_v58 = vrot.slane %v6345_v5, %v6549_v39  ;;  %v2124_v35 = vrot.slane %v6538_v49, %v6549_v39 }
 0x2e4   :  { %2610 = vmin.xlane.f32.xlu0 %v2609_v16  ;;  %v2462_v16 = vsel %vm2461_vm7, %v1968_v9, %v2460_v18  ;;  %v2494_v25 = vsel %vm2455_vm4, %v2116_v46, %v2493_v57  ;;  %v2505_v30 = vsel %vm2449_vm1, %v2168_v20, %v2164_v37  ;;  %v2228_v5 = vrot.slane %v6752_v43, %v6549_v39  ;;  %v8775_v18 = vld [vmem:[#allocation128_spill] sm:$0xff] }
 0x2e5   :  { %v2481_v11 = vsel %vm2457_vm5, %v2056_v2, %v2480_v41  ;;  %v2506_v45 = vsel %vm2451_vm2, %v2172_v8, %v2505_v30  ;;  %v2232_v49 = vrot.slane %v6684_v51, %v6549_v39  ;;  %v2585_v14 = vsel %vm2584_vm8, %v2462_v16, inf }
 0x2e6   :  { %v6770_v3 = vpop.permute.xlu1 %1774  ;;  %v6772_v10 = vpop.permute.xlu0 %1813  ;;  %v2482_v47 = vsel %vm2459_vm6, %v2060_v33, %v2481_v11  ;;  %v2507_v56 = vsel %vm2453_vm3, %v2176_v44, %v2506_v45  ;;  %v2264_v43 = vrot.slane %v6732_v6, %v6549_v39  ;;  %v2495_v38 = vsel %vm2457_vm5, %v2120_v26, %v2494_v25  ;;  %v8777_v25 = vld [vmem:[#allocation144_spill] sm:$0xff] }
 0x2e7   :  { %v2236_v7 = vrot.slane %v6770_v3, %v6549_v39  ;;  %v2483_v23 = vsel %vm2461_vm7, %v2064_v58, %v2482_v47  ;;  %v2508_v3 = vsel %vm2455_vm4, %v2180_v0, %v2507_v56  ;;  %v2519_v61 = vsel %vm2449_vm1, %v2232_v49, %v2228_v5 }
 0x2e8   :  { %v2496_v28 = vsel %vm2459_vm6, %v2124_v35, %v2495_v38  ;;  %v2128_v33 = vrot.slane %v8775_v18, %v6549_v39  ;;  %v2184_v46 = vrot.slane %v8776_v19, %v6549_v39  ;;  %v2240_v37 = vrot.slane %v6704_v62, %v6549_v39 }
 0x2e9   :  { %v2520_v6 = vsel %vm2451_vm2, %v2236_v7, %v2519_v61  ;;  %v2272_v1 = vrot.slane %v6739_v60, %v6549_v39  ;;  %v2594_v29 = vsel %vm2584_vm8, %v2483_v23, inf  ;;  %v2192_v30 = vrot.slane %v8777_v25, %v6549_v39 }
 0x2ea   :  { %v6790_v12 = vpop.permute.xlu1 %1780  ;;  %v6792_v36 = vpop.permute.xlu0 %1819  ;;  %v2497_v57 = vsel %vm2461_vm7, %v2128_v33, %v2496_v28  ;;  %v2509_v16 = vsel %vm2457_vm5, %v2184_v46, %v2508_v3  ;;  %v2280_v35 = vrot.slane %v6754_v21, %v6549_v39  ;;  %v2288_v26 = vrot.slane %v6772_v10, %v6549_v39 }
 0x2eb   :  { %v2244_v41 = vrot.slane %v6790_v12, %v6549_v39  ;;  %v2521_v12 = vsel %vm2453_vm3, %v2240_v37, %v2520_v6  ;;  %v2510_v58 = vsel %vm2459_vm6, %v2188_v15, %v2509_v16  ;;  %v2600_v0 = vsel %vm2584_vm8, %v2497_v57, inf }
 0x2ec   :  { %v2511_v5 = vsel %vm2461_vm7, %v2192_v30, %v2510_v58  ;;  %v2256_v21 = vrot.slane %v6725_v40, %v6549_v39 }
 0x2ed   :  { %v2522_v62 = vsel %vm2455_vm4, %v2244_v41, %v2521_v12  ;;  %v2606_v49 = vsel %vm2584_vm8, %v2511_v5, inf }
 0x2ee   :  { %v6808_v50 = vpop.permute.xlu1 %1786  ;;  %v6810_v13 = vpop.permute.xlu0 %1825 }
 0x2ef   :  { %v2252_v11 = vrot.slane %v6808_v50, %v6549_v39  ;;  %v2304_v28 = vrot.slane %v6810_v13, %v6549_v39 }
 0x2f2   :  { %v1793_v55 = vpop.permute.xlu1 %1792  ;;  %v6829_v27 = vpop.permute.xlu0 %1831 }
 0x2f3   :  { %v2260_v4 = vrot.slane %v1793_v55, %v6549_v39  ;;  %v2248_v55 = vrot.slane %v6717_v54, %v6549_v39  ;;  %v2312_v18 = vrot.slane %v6829_v27, %v6549_v39 }
 0x2f5   :  { %v2526_v53 = vsel %vm2449_vm1, %v2264_v43, %v2260_v4  ;;  %v2523_v52 = vsel %vm2457_vm5, %v2248_v55, %v2522_v62 }
 0x2f6   :  { %v1799_v63 = vpop.permute.xlu1 %1798  ;;  %v6852_v31 = vpop.permute.xlu0 %1837  ;;  %v2524_v32 = vsel %vm2459_vm6, %v2252_v11, %v2523_v52 }
 0x2f7   :  { %v2268_v51 = vrot.slane %v1799_v63, %v6549_v39  ;;  %2586 = vmin.xlane.f32.xlu1 %v2585_v14  ;;  %v2525_v10 = vsel %vm2461_vm7, %v2256_v21, %v2524_v32  ;;  %v2296_v63 = vrot.slane %v6792_v36, %v6549_v39  ;;  %v2320_v46 = vrot.slane %v6852_v31, %v6549_v39 }
 0x2f8   :  { %v2612_v23 = vsel %vm2584_vm8, %v2525_v10, inf }
 0x2f9   :  { %v2527_v9 = vsel %vm2451_vm2, %v2268_v51, %v2526_v53 }
 0x2fa   :  { %v1805_v2 = vpop.permute.xlu1 %1804  ;;  %v6878_v20 = vpop.permute.xlu0 %1843  ;;  %v2528_v60 = vsel %vm2453_vm3, %v2272_v1, %v2527_v9 }
 0x2fb   :  { %v2276_v8 = vrot.slane %v1805_v2, %v6549_v39  ;;  %2595 = vmin.xlane.f32.xlu1 %v2594_v29  ;;  %v2328_v27 = vrot.slane %v6878_v20, %v6549_v39 }
 0x2fd   :  { %v2529_v47 = vsel %vm2455_vm4, %v2276_v8, %v2528_v60 }
 0x2fe   :  { %v1811_v45 = vpop.permute.xlu1 %1810  ;;  %v2530_v54 = vsel %vm2457_vm5, %v2280_v35, %v2529_v47  ;;  %v1850_v44 = vpop.permute.xlu0 %1849 }
 0x2ff   :  { %v2284_v50 = vrot.slane %v1811_v45, %v6549_v39  ;;  %2601 = vmin.xlane.f32.xlu1 %v2600_v0  ;;  %v2336_v11 = vrot.slane %v1850_v44, %v6549_v39 }
 0x301   :  { %v2531_v7 = vsel %vm2459_vm6, %v2284_v50, %v2530_v54 }
 0x302   :  { %v1817_v4 = vpop.permute.xlu1 %1816  ;;  %v2532_v14 = vsel %vm2461_vm7, %v2288_v26, %v2531_v7  ;;  %v1856_v38 = vpop.permute.xlu0 %1855 }
 0x303   :  { %2607 = vmin.xlane.f32.xlu1 %v2606_v49  ;;  %v2615_v56 = vsel %vm2584_vm8, %v2532_v14, inf  ;;  %v2292_v43 = vrot.slane %v1817_v4, %v6549_v39  ;;  %v2344_v55 = vrot.slane %v1856_v38, %v6549_v39 }
 0x304   :  { %2616 = vmin.xlane.f32.xlu0 %v2615_v56 }
 0x305   :  { %v2533_v61 = vsel %vm2449_vm1, %v2296_v63, %v2292_v43 }
 0x306   :  { %v1823_v40 = vpop.permute.xlu1 %1822  ;;  %v1862_v36 = vpop.permute.xlu0 %1861 }
 0x307   :  { %v2300_v3 = vrot.slane %v1823_v40, %v6549_v39  ;;  %2613 = vmin.xlane.f32.xlu1 %v2612_v23  ;;  %v2352_v45 = vrot.slane %v1862_v36, %v6549_v39 }
 0x309   :  { %v2534_v51 = vsel %vm2451_vm2, %v2300_v3, %v2533_v61 }
 0x30a   :  { %v1829_v15 = vpop.permute.xlu1 %1828  ;;  %v2535_v41 = vsel %vm2453_vm3, %v2304_v28, %v2534_v51  ;;  %v1868_v2 = vpop.permute.xlu0 %1867 }
 0x30b   :  { %v2308_v6 = vrot.slane %v1829_v15, %v6549_v39  ;;  %v2360_v21 = vrot.slane %v1868_v2, %v6549_v39 }
 0x30d   :  { %v2536_v53 = vsel %vm2455_vm4, %v2308_v6, %v2535_v41 }
 0x30e   :  { %v1835_v33 = vpop.permute.xlu1 %1834  ;;  %v2537_v37 = vsel %vm2457_vm5, %v2312_v18, %v2536_v53  ;;  %v1874_v16 = vpop.permute.xlu0 %1873 }
 0x30f   :  { %v2316_v19 = vrot.slane %v1835_v33, %v6549_v39  ;;  %v2368_v14 = vrot.slane %v1874_v16, %v6549_v39 }
 0x311   :  { %v2538_v13 = vsel %vm2459_vm6, %v2316_v19, %v2537_v37 }
 0x312   :  { %v1841_v9 = vpop.permute.xlu1 %1840  ;;  %v2539_v1 = vsel %vm2461_vm7, %v2320_v46, %v2538_v13  ;;  %v1880_v47 = vpop.permute.xlu0 %1879 }
 0x313   :  { %v2618_v29 = vsel %vm2584_vm8, %v2539_v1, inf  ;;  %v2324_v12 = vrot.slane %v1841_v9, %v6549_v39  ;;  %v2376_v23 = vrot.slane %v1880_v47, %v6549_v39  ;;  %v8780_v47 = vld [vmem:[#allocation89_spill] sm:$0xff] }
 0x314   :  { %2619 = vmin.xlane.f32.xlu1 %v2618_v29 }
 0x315   :  { %v2540_v31 = vsel %vm2449_vm1, %v2328_v27, %v2324_v12 }
 0x316   :  { %v1847_v8 = vpop.permute.xlu1 %1846  ;;  %v1886_v32 = vpop.permute.xlu0 %1885 }
 0x317   :  { %v2332_v57 = vrot.slane %v1847_v8, %v6549_v39  ;;  %v2384_v61 = vrot.slane %v1886_v32, %v6549_v39 }
 0x319   :  { %v2541_v62 = vsel %vm2451_vm2, %v2332_v57, %v2540_v31 }
 0x31a   :  { %v1853_v60 = vpop.permute.xlu1 %1852  ;;  %v2542_v25 = vsel %vm2453_vm3, %v2336_v11, %v2541_v62  ;;  %v1892_v10 = vpop.permute.xlu0 %1891 }
 0x31b   :  { %v2340_v58 = vrot.slane %v1853_v60, %v6549_v39  ;;  %v2392_v18 = vrot.slane %v1892_v10, %v6549_v39 }
 0x31d   :  { %v2543_v30 = vsel %vm2455_vm4, %v2340_v58, %v2542_v25  ;;  %v8778_v25 = vld [vmem:[#allocation83_spill] sm:$0xff] }
 0x31e   :  { %v1859_v20 = vpop.permute.xlu1 %1858  ;;  %v2544_v0 = vsel %vm2457_vm5, %v2344_v55, %v2543_v30  ;;  %v1898_v28 = vpop.permute.xlu0 %1897  ;;  %v6981_v30 = vsub.f32 %v5440_v48, %v8778_v25  ;;  %v8779_v55 = vld [vmem:[#allocation87_spill] sm:$0xff]  ;;  %v8790_v25 = vld [vmem:[#allocation34_spill] sm:$0xff] }
 0x31f   :  { %v2348_v35 = vrot.slane %v1859_v20, %v6549_v39  ;;  %v2400_v9 = vrot.slane %v1898_v28, %v6549_v39  ;;  %v6986_v20 = vsub.f32 %v5440_v48, %v8779_v55 }
 0x321   :  { %v2545_v50 = vsel %vm2459_vm6, %v2348_v35, %v2544_v0  ;;  %v6991_v35 = vsub.f32 %v5440_v48, %v8780_v47 }
 0x322   :  { %v1865_v5 = vpop.permute.xlu1 %1864  ;;  %v2546_v52 = vsel %vm2461_vm7, %v2352_v45, %v2545_v50  ;;  %v1904_v19 = vpop.permute.xlu0 %1903  ;;  %v8781_v45 = vld [vmem:[#allocation92_spill] sm:$0xff] }
 0x323   :  { %v2621_v26 = vsel %vm2584_vm8, %v2546_v52, inf  ;;  %v2356_v54 = vrot.slane %v1865_v5, %v6549_v39  ;;  %v2408_v8 = vrot.slane %v1904_v19, %v6549_v39  ;;  %v6996_v0 = vsub.f32 %v5440_v48, %v8781_v45  ;;  %v8782_v50 = vld [vmem:[#allocation140_spill] sm:$0xff] }
 0x324   :  { %2622 = vmin.xlane.f32.xlu0 %v2621_v26 }
 0x325   :  { %v2547_v4 = vsel %vm2449_vm1, %v2360_v21, %v2356_v54 }
 0x326   :  { %v1871_v44 = vpop.permute.xlu1 %1870  ;;  %v1910_v12 = vpop.permute.xlu0 %1909 }
 0x327   :  { %v2364_v7 = vrot.slane %v1871_v44, %v6549_v39  ;;  %v2416_v16 = vrot.slane %v1910_v12, %v6549_v39 }
 0x329   :  { %v2548_v49 = vsel %vm2451_vm2, %v2364_v7, %v2547_v4 }
 0x32a   :  { %v1877_v56 = vpop.permute.xlu1 %1876  ;;  %v2549_v63 = vsel %vm2453_vm3, %v2368_v14, %v2548_v49 }
 0x32b   :  { %v2372_v43 = vrot.slane %v1877_v56, %v6549_v39 }
 0x32d   :  { %v2550_v40 = vsel %vm2455_vm4, %v2372_v43, %v2549_v63 }
 0x32e   :  { %v1883_v38 = vpop.permute.xlu1 %1882  ;;  %v2551_v51 = vsel %vm2457_vm5, %v2376_v23, %v2550_v40 }
 0x32f   :  { %v2380_v3 = vrot.slane %v1883_v38, %v6549_v39 }
 0x331   :  { %v2552_v15 = vsel %vm2459_vm6, %v2380_v3, %v2551_v51 }
 0x332   :  { %v1889_v6 = vpop.permute.xlu1 %1888  ;;  %v2553_v41 = vsel %vm2461_vm7, %v2384_v61, %v2552_v15 }
 0x333   :  { %v2624_v36 = vsel %vm2584_vm8, %v2553_v41, inf  ;;  %v2388_v53 = vrot.slane %v1889_v6, %v6549_v39 }
 0x334   :  { %2625 = vmin.xlane.f32.xlu1 %v2624_v36 }
 0x335   :  { %v2554_v37 = vsel %vm2449_vm1, %v2392_v18, %v2388_v53 }
 0x336   :  { %v1895_v33 = vpop.permute.xlu1 %1894 }
 0x337   :  { %v2396_v46 = vrot.slane %v1895_v33, %v6549_v39  ;;  %v8783_v33 = vld [vmem:[#allocation8_spill] sm:$0xff] }
 0x339   :  { %v2555_v13 = vsel %vm2451_vm2, %v2396_v46, %v2554_v37 }
 0x33a   :  { %v1901_v1 = vpop.permute.xlu1 %1900  ;;  %v2556_v29 = vsel %vm2453_vm3, %v2400_v9, %v2555_v13 }
 0x33b   :  { %v2404_v2 = vrot.slane %v1901_v1, %v6549_v39 }
 0x33d   :  { %v2557_v27 = vsel %vm2455_vm4, %v2404_v2, %v2556_v29  ;;  %v8784_v2 = vld [vmem:[#allocation44_spill] sm:$0xff]  ;;  %v8785_v29 = vld [vmem:[#allocation10_spill] sm:$0xff] }
 0x33e   :  { %v1907_v57 = vpop.permute.xlu1 %1906  ;;  %v2558_v62 = vsel %vm2457_vm5, %v2408_v8, %v2557_v27  ;;  %v8786_v8 = vld [vmem:[#allocation46_spill] sm:$0xff] }
 0x33f   :  { %v2412_v31 = vrot.slane %v1907_v57, %v6549_v39  ;;  %v8787_v57 = vld [vmem:[#allocation12_spill] sm:$0xff] }
 0x341   :  { %v2559_v11 = vsel %vm2459_vm6, %v2412_v31, %v2558_v62  ;;  %v8788_v62 = vld [vmem:[#allocation48_spill] sm:$0xff] }
 0x342   :  { %v2560_v60 = vsel %vm2461_vm7, %v2416_v16, %v2559_v11  ;;  %v1913_v21 = vpop.permute.xlu1 %1912  ;;  %v8789_v11 = vld [vmem:[#allocation6_spill] sm:$0xff] }
 0x343   :  { %v2627_v58 = vsel %vm2584_vm8, %v2560_v60, inf  ;;  %v2420_v56 = vrot.slane %v1913_v21, %v6549_v39  ;;  %v8791_v21 = vld [vmem:[#allocation36_spill] sm:$0xff] }
 0x344   :  { %2628 = vmin.xlane.f32.xlu0 %v2627_v58 }
 0x346   :  { %v1919_v48 = vpop.permute.xlu1 %1918 }
 0x347   :  { %v2428_v63 = vrot.slane %v1919_v48, %v6549_v39  ;;  %v8792_v48 = vld [vmem:[#allocation32_spill] sm:$0xff] }
 0x34a   :  { %v1925_v49 = vpop.permute.xlu1 %1924 }
 0x34b   :  { %v2436_v51 = vrot.slane %v1925_v49, %v6549_v39 }
 0x34e   :  { %v1931_v23 = vpop.permute.xlu1 %1930 }
 0x34f   :  { %v2444_v53 = vrot.slane %v1931_v23, %v6549_v39 }
 0x353   :  { %v7000_v5 = vpop.xlane.xlu0 %2589 }
 0x354   :  { %v2684_v60 = vrot.slane %v7000_v5, %v8789_v11  ;;  %v2692_v55 = vrot.slane %v7000_v5, %v8783_v33  ;;  %v2700_v49 = vrot.slane %v7000_v5, %v8785_v29  ;;  %v2708_v23 = vrot.slane %v7000_v5, %v8787_v57 }
 0x356   :  { %vm3297_vm12 = vcmp.le.f32.partialorder %v8790_v25, %v2684_v60  ;;  %vm3299_vm13 = vcmp.le.f32.partialorder %v8791_v21, %v2692_v55  ;;  %v8806_v25 = vld [vmem:[#allocation28_spill] sm:$0xff] }
 0x357   :  { %v7002_v52 = vpop.xlane.xlu0 %2592 }
 0x358   :  { %v2740_v55 = vrot.slane %v7002_v52, %v8787_v57 }
 0x35a   :  { %1915 = vperm.xlu0 %5238, %v6981_v30  }
 0x35b   :  { %v7004_v26 = vpop.xlane.xlu0 %2598 }
 0x35e   :  { %1921 = vperm.xlu0 %5238, %v6986_v20  }
 0x35f   :  { %v7006_v54 = vpop.xlane.xlu0 %2604 }
 0x362   :  { %1927 = vperm.xlu0 %5238, %v6991_v35  }
 0x366   :  { %1933 = vperm.xlu0 %5238, %v6996_v0  }
 0x36a   :  { %3418 = vbcast.lane.b32.xlu0 %v8782_v50, 256 }
 0x36d   :  { %v7008_v32 = vpop.xlane.xlu0 %2610 }
 0x380   :  { %v7024_v15 = vpop.xlane.xlu1 %2586 }
 0x381   :  { %v2660_v19 = vrot.slane %v7024_v15, %v8783_v33  ;;  %v2668_v12 = vrot.slane %v7024_v15, %v8785_v29  ;;  %v2676_v31 = vrot.slane %v7024_v15, %v8787_v57  ;;  %v2652_v47 = vrot.slane %v7024_v15, %v8789_v11 }
 0x383   :  { %vm3291_vm9 = vcmp.le.f32.partialorder %v8784_v2, %v2660_v19  ;;  %vm3293_vm10 = vcmp.le.f32.partialorder %v8786_v8, %v2668_v12  ;;  %vm3295_vm11 = vcmp.le.f32.partialorder %v8788_v62, %v2676_v31  ;;  %vm3289_vm14 = vcmp.le.f32.partialorder %v8792_v48, %v2652_v47  ;;  %v8803_v8 = vld [vmem:[#allocation58_spill] sm:$0xff]  ;;  %v8804_v31 = vld [vmem:[#allocation37_spill] sm:$0xff] }
 0x38d   :  { %v7010_v44 = vpop.xlane.xlu0 %2616 }
 0x3ad   :  { %v7012_v7 = vpop.xlane.xlu0 %2622 }
 0x3cd   :  { %v7014_v4 = vpop.xlane.xlu0 %2628 }
 0x3d5   :  { %v1916_v14 = vpop.permute.xlu0 %1915 }
 0x3d6   :  { %v2424_v10 = vrot.slane %v1916_v14, %v6549_v39  ;;  %v8793_v14 = vld [vmem:[#allocation5_spill] sm:$0xff] }
 0x3d7   :  { %v2688_v62 = vrot.slane %v7000_v5, %v8793_v14 }
 0x3d8   :  { %v2561_v43 = vsel %vm2449_vm1, %v2424_v10, %v2420_v56  ;;  %v2656_v56 = vrot.slane %v7024_v15, %v8793_v14 }
 0x3d9   :  { %v1922_v40 = vpop.permute.xlu0 %1921  ;;  %v2562_v3 = vsel %vm2451_vm2, %v2428_v63, %v2561_v43  ;;  %v8794_v63 = vld [vmem:[#allocation38_spill] sm:$0xff] }
 0x3da   :  { %v2432_v38 = vrot.slane %v1922_v40, %v6549_v39  ;;  %vm3301_vm15 = vcmp.le.f32.partialorder %v8794_v63, %v2700_v49  ;;  %v8795_v40 = vld [vmem:[#allocation42_spill] sm:$0xff] }
 0x3db   :  { %v8807_v49 = vld [vmem:[#allocation62_spill] sm:$0xff] }
 0x3dc   :  { %v2563_v61 = vsel %vm2453_vm3, %v2432_v38, %v2562_v3  ;;  %v8796_v38 = vld [vmem:[#allocation7_spill] sm:$0xff] }
 0x3dd   :  { %v1928_v28 = vpop.permute.xlu0 %1927  ;;  %v2564_v41 = vsel %vm2455_vm4, %v2436_v51, %v2563_v61  ;;  %v2664_v3 = vrot.slane %v7024_v15, %v8796_v38  ;;  %v2696_v47 = vrot.slane %v7000_v5, %v8796_v38 }
 0x3de   :  { %v2440_v6 = vrot.slane %v1928_v28, %v6549_v39  ;;  %v8797_v28 = vld [vmem:[#allocation40_spill] sm:$0xff] }
 0x3e0   :  { %v2565_v36 = vsel %vm2457_vm5, %v2440_v6, %v2564_v41  ;;  %v8798_v6 = vld [vmem:[#allocation33_spill] sm:$0xff]  ;;  %v2716_v41 = vrot.slane %v7002_v52, %v8789_v11 }
 0x3e1   :  { %v1934_v18 = vpop.permute.xlu0 %1933  ;;  %v2566_v37 = vsel %vm2459_vm6, %v2444_v53, %v2565_v36  ;;  %v8799_v36 = vld [vmem:[#allocation9_spill] sm:$0xff] }
 0x3e2   :  { %v2448_v46 = vrot.slane %v1934_v18, %v6549_v39  ;;  %v2672_v53 = vrot.slane %v7024_v15, %v8799_v36 }
 0x3e4   :  { %v2567_v13 = vsel %vm2461_vm7, %v2448_v46, %v2566_v37  ;;  %v8800_v46 = vld [vmem:[#allocation56_spill] sm:$0xff]  ;;  %v8801_v37 = vld [vmem:[#allocation35_spill] sm:$0xff] }
 0x3e5   :  { %v7035_v9 = vpop.permute.xlu0 %3418  ;;  %v2630_v1 = vsel %vm2584_vm8, %v2567_v13, inf  ;;  %v2724_v13 = vrot.slane %v7002_v52, %v8783_v33 }
 0x3e6   :  { %2631 = vmin.xlane.f32.xlu1 %v2630_v1  ;;  %v3422_v27 = vsel %vm3291_vm9, %v7035_v9, 8  ;;  %v3424_v16 = vsel %vm3293_vm10, %v7035_v9, 8  ;;  %v3426_v58 = vsel %vm3295_vm11, %v7035_v9, 8  ;;  %v3428_v45 = vsel %vm3297_vm12, %v7035_v9, 8  ;;  %v8802_v1 = vld [vmem:[#allocation11_spill] sm:$0xff] }
 0x3e7   :  { %3555 = vperm.xlu0 %5238, %v3422_v27   ;;  %v3430_v10 = vsel %vm3299_vm13, %v7035_v9, 8  ;;  %v3420_v43 = vsel %vm3289_vm14, %v7035_v9, 8  ;;  %vm3290_vm9 = vcmp.le.f32.partialorder %v8795_v40, %v2656_v56  ;;  %v3432_v61 = vsel %vm3301_vm15, %v7035_v9, 8  ;;  %v8808_v56 = vld [vmem:[#allocation29_spill] sm:$0xff] }
 0x3e8   :  { %v3421_v51 = vsel %vm3290_vm9, %v7035_v9, 8  ;;  %vm3303_vm10 = vcmp.le.f32.partialorder %v8797_v28, %v2708_v23  ;;  %vm3292_vm11 = vcmp.le.f32.partialorder %v8798_v6, %v2664_v3  ;;  %vm3305_vm12 = vcmp.le.f32.partialorder %v8800_v46, %v2716_v41  ;;  %v8809_v23 = vld [vmem:[#allocation50_spill] sm:$0xff]  ;;  %v8811_v41 = vld [vmem:[#allocation52_spill] sm:$0xff] }
 0x3e9   :  { %v3434_v18 = vsel %vm3303_vm10, %v7035_v9, 8  ;;  %v3423_v19 = vsel %vm3292_vm11, %v7035_v9, 8  ;;  %vm3294_vm13 = vcmp.le.f32.partialorder %v8801_v37, %v2672_v53  ;;  %v2680_v2 = vrot.slane %v7024_v15, %v8802_v1  ;;  %v8810_v3 = vld [vmem:[#allocation30_spill] sm:$0xff]  ;;  %v8812_v53 = vld [vmem:[#allocation31_spill] sm:$0xff] }
 0x3ea   :  { %v3436_v12 = vsel %vm3305_vm12, %v7035_v9, 8  ;;  %v3425_v27 = vsel %vm3294_vm13, %v7035_v9, 8  ;;  %vm3307_vm14 = vcmp.le.f32.partialorder %v8803_v8, %v2724_v13  ;;  %vm3298_vm10 = vcmp.le.f32.partialorder %v8806_v25, %v2688_v62  ;;  %v8813_v37 = vld [vmem:[#allocation66_spill] sm:$0xff]  ;;  %v8814_v13 = vld [vmem:[#allocation45_spill] sm:$0xff] }
 0x3eb   :  { %3561 = vperm.xlu0 %5238, %v3424_v16   ;;  %vm3296_vm15 = vcmp.le.f32.partialorder %v8804_v31, %v2680_v2  ;;  %v2732_v16 = vrot.slane %v7002_v52, %v8785_v29  ;;  %v3438_v60 = vsel %vm3307_vm14, %v7035_v9, 8  ;;  %v3429_v48 = vsel %vm3298_vm10, %v7035_v9, 8  ;;  %v8815_v31 = vld [vmem:[#allocation54_spill] sm:$0xff] }
 0x3ec   :  { %v3427_v15 = vsel %vm3296_vm15, %v7035_v9, 8  ;;  %vm3311_vm11 = vcmp.le.f32.partialorder %v8807_v49, %v2740_v55  ;;  %vm3300_vm12 = vcmp.le.f32.partialorder %v8808_v56, %v2696_v47  ;;  %v8817_v55 = vld [vmem:[#allocation43_spill] sm:$0xff]  ;;  %v8818_v47 = vld [vmem:[#allocation49_spill] sm:$0xff] }
 0x3ed   :  { %v3442_v63 = vsel %vm3311_vm11, %v7035_v9, 8  ;;  %v3431_v40 = vsel %vm3300_vm12, %v7035_v9, 8 }
 0x3ef   :  { %3567 = vperm.xlu0 %5238, %v3426_v58   ;;  %v8805_v58 = vld [vmem:[#allocation60_spill] sm:$0xff] }
 0x3f0   :  { %vm3309_vm9 = vcmp.le.f32.partialorder %v8805_v58, %v2732_v16  ;;  %v8816_v16 = vld [vmem:[#allocation47_spill] sm:$0xff] }
 0x3f1   :  { %v3440_v21 = vsel %vm3309_vm9, %v7035_v9, 8 }
 0x3f3   :  { %3573 = vperm.xlu0 %5238, %v3428_v45   ;;  %v7102_v45 = vpop.xlane.xlu1 %2595 }
 0x3f4   :  { %v2764_v2 = vrot.slane %v7102_v45, %v8785_v29  ;;  %v2768_v62 = vrot.slane %v7102_v45, %v8799_v36 }
 0x3f6   :  { %vm3317_vm12 = vcmp.le.f32.partialorder %v8815_v31, %v2764_v2  ;;  %v8826_v2 = vld [vmem:[#allocation55_spill] sm:$0xff] }
 0x3f7   :  { %3579 = vperm.xlu0 %5238, %v3430_v10   ;;  %3549 = vperm.xlu1 %5237, %v3420_v43   ;;  %v2748_v10 = vrot.slane %v7102_v45, %v8789_v11  ;;  %v2704_v43 = vrot.slane %v7000_v5, %v8799_v36  ;;  %v3448_v58 = vsel %vm3317_vm12, %v7035_v9, 8 }
 0x3f9   :  { %vm3313_vm13 = vcmp.le.f32.partialorder %v8809_v23, %v2748_v10  ;;  %vm3302_vm14 = vcmp.le.f32.partialorder %v8810_v3, %v2704_v43  ;;  %v8819_v10 = vld [vmem:[#allocation13_spill] sm:$0xff]  ;;  %v8820_v43 = vld [vmem:[#allocation51_spill] sm:$0xff]  ;;  %v8821_v3 = vld [vmem:[#allocation64_spill] sm:$0xff] }
 0x3fa   :  { %v3444_v28 = vsel %vm3313_vm13, %v7035_v9, 8  ;;  %v3433_v6 = vsel %vm3302_vm14, %v7035_v9, 8  ;;  %vm3318_vm14 = vcmp.le.f32.partialorder %v8817_v55, %v2768_v62  ;;  %v8828_v62 = vld [vmem:[#allocation68_spill] sm:$0xff] }
 0x3fb   :  { %3585 = vperm.xlu0 %5238, %v3432_v61   ;;  %3552 = vperm.xlu1 %5237, %v3421_v51   ;;  %v2756_v61 = vrot.slane %v7102_v45, %v8783_v33  ;;  %v2712_v51 = vrot.slane %v7000_v5, %v8802_v1  ;;  %v3449_v49 = vsel %vm3318_vm14, %v7035_v9, 8 }
 0x3fd   :  { %vm3315_vm15 = vcmp.le.f32.partialorder %v8811_v41, %v2756_v61  ;;  %vm3304_vm9 = vcmp.le.f32.partialorder %v8812_v53, %v2712_v51  ;;  %v8822_v61 = vld [vmem:[#allocation39_spill] sm:$0xff]  ;;  %v8823_v53 = vld [vmem:[#allocation14_spill] sm:$0xff] }
 0x3fe   :  { %v3446_v46 = vsel %vm3315_vm15, %v7035_v9, 8  ;;  %v3435_v5 = vsel %vm3304_vm9, %v7035_v9, 8 }
 0x3ff   :  { %3591 = vperm.xlu0 %5238, %v3434_v18   ;;  %3558 = vperm.xlu1 %5237, %v3423_v19   ;;  %v2780_v18 = vrot.slane %v7004_v26, %v8789_v11  ;;  %v2720_v19 = vrot.slane %v7002_v52, %v8793_v14 }
 0x401   :  { %vm3321_vm10 = vcmp.le.f32.partialorder %v8813_v37, %v2780_v18  ;;  %vm3306_vm11 = vcmp.le.f32.partialorder %v8814_v13, %v2720_v19  ;;  %v8824_v18 = vld [vmem:[#allocation41_spill] sm:$0xff]  ;;  %v2800_v19 = vrot.slane %v7004_v26, %v8799_v36  ;;  %v8825_v13 = vld [vmem:[#allocation59_spill] sm:$0xff] }
 0x402   :  { %v3437_v8 = vsel %vm3306_vm11, %v7035_v9, 8 }
 0x403   :  { %3597 = vperm.xlu0 %5238, %v3436_v12   ;;  %3564 = vperm.xlu1 %5237, %v3425_v27   ;;  %v2728_v12 = vrot.slane %v7002_v52, %v8796_v38  ;;  %v3452_v27 = vsel %vm3321_vm10, %v7035_v9, 8 }
 0x405   :  { %vm3308_vm13 = vcmp.le.f32.partialorder %v8816_v16, %v2728_v12  ;;  %v2844_v12 = vrot.slane %v7006_v54, %v8789_v11  ;;  %v8827_v16 = vld [vmem:[#allocation23_spill] sm:$0xff] }
 0x406   :  { %v3439_v25 = vsel %vm3308_vm13, %v7035_v9, 8 }
 0x407   :  { %3603 = vperm.xlu0 %5238, %v3438_v60   ;;  %3570 = vperm.xlu1 %5237, %v3427_v15   ;;  %v2736_v60 = vrot.slane %v7002_v52, %v8799_v36  ;;  %v7144_v15 = vpop.xlane.xlu1 %2601 }
 0x408   :  { %v2820_v51 = vrot.slane %v7144_v15, %v8783_v33 }
 0x409   :  { %vm3310_vm15 = vcmp.le.f32.partialorder %v8818_v47, %v2736_v60  ;;  %v2804_v60 = vrot.slane %v7004_v26, %v8787_v57  ;;  %v8829_v47 = vld [vmem:[#allocation18_spill] sm:$0xff] }
 0x40a   :  { %v3441_v56 = vsel %vm3310_vm15, %v7035_v9, 8  ;;  %vm3331_vm13 = vcmp.le.f32.partialorder %v8823_v53, %v2820_v51  ;;  %vm3326_vm15 = vcmp.le.f32.partialorder %v8825_v13, %v2800_v19  ;;  %v8833_v51 = vld [vmem:[#allocation67_spill] sm:$0xff] }
 0x40b   :  { %3609 = vperm.xlu0 %5238, %v3440_v21   ;;  %3576 = vperm.xlu1 %5237, %v3429_v48   ;;  %v2812_v21 = vrot.slane %v7144_v15, %v8789_v11  ;;  %v2744_v48 = vrot.slane %v7002_v52, %v8802_v1  ;;  %v8835_v19 = vld [vmem:[#allocation19_spill] sm:$0xff] }
 0x40d   :  { %vm3329_vm9 = vcmp.le.f32.partialorder %v8819_v10, %v2812_v21  ;;  %vm3312_vm10 = vcmp.le.f32.partialorder %v8820_v43, %v2744_v48  ;;  %v8830_v21 = vld [vmem:[#allocation57_spill] sm:$0xff]  ;;  %v2852_v48 = vrot.slane %v7006_v54, %v8783_v33  ;;  %v8831_v43 = vld [vmem:[#allocation24_spill] sm:$0xff] }
 0x40e   :  { %v3460_v23 = vsel %vm3329_vm9, %v7035_v9, 8  ;;  %v3443_v52 = vsel %vm3312_vm10, %v7035_v9, 8  ;;  %vm3337_vm10 = vcmp.le.f32.partialorder %v8827_v16, %v2844_v12  ;;  %v8838_v12 = vld [vmem:[#allocation65_spill] sm:$0xff] }
 0x40f   :  { %3615 = vperm.xlu0 %5238, %v3442_v63   ;;  %3582 = vperm.xlu1 %5237, %v3431_v40   ;;  %v2772_v63 = vrot.slane %v7102_v45, %v8787_v57  ;;  %v2752_v40 = vrot.slane %v7102_v45, %v8793_v14 }
 0x411   :  { %vm3319_vm11 = vcmp.le.f32.partialorder %v8821_v3, %v2772_v63  ;;  %vm3314_vm12 = vcmp.le.f32.partialorder %v8822_v61, %v2752_v40  ;;  %v8832_v63 = vld [vmem:[#allocation63_spill] sm:$0xff]  ;;  %v2832_v40 = vrot.slane %v7144_v15, %v8799_v36 }
 0x412   :  { %v3445_v41 = vsel %vm3314_vm12, %v7035_v9, 8  ;;  %vm3327_vm12 = vcmp.le.f32.partialorder %v8829_v47, %v2804_v60  ;;  %v8840_v60 = vld [vmem:[#allocation71_spill] sm:$0xff] }
 0x413   :  { %3621 = vperm.xlu0 %5238, %v3444_v28   ;;  %3588 = vperm.xlu1 %5237, %v3433_v6   ;;  %v2760_v28 = vrot.slane %v7102_v45, %v8796_v38  ;;  %v3450_v6 = vsel %vm3319_vm11, %v7035_v9, 8 }
 0x415   :  { %vm3316_vm14 = vcmp.le.f32.partialorder %v8824_v18, %v2760_v28  ;;  %v8834_v28 = vld [vmem:[#allocation17_spill] sm:$0xff] }
 0x416   :  { %v3447_v37 = vsel %vm3316_vm14, %v7035_v9, 8  ;;  %vm3339_vm14 = vcmp.le.f32.partialorder %v8831_v43, %v2852_v48  ;;  %v8842_v48 = vld [vmem:[#allocation15_spill] sm:$0xff] }
 0x417   :  { %3627 = vperm.xlu0 %5238, %v3446_v46   ;;  %3594 = vperm.xlu1 %5237, %v3435_v5   ;;  %v2784_v46 = vrot.slane %v7004_v26, %v8793_v14  ;;  %v3462_v5 = vsel %vm3331_vm13, %v7035_v9, 8  ;;  %v3470_v3 = vsel %vm3339_vm14, %v7035_v9, 8 }
 0x419   :  { %vm3322_vm9 = vcmp.le.f32.partialorder %v8826_v2, %v2784_v46  ;;  %v8836_v46 = vld [vmem:[#allocation53_spill] sm:$0xff]  ;;  %v8837_v2 = vld [vmem:[#allocation16_spill] sm:$0xff] }
 0x41a   :  { %v3453_v31 = vsel %vm3322_vm9, %v7035_v9, 8  ;;  %vm3334_vm9 = vcmp.le.f32.partialorder %v8833_v51, %v2832_v40  ;;  %v8844_v40 = vld [vmem:[#allocation61_spill] sm:$0xff] }
 0x41b   :  { %3645 = vperm.xlu0 %5238, %v3452_v27   ;;  %3600 = vperm.xlu1 %5237, %v3437_v8   ;;  %v2788_v27 = vrot.slane %v7004_v26, %v8783_v33  ;;  %v3457_v8 = vsel %vm3326_vm15, %v7035_v9, 8  ;;  %v3465_v53 = vsel %vm3334_vm9, %v7035_v9, 8  ;;  %v8845_v51 = vld [vmem:[#allocation85_spill] sm:$0xff] }
 0x41d   :  { %vm3323_vm11 = vcmp.le.f32.partialorder %v8828_v62, %v2788_v27  ;;  %v8839_v62 = vld [vmem:[#allocation20_spill] sm:$0xff] }
 0x41e   :  { %v3454_v55 = vsel %vm3323_vm11, %v7035_v9, 8 }
 0x41f   :  { %3633 = vperm.xlu0 %5238, %v3448_v58   ;;  %3606 = vperm.xlu1 %5237, %v3439_v25   ;;  %v2792_v58 = vrot.slane %v7004_v26, %v8796_v38  ;;  %v3468_v25 = vsel %vm3337_vm10, %v7035_v9, 8 }
 0x421   :  { %vm3324_vm13 = vcmp.le.f32.partialorder %v8830_v21, %v2792_v58  ;;  %v2864_v58 = vrot.slane %v7006_v54, %v8799_v36  ;;  %v8841_v21 = vld [vmem:[#allocation75_spill] sm:$0xff] }
 0x422   :  { %v3455_v10 = vsel %vm3324_vm13, %v7035_v9, 8 }
 0x423   :  { %3636 = vperm.xlu0 %5238, %v3449_v49   ;;  %3612 = vperm.xlu1 %5237, %v3441_v56   ;;  %v2816_v49 = vrot.slane %v7144_v15, %v8793_v14  ;;  %v3458_v56 = vsel %vm3327_vm12, %v7035_v9, 8 }
 0x425   :  { %vm3330_vm15 = vcmp.le.f32.partialorder %v8832_v63, %v2816_v49  ;;  %v2908_v49 = vrot.slane %v7008_v32, %v8789_v11  ;;  %v8843_v63 = vld [vmem:[#allocation94_spill] sm:$0xff] }
 0x426   :  { %v3461_v61 = vsel %vm3330_vm15, %v7035_v9, 8 }
 0x427   :  { %3669 = vperm.xlu0 %5238, %v3460_v23   ;;  %3618 = vperm.xlu1 %5237, %v3443_v52   ;;  %v2796_v23 = vrot.slane %v7004_v26, %v8785_v29  ;;  %v7210_v52 = vpop.xlane.xlu1 %2607 }
 0x428   :  { %v2884_v27 = vrot.slane %v7210_v52, %v8783_v33 }
 0x429   :  { %vm3325_vm10 = vcmp.le.f32.partialorder %v8834_v28, %v2796_v23  ;;  %v2868_v23 = vrot.slane %v7006_v54, %v8787_v57  ;;  %v8846_v28 = vld [vmem:[#allocation73_spill] sm:$0xff] }
 0x42a   :  { %v3456_v18 = vsel %vm3325_vm10, %v7035_v9, 8  ;;  %vm3347_vm15 = vcmp.le.f32.partialorder %v8839_v62, %v2884_v27  ;;  %vm3342_vm10 = vcmp.le.f32.partialorder %v8841_v21, %v2864_v58  ;;  %v8850_v27 = vld [vmem:[#allocation26_spill] sm:$0xff] }
 0x42b   :  { %3639 = vperm.xlu0 %5238, %v3450_v6   ;;  %3624 = vperm.xlu1 %5237, %v3445_v41   ;;  %v2876_v6 = vrot.slane %v7210_v52, %v8789_v11  ;;  %v2776_v41 = vrot.slane %v7102_v45, %v8802_v1  ;;  %v8851_v58 = vld [vmem:[#allocation102_spill] sm:$0xff] }
 0x42d   :  { %vm3345_vm11 = vcmp.le.f32.partialorder %v8835_v19, %v2876_v6  ;;  %vm3320_vm12 = vcmp.le.f32.partialorder %v8836_v46, %v2776_v41  ;;  %v2916_v6 = vrot.slane %v7008_v32, %v8783_v33  ;;  %v2880_v41 = vrot.slane %v7210_v52, %v8793_v14  ;;  %v8847_v19 = vld [vmem:[#allocation96_spill] sm:$0xff]  ;;  %v8848_v46 = vld [vmem:[#allocation25_spill] sm:$0xff] }
 0x42e   :  { %v3476_v13 = vsel %vm3345_vm11, %v7035_v9, 8  ;;  %v3451_v45 = vsel %vm3320_vm12, %v7035_v9, 8  ;;  %vm3353_vm12 = vcmp.le.f32.partialorder %v8843_v63, %v2908_v49  ;;  %v2912_v63 = vrot.slane %v7008_v32, %v8793_v14 }
 0x42f   :  { %3675 = vperm.xlu0 %5238, %v3462_v5   ;;  %3630 = vperm.xlu1 %5237, %v3447_v37   ;;  %v2836_v5 = vrot.slane %v7144_v15, %v8787_v57  ;;  %v2824_v37 = vrot.slane %v7144_v15, %v8796_v38 }
 0x431   :  { %vm3335_vm13 = vcmp.le.f32.partialorder %v8837_v2, %v2836_v5  ;;  %vm3332_vm14 = vcmp.le.f32.partialorder %v8838_v12, %v2824_v37  ;;  %v2896_v5 = vrot.slane %v7210_v52, %v8799_v36  ;;  %v2860_v37 = vrot.slane %v7006_v54, %v8785_v29  ;;  %v8849_v12 = vld [vmem:[#allocation80_spill] sm:$0xff] }
 0x432   :  { %v3463_v16 = vsel %vm3332_vm14, %v7035_v9, 8  ;;  %vm3343_vm14 = vcmp.le.f32.partialorder %v8845_v51, %v2868_v23  ;;  %v8856_v51 = vld [vmem:[#allocation84_spill] sm:$0xff] }
 0x433   :  { %3660 = vperm.xlu0 %5238, %v3457_v8   ;;  %3648 = vperm.xlu1 %5237, %v3453_v31   ;;  %v2848_v8 = vrot.slane %v7006_v54, %v8793_v14  ;;  %v3466_v31 = vsel %vm3335_vm13, %v7035_v9, 8 }
 0x435   :  { %vm3338_vm9 = vcmp.le.f32.partialorder %v8840_v60, %v2848_v8 }
 0x436   :  { %v3469_v47 = vsel %vm3338_vm9, %v7035_v9, 8  ;;  %vm3355_vm9 = vcmp.le.f32.partialorder %v8847_v19, %v2916_v6  ;;  %v2892_v6 = vrot.slane %v7210_v52, %v8785_v29 }
 0x437   :  { %3693 = vperm.xlu0 %5238, %v3468_v25   ;;  %3651 = vperm.xlu1 %5237, %v3454_v55   ;;  %v2828_v25 = vrot.slane %v7144_v15, %v8785_v29  ;;  %v3478_v55 = vsel %vm3347_vm15, %v7035_v9, 8 }
 0x439   :  { %vm3333_vm11 = vcmp.le.f32.partialorder %v8842_v48, %v2828_v25  ;;  %v8852_v25 = vld [vmem:[#allocation69_spill] sm:$0xff] }
 0x43a   :  { %v3464_v43 = vsel %vm3333_vm11, %v7035_v9, 8  ;;  %vm3350_vm11 = vcmp.le.f32.partialorder %v8849_v12, %v2896_v5  ;;  %v8859_v5 = vld [vmem:[#allocation21_spill] sm:$0xff] }
 0x43b   :  { %3663 = vperm.xlu0 %5238, %v3458_v56   ;;  %3654 = vperm.xlu1 %5237, %v3455_v10   ;;  %v2808_v56 = vrot.slane %v7004_v26, %v8802_v1  ;;  %v3473_v10 = vsel %vm3342_vm10, %v7035_v9, 8  ;;  %vm3346_vm10 = vcmp.le.f32.partialorder %v8848_v46, %v2880_v41  ;;  %v3481_v62 = vsel %vm3350_vm11, %v7035_v9, 8  ;;  %v8858_v46 = vld [vmem:[#allocation88_spill] sm:$0xff] }
 0x43c   :  { %v3477_v2 = vsel %vm3346_vm10, %v7035_v9, 8  ;;  %vm3354_vm11 = vcmp.le.f32.partialorder %v8856_v51, %v2912_v63  ;;  %v8868_v51 = vld [vmem:[#allocation91_spill] sm:$0xff] }
 0x43d   :  { %vm3328_vm13 = vcmp.le.f32.partialorder %v8844_v40, %v2808_v56  ;;  %v8853_v56 = vld [vmem:[#allocation22_spill] sm:$0xff] }
 0x43e   :  { %v3459_v26 = vsel %vm3328_vm13, %v7035_v9, 8 }
 0x43f   :  { %3699 = vperm.xlu0 %5238, %v3470_v3   ;;  %3672 = vperm.xlu1 %5237, %v3461_v61   ;;  %v2856_v3 = vrot.slane %v7006_v54, %v8796_v38  ;;  %v3484_v61 = vsel %vm3353_vm12, %v7035_v9, 8  ;;  %vm3341_vm12 = vcmp.le.f32.partialorder %v8850_v27, %v2860_v37  ;;  %v2972_v37 = vrot.slane %v7010_v44, %v8789_v11 }
 0x440   :  { %v3472_v60 = vsel %vm3341_vm12, %v7035_v9, 8 }
 0x441   :  { %vm3340_vm15 = vcmp.le.f32.partialorder %v8846_v28, %v2856_v3  ;;  %v2928_v28 = vrot.slane %v7008_v32, %v8799_v36 }
 0x443   :  { %3684 = vperm.xlu0 %5238, %v3465_v53   ;;  %3657 = vperm.xlu1 %5237, %v3456_v18   ;;  %v3474_v53 = vsel %vm3343_vm14, %v7035_v9, 8  ;;  %v3471_v18 = vsel %vm3340_vm15, %v7035_v9, 8  ;;  %vm3358_vm12 = vcmp.le.f32.partialorder %v8858_v46, %v2928_v28 }
 0x444   :  { %v3489_v12 = vsel %vm3358_vm12, %v7035_v9, 8 }
 0x447   :  { %3717 = vperm.xlu0 %5238, %v3476_v13   ;;  %3642 = vperm.xlu1 %5237, %v3451_v45   ;;  %v7276_v13 = vpop.xlane.xlu1 %2613  ;;  %v3486_v45 = vsel %vm3355_vm9, %v7035_v9, 8 }
 0x448   :  { %v2940_v8 = vrot.slane %v7276_v13, %v8789_v11  ;;  %v2960_v28 = vrot.slane %v7276_v13, %v8799_v36 }
 0x44a   :  { %vm3361_vm13 = vcmp.le.f32.partialorder %v8851_v58, %v2940_v8 }
 0x44b   :  { %3687 = vperm.xlu0 %5238, %v3466_v31   ;;  %3678 = vperm.xlu1 %5237, %v3463_v16   ;;  %v2840_v31 = vrot.slane %v7144_v15, %v8802_v1  ;;  %v3492_v15 = vsel %vm3361_vm13, %v7035_v9, 8  ;;  %v7300_v49 = vpop.xlane.xlu1 %2619  ;;  %vm3349_vm13 = vcmp.le.f32.partialorder %v8859_v5, %v2892_v6  ;;  %v2924_v6 = vrot.slane %v7008_v32, %v8785_v29 }
 0x44c   :  { %v3480_v27 = vsel %vm3349_vm13, %v7035_v9, 8 }
 0x44d   :  { %vm3336_vm14 = vcmp.le.f32.partialorder %v8852_v25, %v2840_v31  ;;  %v8861_v31 = vld [vmem:[#allocation109_spill] sm:$0xff] }
 0x44e   :  { %v3467_v48 = vsel %vm3336_vm14, %v7035_v9, 8  ;;  %vm3369_vm14 = vcmp.le.f32.partialorder %v8861_v31, %v2972_v37  ;;  %v8869_v37 = vld [vmem:[#allocation95_spill] sm:$0xff] }
 0x44f   :  { %3723 = vperm.xlu0 %5238, %v3478_v55   ;;  %3696 = vperm.xlu1 %5237, %v3469_v47   ;;  %v2900_v55 = vrot.slane %v7210_v52, %v8787_v57  ;;  %v2888_v47 = vrot.slane %v7210_v52, %v8796_v38  ;;  %v3500_v25 = vsel %vm3369_vm14, %v7035_v9, 8  ;;  %vm3366_vm13 = vcmp.le.f32.partialorder %v8869_v37, %v2960_v28 }
 0x450   :  { %v2976_v28 = vrot.slane %v7010_v44, %v8793_v14 }
 0x451   :  { %vm3351_vm15 = vcmp.le.f32.partialorder %v8853_v56, %v2900_v55  ;;  %v2980_v56 = vrot.slane %v7010_v44, %v8783_v33 }
 0x452   :  { %v3482_v23 = vsel %vm3351_vm15, %v7035_v9, 8 }
 0x453   :  { %3708 = vperm.xlu0 %5238, %v3473_v10   ;;  %3681 = vperm.xlu1 %5237, %v3464_v43   ;;  %v8854_v10 = vld [vmem:[#allocation79_spill] sm:$0xff]  ;;  %v2948_v43 = vrot.slane %v7276_v13, %v8783_v33 }
 0x454   :  { %vm3348_vm9 = vcmp.le.f32.partialorder %v8854_v10, %v2888_v47  ;;  %v2944_v10 = vrot.slane %v7276_v13, %v8793_v14 }
 0x455   :  { %v3479_v3 = vsel %vm3348_vm9, %v7035_v9, 8 }
 0x456   :  { %vm3362_vm12 = vcmp.le.f32.partialorder %v8868_v51, %v2944_v10  ;;  %v3012_v51 = vrot.slane %v7300_v49, %v8783_v33 }
 0x457   :  { %3741 = vperm.xlu0 %5238, %v3484_v61   ;;  %3666 = vperm.xlu1 %5237, %v3459_v26   ;;  %v7312_v61 = vpop.xlane.xlu1 %2625  ;;  %v8855_v26 = vld [vmem:[#allocation27_spill] sm:$0xff]  ;;  %v3493_v46 = vsel %vm3362_vm12, %v7035_v9, 8 }
 0x458   :  { %vm3363_vm10 = vcmp.le.f32.partialorder %v8855_v26, %v2948_v43  ;;  %v8867_v26 = vld [vmem:[#allocation111_spill] sm:$0xff] }
 0x45b   :  { %3711 = vperm.xlu0 %5238, %v3474_v53   ;;  %3702 = vperm.xlu1 %5237, %v3471_v18   ;;  %v3494_v53 = vsel %vm3363_vm10, %v7035_v9, 8  ;;  %v3485_v18 = vsel %vm3354_vm11, %v7035_v9, 8  ;;  %vm3371_vm11 = vcmp.le.f32.partialorder %v8867_v26, %v2980_v56  ;;  %v8875_v26 = vld [vmem:[#allocation93_spill] sm:$0xff] }
 0x45f   :  { %3747 = vperm.xlu0 %5238, %v3486_v45   ;;  %3720 = vperm.xlu1 %5237, %v3477_v2   ;;  %v2872_v45 = vrot.slane %v7006_v54, %v8802_v1  ;;  %v2920_v54 = vrot.slane %v7008_v32, %v8796_v38 }
 0x462   :  { %v7286_v16 = vpop.permute.xlu0 %3555 }
 0x463   :  { %3732 = vperm.xlu0 %5238, %v3481_v62   ;;  %3705 = vperm.xlu1 %5237, %v3472_v60   ;;  %v8862_v62 = vld [vmem:[#allocation76_spill] sm:$0xff]  ;;  %v2932_v60 = vrot.slane %v7008_v32, %v8787_v57 }
 0x464   :  { %vm3344_vm15 = vcmp.le.f32.partialorder %v8862_v62, %v2872_v45  ;;  %v8870_v45 = vld [vmem:[#allocation98_spill] sm:$0xff]  ;;  %v3497_v62 = vsel %vm3366_vm13, %v7035_v9, 8 }
 0x465   :  { %v3475_v55 = vsel %vm3344_vm15, %v7035_v9, 8  ;;  %vm3357_vm14 = vcmp.le.f32.partialorder %v8870_v45, %v2924_v6  ;;  %v8877_v45 = vld [vmem:[#allocation119_spill] sm:$0xff] }
 0x466   :  { %v7296_v21 = vpop.permute.xlu0 %3561  ;;  %vm3379_vm12 = vcmp.le.f32.partialorder %v8877_v45, %v3012_v51  ;;  %v8884_v45 = vld [vmem:[#allocation90_spill] sm:$0xff] }
 0x467   :  { %3765 = vperm.xlu0 %5238, %v3492_v15   ;;  %3690 = vperm.xlu1 %5237, %v3467_v48   ;;  %v8864_v15 = vld [vmem:[#allocation100_spill] sm:$0xff]  ;;  %v8865_v48 = vld [vmem:[#allocation86_spill] sm:$0xff] }
 0x468   :  { %vm3359_vm9 = vcmp.le.f32.partialorder %v8864_v15, %v2932_v60  ;;  %vm3356_vm10 = vcmp.le.f32.partialorder %v8865_v48, %v2920_v54  ;;  %v3488_v60 = vsel %vm3357_vm14, %v7035_v9, 8  ;;  %v2964_v15 = vrot.slane %v7276_v13, %v8787_v57 }
 0x469   :  { %v3490_v63 = vsel %vm3359_vm9, %v7035_v9, 8 }
 0x46a   :  { %v7308_v40 = vpop.permute.xlu0 %3567 }
 0x46b   :  { %3735 = vperm.xlu0 %5238, %v3482_v23   ;;  %3726 = vperm.xlu1 %5237, %v3479_v3   ;;  %v3487_v23 = vsel %vm3356_vm10, %v7035_v9, 8 }
 0x46e   :  { %v7320_v41 = vpop.permute.xlu0 %3573 }
 0x46f   :  { %8857 = vst [vmem:[#allocation70_spill] sm:$0xff] %v7320_v41  ;;  %v7324_v19 = vpop.xlane.xlu1 %2631  ;;  %3771 = vperm.xlu0 %5238, %v3494_v53   ;;  %3744 = vperm.xlu1 %5237, %v3485_v18   ;;  %v3502_v18 = vsel %vm3371_vm11, %v7035_v9, 8 }
 0x472   :  { %v7332_v2 = vpop.permute.xlu0 %3579 }
 0x473   :  { %8860 = vst [vmem:[#allocation72_spill] sm:$0xff] %v7332_v2  ;;  %3756 = vperm.xlu0 %5238, %v3489_v12   ;;  %3729 = vperm.xlu1 %5237, %v3480_v27   ;;  %v7336_v8 = vpop.permute.xlu1 %3549  ;;  %v3004_v12 = vrot.slane %v7300_v49, %v8789_v11  ;;  %v2904_v27 = vrot.slane %v7210_v52, %v8802_v1 }
 0x474   :  { %v2952_v52 = vrot.slane %v7276_v13, %v8796_v38 }
 0x476   :  { %v7344_v58 = vpop.permute.xlu0 %3585  ;;  %vm3364_vm11 = vcmp.le.f32.partialorder %v8875_v26, %v2952_v52  ;;  %v8880_v52 = vld [vmem:[#allocation103_spill] sm:$0xff] }
 0x477   :  { %8863 = vst [vmem:[#allocation74_spill] sm:$0xff] %v7344_v58  ;;  %3789 = vperm.xlu0 %5238, %v3500_v25   ;;  %3714 = vperm.xlu1 %5237, %v3475_v55   ;;  %v7348_v47 = vpop.permute.xlu1 %3552  ;;  %v8871_v25 = vld [vmem:[#allocation117_spill] sm:$0xff]  ;;  %v8872_v55 = vld [vmem:[#allocation82_spill] sm:$0xff] }
 0x478   :  { %vm3377_vm15 = vcmp.le.f32.partialorder %v8871_v25, %v3004_v12  ;;  %vm3352_vm9 = vcmp.le.f32.partialorder %v8872_v55, %v2904_v27  ;;  %v8878_v12 = vld [vmem:[#allocation99_spill] sm:$0xff]  ;;  %v2992_v27 = vrot.slane %v7010_v44, %v8799_v36  ;;  %v3510_v25 = vsel %vm3379_vm12, %v7035_v9, 8 }
 0x479   :  { %v3508_v56 = vsel %vm3377_vm15, %v7035_v9, 8  ;;  %v3483_v10 = vsel %vm3352_vm9, %v7035_v9, 8  ;;  %vm3370_vm13 = vcmp.le.f32.partialorder %v8878_v12, %v2976_v28  ;;  %v2996_v12 = vrot.slane %v7010_v44, %v8787_v57 }
 0x47a   :  { %v7356_v43 = vpop.permute.xlu0 %3591  ;;  %v3501_v55 = vsel %vm3370_vm13, %v7035_v9, 8  ;;  %vm3374_vm14 = vcmp.le.f32.partialorder %v8880_v52, %v2992_v27  ;;  %v8886_v52 = vld [vmem:[#allocation115_spill] sm:$0xff] }
 0x47b   :  { %8866 = vst [vmem:[#allocation77_spill] sm:$0xff] %v7356_v43  ;;  %3759 = vperm.xlu0 %5238, %v3490_v63   ;;  %3750 = vperm.xlu1 %5237, %v3487_v23   ;;  %v7360_v3 = vpop.permute.xlu1 %3558  ;;  %v8874_v23 = vld [vmem:[#allocation107_spill] sm:$0xff]  ;;  %v3505_v51 = vsel %vm3374_vm14, %v7035_v9, 8 }
 0x47c   :  { %vm3367_vm10 = vcmp.le.f32.partialorder %v8874_v23, %v2964_v15  ;;  %v2936_v23 = vrot.slane %v7008_v32, %v8802_v1  ;;  %v2984_v32 = vrot.slane %v7010_v44, %v8796_v38 }
 0x47e   :  { %v7368_v53 = vpop.permute.xlu0 %3597 }
 0x47f   :  { %3795 = vperm.xlu0 %5238, %v3502_v18   ;;  %3768 = vperm.xlu1 %5237, %v3493_v46   ;;  %v7372_v5 = vpop.permute.xlu1 %3564  ;;  %v3498_v18 = vsel %vm3367_vm10, %v7035_v9, 8  ;;  %v3495_v46 = vsel %vm3364_vm11, %v7035_v9, 8  ;;  %vm3360_vm10 = vcmp.le.f32.partialorder %v8884_v45, %v2936_v23  ;;  %vm3375_vm11 = vcmp.le.f32.partialorder %v8886_v52, %v2996_v12  ;;  %v8889_v12 = vld [vmem:[#allocation106_spill] sm:$0xff] }
 0x480   :  { %v3008_v23 = vrot.slane %v7300_v49, %v8793_v14 }
 0x482   :  { %v7380_v31 = vpop.permute.xlu0 %3603  ;;  %vm3378_vm14 = vcmp.le.f32.partialorder %v8889_v12, %v3008_v23  ;;  %v3068_v23 = vrot.slane %v7312_v61, %v8789_v11 }
 0x483   :  { %3780 = vperm.xlu0 %5238, %v3497_v62   ;;  %3753 = vperm.xlu1 %5237, %v3488_v60   ;;  %v7384_v54 = vpop.permute.xlu1 %3570  ;;  %v2956_v62 = vrot.slane %v7276_v13, %v8785_v29  ;;  %v3509_v50 = vsel %vm3378_vm14, %v7035_v9, 8 }
 0x486   :  { %v7392_v48 = vpop.permute.xlu0 %3609 }
 0x487   :  { %3813 = vperm.xlu0 %5238, %v3508_v56   ;;  %3738 = vperm.xlu1 %5237, %v3483_v10   ;;  %v7396_v63 = vpop.permute.xlu1 %3576  ;;  %v8881_v56 = vld [vmem:[#allocation105_spill] sm:$0xff]  ;;  %v3036_v10 = vrot.slane %v7012_v7, %v8789_v11 }
 0x488   :  { %8873 = vst [vmem:[#allocation78_spill] sm:$0xff] %v7396_v63  ;;  %vm3365_vm15 = vcmp.le.f32.partialorder %v8881_v56, %v2956_v62  ;;  %v8887_v56 = vld [vmem:[#allocation101_spill] sm:$0xff] }
 0x489   :  { %v3496_v28 = vsel %vm3365_vm15, %v7035_v9, 8  ;;  %vm3372_vm12 = vcmp.le.f32.partialorder %v8887_v56, %v2984_v32  ;;  %v3024_v32 = vrot.slane %v7300_v49, %v8799_v36 }
 0x48a   :  { %v7404_v6 = vpop.permute.xlu0 %3615 }
 0x48b   :  { %3783 = vperm.xlu0 %5238, %v3498_v18   ;;  %3774 = vperm.xlu1 %5237, %v3495_v46   ;;  %v7408_v37 = vpop.permute.xlu1 %3582  ;;  %v8883_v46 = vld [vmem:[#allocation126_spill] sm:$0xff] }
 0x48c   :  { %8876 = vst [vmem:[#allocation81_spill] sm:$0xff] %v7408_v37  ;;  %vm3385_vm9 = vcmp.le.f32.partialorder %v8883_v46, %v3036_v10  ;;  %v3044_v10 = vrot.slane %v7012_v7, %v8783_v33  ;;  %v3503_v46 = vsel %vm3372_vm12, %v7035_v9, 8 }
 0x48d   :  { %v3516_v62 = vsel %vm3385_vm9, %v7035_v9, 8 }
 0x48e   :  { %v7416_v60 = vpop.permute.xlu0 %3621 }
 0x48f   :  { %3819 = vperm.xlu0 %5238, %v3510_v25   ;;  %3792 = vperm.xlu1 %5237, %v3501_v55   ;;  %v7420_v15 = vpop.permute.xlu1 %3588  ;;  %v3491_v25 = vsel %vm3360_vm10, %v7035_v9, 8 }
 0x490   :  { %8879 = vst [vmem:[#allocation125_spill] sm:$0xff] %v7420_v15 }
 0x492   :  { %v7428_v26 = vpop.permute.xlu0 %3627 }
 0x493   :  { %3804 = vperm.xlu0 %5238, %v3505_v51   ;;  %3777 = vperm.xlu1 %5237, %v3496_v28   ;;  %v7432_v18 = vpop.permute.xlu1 %3594  ;;  %v3506_v28 = vsel %vm3375_vm11, %v7035_v9, 8 }
 0x494   :  { %8882 = vst [vmem:[#allocation141_spill] sm:$0xff] %v7432_v18 }
 0x496   :  { %v7440_v27 = vpop.permute.xlu0 %3645 }
 0x497   :  { %8885 = vst [vmem:[#allocation128_spill] sm:$0xff] %v7440_v27  ;;  %3837 = vperm.xlu0 %5238, %v3516_v62   ;;  %3762 = vperm.xlu1 %5237, %v3491_v25   ;;  %v7444_v55 = vpop.permute.xlu1 %3600  ;;  %v8888_v62 = vld [vmem:[#allocation129_spill] sm:$0xff]  ;;  %v2988_v25 = vrot.slane %v7010_v44, %v8785_v29 }
 0x498   :  { %vm3387_vm13 = vcmp.le.f32.partialorder %v8888_v62, %v3044_v10  ;;  %v8891_v10 = vld [vmem:[#allocation113_spill] sm:$0xff]  ;;  %v2968_v62 = vrot.slane %v7276_v13, %v8802_v1  ;;  %v3016_v13 = vrot.slane %v7300_v49, %v8796_v38 }
 0x499   :  { %v3518_v56 = vsel %vm3387_vm13, %v7035_v9, 8  ;;  %vm3373_vm9 = vcmp.le.f32.partialorder %v8891_v10, %v2988_v25  ;;  %v3028_v25 = vrot.slane %v7300_v49, %v8787_v57 }
 0x49a   :  { %v7452_v51 = vpop.permute.xlu0 %3633  ;;  %v3504_v43 = vsel %vm3373_vm9, %v7035_v9, 8 }
 0x49b   :  { %3807 = vperm.xlu0 %5238, %v3506_v28   ;;  %3798 = vperm.xlu1 %5237, %v3503_v46   ;;  %v7456_v45 = vpop.permute.xlu1 %3606  ;;  %v8890_v46 = vld [vmem:[#allocation110_spill] sm:$0xff] }
 0x49c   :  { %vm3382_vm15 = vcmp.le.f32.partialorder %v8890_v46, %v3024_v32  ;;  %v8893_v32 = vld [vmem:[#allocation97_spill] sm:$0xff] }
 0x49d   :  { %v3513_v18 = vsel %vm3382_vm15, %v7035_v9, 8  ;;  %vm3368_vm11 = vcmp.le.f32.partialorder %v8893_v32, %v2968_v62  ;;  %v3076_v62 = vrot.slane %v7312_v61, %v8783_v33 }
 0x49e   :  { %v7464_v52 = vpop.permute.xlu0 %3636  ;;  %v3499_v58 = vsel %vm3368_vm11, %v7035_v9, 8 }
 0x49f   :  { %3843 = vperm.xlu0 %5238, %v3518_v56   ;;  %3816 = vperm.xlu1 %5237, %v3509_v50   ;;  %v7468_v28 = vpop.permute.xlu1 %3612  ;;  %v8892_v56 = vld [vmem:[#allocation135_spill] sm:$0xff] }
 0x4a0   :  { %vm3393_vm10 = vcmp.le.f32.partialorder %v8892_v56, %v3068_v23  ;;  %v8895_v23 = vld [vmem:[#allocation108_spill] sm:$0xff]  ;;  %v3040_v56 = vrot.slane %v7012_v7, %v8793_v14 }
 0x4a1   :  { %v3524_v10 = vsel %vm3393_vm10, %v7035_v9, 8  ;;  %vm3380_vm13 = vcmp.le.f32.partialorder %v8895_v23, %v3016_v13  ;;  %v3056_v13 = vrot.slane %v7012_v7, %v8799_v36 }
 0x4a2   :  { %v7476_v12 = vpop.permute.xlu0 %3669  ;;  %v3511_v15 = vsel %vm3380_vm13, %v7035_v9, 8 }
 0x4a3   :  { %3828 = vperm.xlu0 %5238, %v3513_v18   ;;  %3801 = vperm.xlu1 %5237, %v3504_v43   ;;  %v7480_v50 = vpop.permute.xlu1 %3618  ;;  %v8894_v18 = vld [vmem:[#allocation123_spill] sm:$0xff] }
 0x4a4   :  { %vm3383_vm12 = vcmp.le.f32.partialorder %v8894_v18, %v3028_v25  ;;  %v8897_v25 = vld [vmem:[#allocation114_spill] sm:$0xff]  ;;  %v3020_v18 = vrot.slane %v7300_v49, %v8785_v29 }
 0x4a5   :  { %v3514_v27 = vsel %vm3383_vm12, %v7035_v9, 8  ;;  %vm3386_vm15 = vcmp.le.f32.partialorder %v8897_v25, %v3040_v56  ;;  %v3100_v56 = vrot.slane %v7014_v4, %v8789_v11 }
 0x4a6   :  { %v7488_v46 = vpop.permute.xlu0 %3639  ;;  %v3517_v2 = vsel %vm3386_vm15, %v7035_v9, 8 }
 0x4a7   :  { %3861 = vperm.xlu0 %5238, %v3524_v10   ;;  %3786 = vperm.xlu1 %5237, %v3499_v58   ;;  %v7492_v43 = vpop.permute.xlu1 %3624  ;;  %v8896_v10 = vld [vmem:[#allocation137_spill] sm:$0xff] }
 0x4a8   :  { %vm3395_vm14 = vcmp.le.f32.partialorder %v8896_v10, %v3076_v62  ;;  %v8901_v62 = vld [vmem:[#allocation121_spill] sm:$0xff]  ;;  %v3000_v10 = vrot.slane %v7010_v44, %v8802_v1  ;;  %v3048_v44 = vrot.slane %v7012_v7, %v8796_v38 }
 0x4a9   :  { %v3526_v37 = vsel %vm3395_vm14, %v7035_v9, 8  ;;  %vm3381_vm10 = vcmp.le.f32.partialorder %v8901_v62, %v3020_v18  ;;  %v3060_v18 = vrot.slane %v7012_v7, %v8787_v57 }
 0x4aa   :  { %v7500_v32 = vpop.permute.xlu0 %3675  ;;  %v3512_v41 = vsel %vm3381_vm10, %v7035_v9, 8 }
 0x4ab   :  { %3831 = vperm.xlu0 %5238, %v3514_v27   ;;  %3822 = vperm.xlu1 %5237, %v3511_v15   ;;  %v7504_v58 = vpop.permute.xlu1 %3630  ;;  %v8900_v27 = vld [vmem:[#allocation118_spill] sm:$0xff] }
 0x4ac   :  { %vm3390_vm9 = vcmp.le.f32.partialorder %v8900_v27, %v3056_v13  ;;  %v8905_v13 = vld [vmem:[#allocation104_spill] sm:$0xff] }
 0x4ad   :  { %vm3376_vm12 = vcmp.le.f32.partialorder %v8905_v13, %v3000_v10  ;;  %v3108_v10 = vrot.slane %v7014_v4, %v8783_v33 }
 0x4ae   :  { %v7512_v23 = vpop.permute.xlu0 %3660 }
 0x4af   :  { %8898 = vst [vmem:[#allocation4_spill] sm:$0xff] %v7512_v23  ;;  %3867 = vperm.xlu0 %5238, %v3526_v37   ;;  %3840 = vperm.xlu1 %5237, %v3517_v2   ;;  %v7516_v15 = vpop.permute.xlu1 %3648  ;;  %v3521_v23 = vsel %vm3390_vm9, %v7035_v9, 8  ;;  %v8904_v37 = vld [vmem:[#allocation143_spill] sm:$0xff] }
 0x4b0   :  { %8899 = vst [vmem:[#allocation144_spill] sm:$0xff] %v7516_v15  ;;  %vm3401_vm11 = vcmp.le.f32.partialorder %v8904_v37, %v3100_v56  ;;  %v8909_v56 = vld [vmem:[#allocation116_spill] sm:$0xff]  ;;  %v3072_v37 = vrot.slane %v7312_v61, %v8793_v14 }
 0x4b1   :  { %v3532_v62 = vsel %vm3401_vm11, %v7035_v9, 8  ;;  %vm3388_vm14 = vcmp.le.f32.partialorder %v8909_v56, %v3048_v44  ;;  %v3088_v44 = vrot.slane %v7312_v61, %v8799_v36 }
 0x4b2   :  { %v7524_v25 = vpop.permute.xlu0 %3693 }
 0x4b3   :  { %8902 = vst [vmem:[#allocation83_spill] sm:$0xff] %v7524_v25  ;;  %3852 = vperm.xlu0 %5238, %v3521_v23   ;;  %3825 = vperm.xlu1 %5237, %v3512_v41   ;;  %v7528_v2 = vpop.permute.xlu1 %3651  ;;  %v3507_v25 = vsel %vm3376_vm12, %v7035_v9, 8  ;;  %v8908_v23 = vld [vmem:[#allocation133_spill] sm:$0xff] }
 0x4b4   :  { %8903 = vst [vmem:[#allocation87_spill] sm:$0xff] %v7528_v2  ;;  %vm3391_vm13 = vcmp.le.f32.partialorder %v8908_v23, %v3060_v18  ;;  %v3519_v2 = vsel %vm3388_vm14, %v7035_v9, 8  ;;  %v8912_v18 = vld [vmem:[#allocation122_spill] sm:$0xff]  ;;  %v3052_v23 = vrot.slane %v7012_v7, %v8785_v29 }
 0x4b5   :  { %vm3394_vm9 = vcmp.le.f32.partialorder %v8912_v18, %v3072_v37  ;;  %v8915_v37 = vld [vmem:[#allocation131_spill] sm:$0xff] }
 0x4b6   :  { %v7536_v27 = vpop.permute.xlu0 %3663  ;;  %vm3389_vm11 = vcmp.le.f32.partialorder %v8915_v37, %v3052_v23  ;;  %v3104_v37 = vrot.slane %v7014_v4, %v8793_v14 }
 0x4b7   :  { %8906 = vst [vmem:[#allocation89_spill] sm:$0xff] %v7536_v27  ;;  %3885 = vperm.xlu0 %5238, %v3532_v62   ;;  %3810 = vperm.xlu1 %5237, %v3507_v25   ;;  %v7540_v41 = vpop.permute.xlu1 %3654  ;;  %v3522_v27 = vsel %vm3391_vm13, %v7035_v9, 8  ;;  %v8911_v62 = vld [vmem:[#allocation145_spill] sm:$0xff]  ;;  %v3520_v63 = vsel %vm3389_vm11, %v7035_v9, 8 }
 0x4b8   :  { %8907 = vst [vmem:[#allocation92_spill] sm:$0xff] %v7540_v41  ;;  %vm3403_vm15 = vcmp.le.f32.partialorder %v8911_v62, %v3108_v10  ;;  %v3525_v41 = vsel %vm3394_vm9, %v7035_v9, 8  ;;  %v8914_v10 = vld [vmem:[#allocation127_spill] sm:$0xff]  ;;  %v3032_v62 = vrot.slane %v7300_v49, %v8802_v1  ;;  %v3080_v49 = vrot.slane %v7312_v61, %v8796_v38 }
 0x4b9   :  { %vm3398_vm10 = vcmp.le.f32.partialorder %v8914_v10, %v3088_v44 }
 0x4ba   :  { %v7548_v13 = vpop.permute.xlu0 %3699  ;;  %v3529_v15 = vsel %vm3398_vm10, %v7035_v9, 8 }
 0x4bb   :  { %8910 = vst [vmem:[#allocation8_spill] sm:$0xff] %v7548_v13  ;;  %3855 = vperm.xlu0 %5238, %v3522_v27   ;;  %3846 = vperm.xlu1 %5237, %v3519_v2   ;;  %v7552_v25 = vpop.permute.xlu1 %3672  ;;  %v3534_v13 = vsel %vm3403_vm15, %v7035_v9, 8  ;;  %v3132_v27 = vrot.slane %v7324_v19, %v8789_v11  ;;  %v8916_v11 = vld [vmem:[#allocation112_spill] sm:$0xff] }
 0x4bc   :  { %vm3384_vm13 = vcmp.le.f32.partialorder %v8916_v11, %v3032_v62 }
 0x4bd   :  { %vm3409_vm12 = vcmp.le.f32.partialorder %v6652_v59, %v3132_v27  ;;  %v3515_v10 = vsel %vm3384_vm13, %v7035_v9, 8  ;;  %v3140_v59 = vrot.slane %v7324_v19, %v8783_v33  ;;  %v8918_v27 = vld [vmem:[#allocation124_spill] sm:$0xff] }
 0x4be   :  { %v7560_v56 = vpop.permute.xlu0 %3684  ;;  %v3540_v23 = vsel %vm3409_vm12, %v7035_v9, 8  ;;  %vm3396_vm15 = vcmp.le.f32.partialorder %v8918_v27, %v3080_v49  ;;  %v8920_v33 = vld [vmem:[#allocation132_spill] sm:$0xff]  ;;  %v3084_v49 = vrot.slane %v7312_v61, %v8785_v29 }
 0x4bf   :  { %3891 = vperm.xlu0 %5238, %v3534_v13   ;;  %3864 = vperm.xlu1 %5237, %v3525_v41   ;;  %v7564_v2 = vpop.permute.xlu1 %3657  ;;  %v3092_v13 = vrot.slane %v7312_v61, %v8787_v57  ;;  %vm3411_vm9 = vcmp.le.f32.partialorder %v6678_v24, %v3140_v59  ;;  %vm3402_vm10 = vcmp.le.f32.partialorder %v8920_v33, %v3104_v37  ;;  %v8923_v24 = vld [vmem:[#allocation139_spill] sm:$0xff] }
 0x4c0   :  { %8913 = vst [vmem:[#allocation44_spill] sm:$0xff] %v7564_v2  ;;  %v3527_v2 = vsel %vm3396_vm15, %v7035_v9, 8  ;;  %v3533_v27 = vsel %vm3402_vm10, %v7035_v9, 8  ;;  %vm3397_vm12 = vcmp.le.f32.partialorder %v8923_v24, %v3084_v49  ;;  %v3124_v59 = vrot.slane %v7014_v4, %v8787_v57 }
 0x4c1   :  { %v3064_v37 = vrot.slane %v7012_v7, %v8802_v1  ;;  %v3128_v49 = vrot.slane %v7014_v4, %v8802_v1  ;;  %v3112_v7 = vrot.slane %v7014_v4, %v8796_v38 }
 0x4c2   :  { %v7572_v18 = vpop.permute.xlu0 %3717  ;;  %vm3407_vm13 = vcmp.le.f32.partialorder %v6622_v42, %v3124_v59  ;;  %v3156_v42 = vrot.slane %v7324_v19, %v8787_v57  ;;  %v8927_v59 = vld [vmem:[#allocation138_spill] sm:$0xff]  ;;  %v3116_v57 = vrot.slane %v7014_v4, %v8785_v29 }
 0x4c3   :  { %3876 = vperm.xlu0 %5238, %v3529_v15   ;;  %3849 = vperm.xlu1 %5237, %v3520_v63   ;;  %v7576_v41 = vpop.permute.xlu1 %3642  ;;  %v8917_v15 = vld [vmem:[#allocation142_spill] sm:$0xff]  ;;  %vm3408_vm15 = vcmp.le.f32.partialorder %v8927_v59, %v3128_v49  ;;  %v4003_v59 = vrot.slane %v7444_v55, %v6549_v39 }
 0x4c4   :  { %vm3399_vm14 = vcmp.le.f32.partialorder %v8917_v15, %v3092_v13  ;;  %v3120_v13 = vrot.slane %v7014_v4, %v8799_v36  ;;  %v3542_v15 = vsel %vm3411_vm9, %v7035_v9, 8  ;;  %vm3415_vm10 = vcmp.le.f32.partialorder %v6714_v17, %v3156_v42 }
 0x4c5   :  { %v3530_v11 = vsel %vm3399_vm14, %v7035_v9, 8  ;;  %v3546_v49 = vsel %vm3415_vm10, %v7035_v9, 8  ;;  %v3096_v17 = vrot.slane %v7312_v61, %v8802_v1  ;;  %v3148_v61 = vrot.slane %v7324_v19, %v8785_v29 }
 0x4c6   :  { %v7584_v44 = vpop.permute.xlu0 %3687  ;;  %v4035_v29 = vrot.slane %v7492_v43, %v6549_v39 }
 0x4c7   :  { %3909 = vperm.xlu0 %5238, %v3540_v23   ;;  %3834 = vperm.xlu1 %5237, %v3515_v10   ;;  %v7588_v63 = vpop.permute.xlu1 %3678 }
 0x4ca   :  { %v7596_v62 = vpop.permute.xlu0 %3723 }
 0x4cb   :  { %3879 = vperm.xlu0 %5238, %v3530_v11   ;;  %3870 = vperm.xlu1 %5237, %v3527_v2   ;;  %v7600_v23 = vpop.permute.xlu1 %3696  ;;  %v8922_v11 = vld [vmem:[#allocation136_spill] sm:$0xff] }
 0x4cc   :  { %8919 = vst [vmem:[#allocation10_spill] sm:$0xff] %v7600_v23  ;;  %vm3406_vm11 = vcmp.le.f32.partialorder %v8922_v11, %v3120_v13  ;;  %v3528_v23 = vsel %vm3397_vm12, %v7035_v9, 8  ;;  %v8925_v13 = vld [vmem:[#allocation120_spill] sm:$0xff]  ;;  %v3538_v11 = vsel %vm3407_vm13, %v7035_v9, 8  ;;  %vm3405_vm12 = vcmp.le.f32.partialorder %v6595_v22, %v3116_v57 }
 0x4cd   :  { %vm3392_vm14 = vcmp.le.f32.partialorder %v8925_v13, %v3064_v37  ;;  %v8928_v37 = vld [vmem:[#allocation134_spill] sm:$0xff]  ;;  %v3947_v22 = vrot.slane %v7360_v3, %v6549_v39  ;;  %v3999_v3 = vrot.slane %v7368_v53, %v6549_v39  ;;  %v4031_v53 = vrot.slane %v7416_v60, %v6549_v39 }
 0x4ce   :  { %v7608_v10 = vpop.permute.xlu0 %3708  ;;  %v3523_v24 = vsel %vm3392_vm14, %v7035_v9, 8  ;;  %vm3404_vm9 = vcmp.le.f32.partialorder %v8928_v37, %v3112_v7  ;;  %v8929_v37 = vld [vmem:[#allocation130_spill] sm:$0xff]  ;;  %v3959_v60 = vrot.slane %v7308_v40, %v6549_v39 }
 0x4cf   :  { %8921 = vst [vmem:[#allocation46_spill] sm:$0xff] %v7608_v10  ;;  %3915 = vperm.xlu0 %5238, %v3542_v15   ;;  %3888 = vperm.xlu1 %5237, %v3533_v27   ;;  %v7612_v2 = vpop.permute.xlu1 %3681  ;;  %v3537_v10 = vsel %vm3406_vm11, %v7035_v9, 8  ;;  %vm3400_vm13 = vcmp.le.f32.partialorder %v8929_v37, %v3096_v17  ;;  %v4458_v43 = vsel %vm2449_vm1, %v4003_v59, %v3999_v3 }
 0x4d0   :  { %v4011_v17 = vrot.slane %v7456_v45, %v6549_v39  ;;  %v4043_v45 = vrot.slane %v7504_v58, %v6549_v39  ;;  %v3963_v58 = vrot.slane %v7384_v54, %v6549_v39  ;;  %v4099_v59 = vrot.slane %v7552_v25, %v6549_v39 }
 0x4d1   :  { %v4095_v25 = vrot.slane %v7476_v12, %v6549_v39 }
 0x4d2   :  { %v7620_v33 = vpop.permute.xlu0 %3741 }
 0x4d3   :  { %3900 = vperm.xlu0 %5238, %v3537_v10   ;;  %3873 = vperm.xlu1 %5237, %v3528_v23   ;;  %v7624_v15 = vpop.permute.xlu1 %3666  ;;  %v3136_v10 = vrot.slane %v7324_v19, %v8793_v14  ;;  %v4479_v12 = vsel %vm2449_vm1, %v4099_v59, %v4095_v25 }
 0x4d4   :  { %8924 = vst [vmem:[#allocation12_spill] sm:$0xff] %v7624_v15  ;;  %v3535_v15 = vsel %vm3404_vm9, %v7035_v9, 8 }
 0x4d5   :  { %vm3410_vm11 = vcmp.le.f32.partialorder %v6981_v30, %v3136_v10  ;;  %v3935_v30 = vrot.slane %v7336_v8, %v6549_v39  ;;  %v3144_v10 = vrot.slane %v7324_v19, %v8796_v38  ;;  %v3943_v8 = vrot.slane %v7286_v16, %v6549_v39 }
 0x4d6   :  { %v7632_v27 = vpop.permute.xlu0 %3711  ;;  %v3541_v7 = vsel %vm3410_vm11, %v7035_v9, 8  ;;  %v3531_v38 = vsel %vm3400_vm13, %v7035_v9, 8 }
 0x4d7   :  { %8926 = vst [vmem:[#allocation48_spill] sm:$0xff] %v7632_v27  ;;  %3903 = vperm.xlu0 %5238, %v3538_v11   ;;  %3858 = vperm.xlu1 %5237, %v3523_v24   ;;  %v7636_v23 = vpop.permute.xlu1 %3702  ;;  %v3539_v27 = vsel %vm3408_vm15, %v7035_v9, 8  ;;  %vm3412_vm14 = vcmp.le.f32.partialorder %v6986_v20, %v3144_v10  ;;  %vm7697_vm15 = vcmp.le.f32.partialorder %v6699_v34, %v3148_v61 }
 0x4d8   :  { %v3951_v20 = vrot.slane %v7296_v21, %v6549_v39  ;;  %v4007_v34 = vrot.slane %v7380_v31, %v6549_v39  ;;  %v4465_v10 = vsel %vm2449_vm1, %v4035_v29, %v4031_v53  ;;  %v3160_v31 = vrot.slane %v7324_v19, %v8802_v1 }
 0x4d9   :  { %v3544_v40 = vsel %vm7697_vm15, %v7035_v9, 8  ;;  %v4019_v1 = vrot.slane %v7468_v28, %v6549_v39  ;;  %v4107_v53 = vrot.slane %v7588_v63, %v6549_v39 }
 0x4da   :  { %v7644_v13 = vpop.permute.xlu0 %3747  ;;  %vm7764_vm10 = vcmp.le.f32.partialorder %v6996_v0, %v3160_v31  ;;  %v4051_v0 = vrot.slane %v7464_v52, %v6549_v39 }
 0x4db   :  { %3906 = vperm.xlu0 %5238, %v3539_v27   ;;  %3894 = vperm.xlu1 %5237, %v3535_v15   ;;  %v7648_v11 = vpop.permute.xlu1 %3720  ;;  %v3939_v15 = vrot.slane %v7348_v47, %v6549_v39  ;;  %v3536_v27 = vsel %vm3405_vm12, %v7035_v9, 8  ;;  %v3547_v63 = vsel %vm7764_vm10, %v7035_v9, 8 }
 0x4dd   :  { %v4444_v47 = vsel %vm2449_vm1, %v3939_v15, %v3935_v30  ;;  %v3955_v15 = vrot.slane %v7372_v5, %v6549_v39  ;;  %v3152_v5 = vrot.slane %v7324_v19, %v8799_v36  ;;  %v4459_v36 = vsel %vm2451_vm2, %v4007_v34, %v4458_v43 }
 0x4de   :  { %v7654_v14 = vpop.permute.xlu0 %3732  ;;  %v4015_v19 = vrot.slane %v7392_v48, %v6549_v39  ;;  %v4047_v48 = vrot.slane %v7452_v51, %v6549_v39  ;;  %v4027_v51 = vrot.slane %v7480_v50, %v6549_v39  ;;  %v4111_v50 = vrot.slane %v7612_v2, %v6549_v39 }
 0x4df   :  { %3927 = vperm.xlu0 %5238, %v3546_v49   ;;  %3912 = vperm.xlu1 %5237, %v3541_v7   ;;  %v7658_v24 = vpop.permute.xlu1 %3705  ;;  %v4445_v49 = vsel %vm2451_vm2, %v3943_v8, %v4444_v47  ;;  %v4460_v8 = vsel %vm2453_vm3, %v4011_v17, %v4459_v36  ;;  %vm7747_vm9 = vcmp.le.f32.partialorder %v6991_v35, %v3152_v5 }
 0x4e0   :  { %v4446_v16 = vsel %vm2453_vm3, %v3947_v22, %v4445_v49  ;;  %v4039_v22 = vrot.slane %v7428_v26, %v6549_v39  ;;  %v4461_v3 = vsel %vm2455_vm4, %v4015_v19, %v4460_v8  ;;  %v4023_v17 = vrot.slane %v7404_v6, %v6549_v39 }
 0x4e1   :  { %v4447_v47 = vsel %vm2455_vm4, %v3951_v20, %v4446_v16  ;;  %v4462_v35 = vsel %vm2457_vm5, %v4019_v1, %v4461_v3  ;;  %v3545_v16 = vsel %vm7747_vm9, %v7035_v9, 8  ;;  %v4103_v20 = vrot.slane %v7500_v32, %v6549_v39 }
 0x4e2   :  { %v7667_v4 = vpop.permute.xlu0 %3765  ;;  %v4448_v61 = vsel %vm2457_vm5, %v3955_v15, %v4447_v47  ;;  %v4466_v26 = vsel %vm2451_vm2, %v4039_v22, %v4465_v10  ;;  %v4463_v6 = vsel %vm2459_vm6, %v4023_v17, %v4462_v35  ;;  %v4059_v32 = vrot.slane %v7576_v41, %v6549_v39 }
 0x4e3   :  { %3897 = vperm.xlu1 %5237, %v3536_v27   ;;  %v7670_v42 = vpop.permute.xlu1 %3690  ;;  %v3543_v27 = vsel %vm3412_vm14, %v7035_v9, 8  ;;  %v4467_v54 = vsel %vm2453_vm3, %v4043_v45, %v4466_v26  ;;  %v4449_v28 = vsel %vm2459_vm6, %v3959_v60, %v4448_v61  ;;  %v4480_v5 = vsel %vm2451_vm2, %v4103_v20, %v4479_v12 }
 0x4e4   :  { %v4450_v29 = vsel %vm2461_vm7, %v3963_v58, %v4449_v28  ;;  %v4468_v15 = vsel %vm2455_vm4, %v4047_v48, %v4467_v54  ;;  %v4464_v2 = vsel %vm2461_vm7, %v4027_v51, %v4463_v6  ;;  %v4055_v60 = vrot.slane %v7488_v46, %v6549_v39 }
 0x4e5   :  { %v4469_v52 = vsel %vm2457_vm5, %v4051_v0, %v4468_v15  ;;  %v4481_v10 = vsel %vm2453_vm3, %v4107_v53, %v4480_v5  ;;  %v4163_v9 = vrot.slane %v7648_v11, %v6549_v39  ;;  %v4115_v41 = vrot.slane %v7560_v56, %v6549_v39  ;;  %v8938_v53 = vld [vmem:[#allocation72_spill] sm:$0xff]  ;;  %v8939_v0 = vld [vmem:[#allocation81_spill] sm:$0xff] }
 0x4e6   :  { %v7684_v57 = vpop.permute.xlu0 %3735  ;;  %v4482_v31 = vsel %vm2455_vm4, %v4111_v50, %v4481_v10  ;;  %v4159_v22 = vrot.slane %v7572_v18, %v6549_v39  ;;  %v4470_v46 = vsel %vm2459_vm6, %v4055_v60, %v4469_v52  ;;  %v7816_v11 = vsel %vm2584_vm8, %v4464_v2, 2147483647  ;;  %v8940_v5 = vld [vmem:[#allocation144_spill] sm:$0xff] }
 0x4e7   :  { %3882 = vperm.xlu1 %5237, %v3531_v38   ;;  %v7692_v7 = vpop.permute.xlu1 %3726  ;;  %v4483_v61 = vsel %vm2457_vm5, %v4115_v41, %v4482_v31  ;;  %v4123_v8 = vrot.slane %v7670_v42, %v6549_v39  ;;  %v4119_v1 = vrot.slane %v7584_v44, %v6549_v39  ;;  %v4167_v19 = vrot.slane %v7596_v62, %v6549_v39  ;;  %v8936_v38 = vld [vmem:[#allocation78_spill] sm:$0xff]  ;;  %v8941_v41 = vld [vmem:[#allocation87_spill] sm:$0xff] }
 0x4e8   :  { %v4493_v58 = vsel %vm2449_vm1, %v4163_v9, %v4159_v22  ;;  %v4171_v56 = vrot.slane %v7692_v7, %v6549_v39  ;;  %v3971_v54 = vrot.slane %v8936_v38, %v6549_v39  ;;  %v4588_v42 = vshra.s32 %v7816_v11, 16  ;;  %v8937_v62 = vld [vmem:[#allocation70_spill] sm:$0xff]  ;;  %v8946_v38 = vld [vmem:[#allocation44_spill] sm:$0xff] }
 0x4e9   :  { %v4484_v7 = vsel %vm2459_vm6, %v4119_v1, %v4483_v61  ;;  %v4494_v48 = vsel %vm2451_vm2, %v4167_v19, %v4493_v58  ;;  %v3967_v3 = vrot.slane %v8937_v62, %v6549_v39  ;;  %v4179_v51 = vrot.slane %v7654_v14, %v6549_v39  ;;  %v8944_v58 = vld [vmem:[#allocation92_spill] sm:$0xff]  ;;  %v8945_v19 = vld [vmem:[#allocation74_spill] sm:$0xff] }
 0x4ea   :  { %v7712_v30 = vpop.permute.xlu0 %3771  ;;  %v4495_v25 = vsel %vm2453_vm3, %v4171_v56, %v4494_v48  ;;  %v7856_v15 = vcvt.s32.f32 %v4588_v42  ;;  %v3975_v17 = vrot.slane %v8938_v53, %v6549_v39  ;;  %v3979_v20 = vrot.slane %v8939_v0, %v6549_v39  ;;  %v8947_v42 = vld [vmem:[#allocation10_spill] sm:$0xff]  ;;  %v8949_v53 = vld [vmem:[#allocation77_spill] sm:$0xff] }
 0x4eb   :  { %3918 = vperm.xlu1 %5237, %v3543_v27   ;;  %v7722_v21 = vpop.permute.xlu1 %3744  ;;  %v7790_v27 = vsel %vm2584_vm8, %v4450_v29, 2147483647  ;;  %v4451_v55 = vsel %vm2449_vm1, %v3971_v54, %v3967_v3  ;;  %v4183_v52 = vrot.slane %v7684_v57, %v6549_v39  ;;  %v4067_v2 = vrot.slane %v8940_v5, %v6549_v39 }
 0x4ec   :  { %v4558_v36 = vshra.s32 %v7790_v27, 16  ;;  %v4452_v14 = vsel %vm2451_vm2, %v3975_v17, %v4451_v55  ;;  %v4071_v22 = vrot.slane %v8941_v41, %v6549_v39  ;;  %v4079_v54 = vrot.slane %v8946_v38, %v6549_v39  ;;  %v8948_v55 = vld [vmem:[#allocation83_spill] sm:$0xff] }
 0x4ed   :  { %v4453_v31 = vsel %vm2453_vm3, %v3979_v20, %v4452_v14  ;;  %v3991_v17 = vrot.slane %v8949_v53, %v6549_v39  ;;  %v8950_v20 = vld [vmem:[#allocation141_spill] sm:$0xff] }
 0x4ee   :  { %v7744_v37 = vpop.permute.xlu0 %3756  ;;  %v7835_v28 = vcvt.s32.f32 %v4558_v36  ;;  %v8942_v36 = vld [vmem:[#allocation125_spill] sm:$0xff] }
 0x4ef   :  { %3921 = vperm.xlu1 %5237, %v3544_v40   ;;  %v3730_v49 = vpop.permute.xlu1 %3729  ;;  %v4471_v40 = vsel %vm2461_vm7, %v4059_v32, %v4470_v46  ;;  %v3987_v57 = vrot.slane %v8942_v36, %v6549_v39  ;;  %v4143_v36 = vrot.slane %v7658_v24, %v6549_v39 }
 0x4f0   :  { %v4175_v26 = vrot.slane %v3730_v49, %v6549_v39  ;;  %v7841_v44 = vsel %vm2584_vm8, %v4471_v40, 2147483647  ;;  %v4485_v49 = vsel %vm2461_vm7, %v4123_v8, %v4484_v7  ;;  %v8943_v40 = vld [vmem:[#allocation128_spill] sm:$0xff]  ;;  %v4075_v8 = vrot.slane %v8944_v58, %v6549_v39 }
 0x4f1   :  { %v4603_v12 = vshra.s32 %v7841_v44, 16  ;;  %v7864_v50 = vsel %vm2584_vm8, %v4485_v49, 2147483647  ;;  %v4063_v61 = vrot.slane %v8943_v40, %v6549_v39  ;;  %v4131_v7 = vrot.slane %v8947_v42, %v6549_v39 }
 0x4f2   :  { %v7774_v43 = vpop.permute.xlu0 %3789  ;;  %v4496_v35 = vsel %vm2455_vm4, %v4175_v26, %v4495_v25  ;;  %v4633_v9 = vshra.s32 %v7864_v50, 16  ;;  %v3983_v26 = vrot.slane %v8945_v19, %v6549_v39 }
 0x4f3   :  { %3924 = vperm.xlu1 %5237, %v3545_v16   ;;  %v7784_v34 = vpop.permute.xlu1 %3714  ;;  %v7876_v10 = vcvt.s32.f32 %v4603_v12  ;;  %v4472_v3 = vsel %vm2449_vm1, %v4067_v2, %v4063_v61  ;;  %v4139_v2 = vrot.slane %v7636_v23, %v6549_v39  ;;  %v4191_v23 = vrot.slane %v7620_v33, %v6549_v39 }
 0x4f4   :  { %v7905_v49 = vcvt.s32.f32 %v4633_v9  ;;  %v4473_v12 = vsel %vm2451_vm2, %v4071_v22, %v4472_v3  ;;  %v8952_v22 = vld [vmem:[#allocation8_spill] sm:$0xff] }
 0x4f5   :  { %v4474_v14 = vsel %vm2453_vm3, %v4075_v8, %v4473_v12 }
 0x4f6   :  { %v7803_v45 = vpop.permute.xlu0 %3759 }
 0x4f7   :  { %3930 = vperm.xlu1 %5237, %v3547_v63   ;;  %v7806_v47 = vpop.permute.xlu1 %3750  ;;  %v4497_v63 = vsel %vm2457_vm5, %v4179_v51, %v4496_v35  ;;  %v4454_v35 = vsel %vm2455_vm4, %v3983_v26, %v4453_v31  ;;  %v4127_v51 = vrot.slane %v8948_v55, %v6549_v39  ;;  %v8951_v31 = vld [vmem:[#allocation4_spill] sm:$0xff] }
 0x4f8   :  { %v4498_v46 = vsel %vm2459_vm6, %v4183_v52, %v4497_v63  ;;  %v4455_v0 = vsel %vm2457_vm5, %v3987_v57, %v4454_v35  ;;  %v3995_v63 = vrot.slane %v8950_v20, %v6549_v39  ;;  %v4083_v41 = vrot.slane %v8951_v31, %v6549_v39  ;;  %v8955_v35 = vld [vmem:[#allocation46_spill] sm:$0xff] }
 0x4f9   :  { %v4486_v5 = vsel %vm2449_vm1, %v4131_v7, %v4127_v51  ;;  %v4456_v40 = vsel %vm2459_vm6, %v3991_v17, %v4455_v0  ;;  %v4203_v33 = vrot.slane %v7806_v47, %v6549_v39  ;;  %v4199_v7 = vrot.slane %v7644_v13, %v6549_v39 }
 0x4fa   :  { %v7824_v18 = vpop.permute.xlu0 %3795  ;;  %v4147_v55 = vrot.slane %v8955_v35, %v6549_v39  ;;  %v4155_v0 = vrot.slane %v7784_v34, %v6549_v39 }
 0x4fb   :  { %v7831_v59 = vpop.permute.xlu1 %3768 }
 0x4fc   :  { %v4227_v31 = vrot.slane %v7831_v59, %v6549_v39 }
 0x4fe   :  { %v7847_v29 = vpop.permute.xlu0 %3780  ;;  %4561 = vmin.xlane.f32.xlu0 %v7835_v28 }
 0x4ff   :  { %v7851_v16 = vpop.permute.xlu1 %3753  ;;  %v4243_v35 = vrot.slane %v7847_v29, %v6549_v39 }
 0x502   :  { %v7867_v6 = vpop.permute.xlu0 %3813  ;;  %4591 = vmin.xlane.f32.xlu0 %v7856_v15 }
 0x503   :  { %v3739_v32 = vpop.permute.xlu1 %3738 }
 0x504   :  { %v4187_v60 = vrot.slane %v3739_v32, %v6549_v39  ;;  %v4475_v32 = vsel %vm2455_vm4, %v4079_v54, %v4474_v14  ;;  %v8954_v54 = vld [vmem:[#allocation89_spill] sm:$0xff] }
 0x505   :  { %v4476_v61 = vsel %vm2457_vm5, %v4083_v41, %v4475_v32  ;;  %v4087_v42 = vrot.slane %v8954_v54, %v6549_v39 }
 0x506   :  { %v4499_v56 = vsel %vm2461_vm7, %v4187_v60, %v4498_v46  ;;  %v7890_v1 = vpop.permute.xlu0 %3783  ;;  %4606 = vmin.xlane.f32.xlu0 %v7876_v10  ;;  %v4195_v60 = vrot.slane %v7722_v21, %v6549_v39  ;;  %v4135_v46 = vrot.slane %v8952_v22, %v6549_v39  ;;  %v4457_v21 = vsel %vm2461_vm7, %v3995_v63, %v4456_v40  ;;  %v8956_v63 = vld [vmem:[#allocation48_spill] sm:$0xff] }
 0x507   :  { %v7899_v48 = vpop.permute.xlu1 %3774  ;;  %v7902_v62 = vsel %vm2584_vm8, %v4499_v56, 2147483647  ;;  %v8953_v56 = vld [vmem:[#allocation12_spill] sm:$0xff]  ;;  %v4477_v51 = vsel %vm2459_vm6, %v4087_v42, %v4476_v61  ;;  %v7966_v53 = vsel %vm2584_vm8, %v4457_v21, 2147483647  ;;  %v4151_v14 = vrot.slane %v8956_v63, %v6549_v39 }
 0x508   :  { %v4663_v25 = vshra.s32 %v7902_v62, 16  ;;  %v4487_v58 = vsel %vm2451_vm2, %v4135_v46, %v4486_v5  ;;  %v4091_v24 = vrot.slane %v8953_v56, %v6549_v39  ;;  %v4500_v26 = vsel %vm2449_vm1, %v4195_v60, %v4191_v23 }
 0x509   :  { %v4488_v19 = vsel %vm2453_vm3, %v4139_v2, %v4487_v58  ;;  %v4501_v12 = vsel %vm2451_vm2, %v4199_v7, %v4500_v26  ;;  %v4211_v5 = vrot.slane %v7744_v37, %v6549_v39  ;;  %v4573_v2 = vshra.s32 %v7966_v53, 16 }
 0x50a   :  { %v7918_v52 = vpop.permute.xlu0 %3819  ;;  %4636 = vmin.xlane.f32.xlu0 %v7905_v49  ;;  %v7935_v57 = vcvt.s32.f32 %v4663_v25  ;;  %v4489_v3 = vsel %vm2455_vm4, %v4143_v36, %v4488_v19  ;;  %v4207_v25 = vrot.slane %v7851_v16, %v6549_v39  ;;  %v4478_v17 = vsel %vm2461_vm7, %v4091_v24, %v4477_v51 }
 0x50b   :  { %v7927_v9 = vpop.permute.xlu1 %3792  ;;  %v4490_v13 = vsel %vm2457_vm5, %v4147_v55, %v4489_v3  ;;  %v4502_v16 = vsel %vm2453_vm3, %v4203_v33, %v4501_v12  ;;  %v7985_v34 = vsel %vm2584_vm8, %v4478_v17, 2147483647  ;;  %v4223_v37 = vrot.slane %v7667_v4, %v6549_v39 }
 0x50c   :  { %v4503_v32 = vsel %vm2455_vm4, %v4207_v25, %v4502_v16  ;;  %v4491_v60 = vsel %vm2459_vm6, %v4151_v14, %v4490_v13  ;;  %v4215_v23 = vrot.slane %v7803_v45, %v6549_v39  ;;  %v7994_v21 = vcvt.s32.f32 %v4573_v2 }
 0x50d   :  { %v4492_v22 = vsel %vm2461_vm7, %v4155_v0, %v4491_v60  ;;  %v4504_v46 = vsel %vm2457_vm5, %v4211_v5, %v4503_v32  ;;  %v4618_v59 = vshra.s32 %v7985_v34, 16  ;;  %v4507_v61 = vsel %vm2449_vm1, %v4227_v31, %v4223_v37 }
 0x50e   :  { %v7943_v8 = vpop.permute.xlu0 %3804  ;;  %4666 = vmin.xlane.f32.xlu0 %v7935_v57  ;;  %v4235_v58 = vrot.slane %v7899_v48, %v6549_v39  ;;  %v4505_v56 = vsel %vm2459_vm6, %v4215_v23, %v4504_v46  ;;  %v8004_v19 = vsel %vm2584_vm8, %v4492_v22, 2147483647  ;;  %v4231_v4 = vrot.slane %v7712_v30, %v6549_v39 }
 0x50f   :  { %v3778_v38 = vpop.permute.xlu1 %3777  ;;  %v8012_v48 = vcvt.s32.f32 %v4618_v59  ;;  %v4648_v42 = vshra.s32 %v8004_v19, 16  ;;  %v4247_v13 = vrot.slane %v7890_v1, %v6549_v39  ;;  %v4259_v29 = vrot.slane %v7927_v9, %v6549_v39 }
 0x510   :  { %v4239_v45 = vrot.slane %v3778_v38, %v6549_v39  ;;  %v4508_v54 = vsel %vm2451_vm2, %v4231_v4, %v4507_v61  ;;  %v4255_v2 = vrot.slane %v7774_v43, %v6549_v39 }
 0x511   :  { %v4509_v7 = vsel %vm2453_vm3, %v4235_v58, %v4508_v54  ;;  %v8025_v55 = vcvt.s32.f32 %v4648_v42 }
 0x512   :  { %v7963_v47 = vpop.permute.xlu0 %3837  ;;  %v4510_v30 = vsel %vm2455_vm4, %v4239_v45, %v4509_v7  ;;  %v4514_v31 = vsel %vm2449_vm1, %v4259_v29, %v4255_v2 }
 0x513   :  { %v3763_v20 = vpop.permute.xlu1 %3762  ;;  %v4511_v12 = vsel %vm2457_vm5, %v4243_v35, %v4510_v30 }
 0x514   :  { %v4219_v36 = vrot.slane %v3763_v20, %v6549_v39  ;;  %v4512_v20 = vsel %vm2459_vm6, %v4247_v13, %v4511_v12 }
 0x516   :  { %v7982_v41 = vpop.permute.xlu0 %3807  ;;  %v4506_v26 = vsel %vm2461_vm7, %v4219_v36, %v4505_v56  ;;  %v4263_v36 = vrot.slane %v7824_v18, %v6549_v39  ;;  %v4275_v56 = vrot.slane %v7943_v8, %v6549_v39 }
 0x517   :  { %v3799_v40 = vpop.permute.xlu1 %3798  ;;  %v8019_v25 = vsel %vm2584_vm8, %v4506_v26, 2147483647  ;;  %v4279_v18 = vrot.slane %v7982_v41, %v6549_v39 }
 0x518   :  { %v4678_v51 = vshra.s32 %v8019_v25, 16  ;;  %v4267_v22 = vrot.slane %v3799_v40, %v6549_v39  ;;  %v4515_v43 = vsel %vm2451_vm2, %v4263_v36, %v4514_v31 }
 0x51a   :  { %v8001_v24 = vpop.permute.xlu0 %3843  ;;  %v8036_v63 = vcvt.s32.f32 %v4678_v51  ;;  %v4516_v59 = vsel %vm2453_vm3, %v4267_v22, %v4515_v43  ;;  %v4287_v51 = vrot.slane %v7867_v6, %v6549_v39 }
 0x51b   :  { %4576 = vmin.xlane.f32.xlu1 %v7994_v21  ;;  %v3817_v33 = vpop.permute.xlu1 %3816 }
 0x51c   :  { %v4291_v7 = vrot.slane %v3817_v33, %v6549_v39  ;;  %v4295_v33 = vrot.slane %v7918_v52, %v6549_v39 }
 0x51e   :  { %v8016_v3 = vpop.permute.xlu0 %3828  ;;  %v4521_v41 = vsel %vm2449_vm1, %v4291_v7, %v4287_v51 }
 0x51f   :  { %4621 = vmin.xlane.f32.xlu1 %v8012_v48  ;;  %v3802_v38 = vpop.permute.xlu1 %3801  ;;  %v4522_v6 = vsel %vm2451_vm2, %v4295_v33, %v4521_v41  ;;  %v4307_v31 = vrot.slane %v8016_v3, %v6549_v39  ;;  %v4319_v3 = vrot.slane %v7963_v47, %v6549_v39 }
 0x520   :  { %v4271_v37 = vrot.slane %v3802_v38, %v6549_v39 }
 0x522   :  { %v8029_v17 = vpop.permute.xlu0 %3861  ;;  %v4517_v58 = vsel %vm2455_vm4, %v4271_v37, %v4516_v59 }
 0x523   :  { %4651 = vmin.xlane.f32.xlu1 %v8025_v55  ;;  %v3787_v0 = vpop.permute.xlu1 %3786  ;;  %v4518_v4 = vsel %vm2457_vm5, %v4275_v56, %v4517_v58 }
 0x524   :  { %v4251_v16 = vrot.slane %v3787_v0, %v6549_v39  ;;  %v4519_v42 = vsel %vm2459_vm6, %v4279_v18, %v4518_v4 }
 0x526   :  { %v4513_v14 = vsel %vm2461_vm7, %v4251_v16, %v4512_v20  ;;  %v3832_v32 = vpop.permute.xlu0 %3831 }
 0x527   :  { %4681 = vmin.xlane.f32.xlu1 %v8036_v63  ;;  %v3823_v5 = vpop.permute.xlu1 %3822  ;;  %v8043_v1 = vsel %vm2584_vm8, %v4513_v14, 2147483647  ;;  %v4311_v36 = vrot.slane %v3832_v32, %v6549_v39 }
 0x528   :  { %v4693_v60 = vshra.s32 %v8043_v1, 16  ;;  %v4299_v13 = vrot.slane %v3823_v5, %v6549_v39 }
 0x52a   :  { %v8050_v46 = vpop.permute.xlu0 %3867  ;;  %v8052_v9 = vcvt.s32.f32 %v4693_v60  ;;  %v4523_v14 = vsel %vm2453_vm3, %v4299_v13, %v4522_v6 }
 0x52b   :  { %v3841_v23 = vpop.permute.xlu1 %3840 }
 0x52c   :  { %4696 = vmin.xlane.f32.xlu0 %v8052_v9  ;;  %v4323_v58 = vrot.slane %v3841_v23, %v6549_v39  ;;  %v4327_v23 = vrot.slane %v8001_v24, %v6549_v39 }
 0x52e   :  { %v3853_v61 = vpop.permute.xlu0 %3852  ;;  %v4528_v32 = vsel %vm2449_vm1, %v4323_v58, %v4319_v3 }
 0x52f   :  { %v3826_v40 = vpop.permute.xlu1 %3825  ;;  %v4529_v51 = vsel %vm2451_vm2, %v4327_v23, %v4528_v32 }
 0x530   :  { %v4303_v20 = vrot.slane %v3826_v40, %v6549_v39 }
 0x532   :  { %v8064_v45 = vpop.permute.xlu0 %3885  ;;  %v4524_v5 = vsel %vm2455_vm4, %v4303_v20, %v4523_v14 }
 0x533   :  { %v3811_v26 = vpop.permute.xlu1 %3810  ;;  %v4525_v22 = vsel %vm2457_vm5, %v4307_v31, %v4524_v5  ;;  %v4383_v3 = vrot.slane %v8064_v45, %v6549_v39 }
 0x534   :  { %v4283_v54 = vrot.slane %v3811_v26, %v6549_v39  ;;  %v4526_v59 = vsel %vm2459_vm6, %v4311_v36, %v4525_v22 }
 0x536   :  { %v4520_v30 = vsel %vm2461_vm7, %v4283_v54, %v4519_v42  ;;  %v3856_v38 = vpop.permute.xlu0 %3855 }
 0x537   :  { %v3847_v35 = vpop.permute.xlu1 %3846  ;;  %v8073_v8 = vsel %vm2584_vm8, %v4520_v30, 2147483647  ;;  %v4343_v24 = vrot.slane %v3856_v38, %v6549_v39 }
 0x538   :  { %v4708_v12 = vshra.s32 %v8073_v8, 16  ;;  %v4331_v54 = vrot.slane %v3847_v35, %v6549_v39  ;;  %v4339_v35 = vrot.slane %v3853_v61, %v6549_v39  ;;  %v4351_v61 = vrot.slane %v8029_v17, %v6549_v39 }
 0x53a   :  { %v8080_v0 = vpop.permute.xlu0 %3891  ;;  %v8082_v16 = vcvt.s32.f32 %v4708_v12  ;;  %v4530_v47 = vsel %vm2453_vm3, %v4331_v54, %v4529_v51 }
 0x53b   :  { %v3865_v29 = vpop.permute.xlu1 %3864  ;;  %v4391_v23 = vrot.slane %v8080_v0, %v6549_v39 }
 0x53c   :  { %4711 = vmin.xlane.f32.xlu1 %v8082_v16 }
 0x53e   :  { %v8090_v2 = vpop.permute.xlu0 %3876 }
 0x53f   :  { %v3850_v60 = vpop.permute.xlu1 %3849  ;;  %v4371_v45 = vrot.slane %v8090_v2, %v6549_v39 }
 0x540   :  { %v4335_v7 = vrot.slane %v3850_v60, %v6549_v39  ;;  %v4355_v60 = vrot.slane %v3865_v29, %v6549_v39  ;;  %v4359_v29 = vrot.slane %v8050_v46, %v6549_v39 }
 0x542   :  { %v8096_v52 = vpop.permute.xlu0 %3909  ;;  %v4531_v41 = vsel %vm2455_vm4, %v4335_v7, %v4530_v47 }
 0x543   :  { %v3835_v37 = vpop.permute.xlu1 %3834  ;;  %v4532_v33 = vsel %vm2457_vm5, %v4339_v35, %v4531_v41 }
 0x544   :  { %v4315_v43 = vrot.slane %v3835_v37, %v6549_v39  ;;  %v4533_v5 = vsel %vm2459_vm6, %v4343_v24, %v4532_v33 }
 0x546   :  { %v4527_v40 = vsel %vm2461_vm7, %v4315_v43, %v4526_v59  ;;  %v3880_v18 = vpop.permute.xlu0 %3879  ;;  %v4535_v43 = vsel %vm2449_vm1, %v4355_v60, %v4351_v61 }
 0x547   :  { %v3871_v56 = vpop.permute.xlu1 %3870  ;;  %v8104_v4 = vsel %vm2584_vm8, %v4527_v40, 2147483647  ;;  %v4536_v32 = vsel %vm2451_vm2, %v4359_v29, %v4535_v43 }
 0x548   :  { %v4723_v26 = vshra.s32 %v8104_v4, 16  ;;  %v4363_v59 = vrot.slane %v3871_v56, %v6549_v39 }
 0x54a   :  { %v8111_v42 = vcvt.s32.f32 %v4723_v26  ;;  %v8119_v12 = vpop.permute.xlu0 %3915  ;;  %v4537_v7 = vsel %vm2453_vm3, %v4363_v59, %v4536_v32 }
 0x54b   :  { %v3889_v30 = vpop.permute.xlu1 %3888 }
 0x54c   :  { %4726 = vmin.xlane.f32.xlu0 %v8111_v42  ;;  %v4387_v38 = vrot.slane %v3889_v30, %v6549_v39 }
 0x54e   :  { %v3901_v6 = vpop.permute.xlu0 %3900  ;;  %v4542_v54 = vsel %vm2449_vm1, %v4387_v38, %v4383_v3  ;;  %v4415_v3 = vrot.slane %v8096_v52, %v6549_v39 }
 0x54f   :  { %v3874_v13 = vpop.permute.xlu1 %3873  ;;  %v4543_v47 = vsel %vm2451_vm2, %v4391_v23, %v4542_v54 }
 0x550   :  { %v4367_v26 = vrot.slane %v3874_v13, %v6549_v39  ;;  %v4403_v13 = vrot.slane %v3901_v6, %v6549_v39 }
 0x552   :  { %v3904_v58 = vpop.permute.xlu0 %3903  ;;  %v4538_v46 = vsel %vm2455_vm4, %v4367_v26, %v4537_v7 }
 0x553   :  { %v3859_v20 = vpop.permute.xlu1 %3858  ;;  %v4539_v33 = vsel %vm2457_vm5, %v4371_v45, %v4538_v46  ;;  %v4407_v0 = vrot.slane %v3904_v58, %v6549_v39 }
 0x554   :  { %v4347_v14 = vrot.slane %v3859_v20, %v6549_v39  ;;  %v4375_v20 = vrot.slane %v3880_v18, %v6549_v39 }
 0x556   :  { %v4534_v31 = vsel %vm2461_vm7, %v4347_v14, %v4533_v5  ;;  %v3907_v51 = vpop.permute.xlu0 %3906  ;;  %v4540_v6 = vsel %vm2459_vm6, %v4375_v20, %v4539_v33 }
 0x557   :  { %v3895_v22 = vpop.permute.xlu1 %3894  ;;  %v8130_v36 = vsel %vm2584_vm8, %v4534_v31, 2147483647  ;;  %v4411_v14 = vrot.slane %v3907_v51, %v6549_v39 }
 0x558   :  { %v4738_v37 = vshra.s32 %v8130_v36, 16  ;;  %v4395_v56 = vrot.slane %v3895_v22, %v6549_v39 }
 0x55a   :  { %v8138_v40 = vcvt.s32.f32 %v4738_v37  ;;  %v4544_v35 = vsel %vm2453_vm3, %v4395_v56, %v4543_v47  ;;  %v3928_v52 = vpop.permute.xlu0 %3927 }
 0x55b   :  { %v3913_v17 = vpop.permute.xlu1 %3912 }
 0x55c   :  { %4741 = vmin.xlane.f32.xlu1 %v8138_v40  ;;  %v4419_v59 = vrot.slane %v3913_v17, %v6549_v39  ;;  %v4423_v17 = vrot.slane %v8119_v12, %v6549_v39 }
 0x55e   :  { %v4549_v54 = vsel %vm2449_vm1, %v4419_v59, %v4415_v3  ;;  %v4602_v3 = vand.u32 65535, %v7841_v44 }
 0x55f   :  { %v3898_v30 = vpop.permute.xlu1 %3897  ;;  %v4550_v7 = vsel %vm2451_vm2, %v4423_v17, %v4549_v54  ;;  %v5246_v17 = vld [vmem:[%s8450_s0 + $0x50] sm:$0xff] }
 0x560   :  { %v4399_v41 = vrot.slane %v3898_v30, %v6549_v39 }
 0x562   :  { %v4545_v24 = vsel %vm2455_vm4, %v4399_v41, %v4544_v35  ;;  %v4439_v41 = vrot.slane %v3928_v52, %v6549_v39 }
 0x563   :  { %v4546_v2 = vsel %vm2457_vm5, %v4403_v13, %v4545_v24  ;;  %v3883_v5 = vpop.permute.xlu1 %3882 }
 0x564   :  { %v4379_v60 = vrot.slane %v3883_v5, %v6549_v39  ;;  %v4547_v31 = vsel %vm2459_vm6, %v4407_v0, %v4546_v2 }
 0x565   :  { %v4548_v22 = vsel %vm2461_vm7, %v4411_v14, %v4547_v31  ;;  %v4557_v14 = vand.u32 65535, %v7790_v27  ;;  %v5241_v27 = vld [vmem:[%s8450_s0 + $0x78] sm:$0xff] }
 0x566   :  { %v4541_v61 = vsel %vm2461_vm7, %v4379_v60, %v4540_v6  ;;  %v8171_v37 = vsel %vm2584_vm8, %v4548_v22, 2147483647 }
 0x567   :  { %v3919_v38 = vpop.permute.xlu1 %3918  ;;  %v4768_v18 = vshra.s32 %v8171_v37, 16  ;;  %v8175_v43 = vsel %vm2584_vm8, %v4541_v61, 2147483647  ;;  %v4559_v5 = vcvt.s32.f32 %v4557_v14  ;;  %v5259_v61 = vmov 0.0  }
 0x568   :  { %v4753_v58 = vshra.s32 %v8175_v43, 16  ;;  %v4427_v56 = vrot.slane %v3919_v38, %v6549_v39  ;;  %18 = vst.msk [vmem:[#allocation2] sm:$0xff] %vm17_vm0, %v5259_v61  ;;  %5198 = vmatprep.subr.mxu0 %v5259_v61  ;;  %5163 = vmatprep.subr.mxu1 %v5259_v61  ;;  %v5243_v38 = vld [vmem:[%s8450_s0 + $0x68] sm:$0xff] }
 0x569   :  { %v8179_v29 = vcvt.s32.f32 %v4768_v18  ;;  %5164 = vmatpush3.msra.mxu1 %v5241_v27  ;;  %v5244_v18 = vld [vmem:[%s8450_s0 + $0x60] sm:$0xff] }
 0x56a   :  { %v8183_v26 = vcvt.s32.f32 %v4753_v58  ;;  %v4551_v30 = vsel %vm2453_vm3, %v4427_v56, %v4550_v7  ;;  %5165 = vmatprep.subr.mxu1 %v5259_v61  ;;  %v4647_v7 = vand.u32 65535, %v8004_v19 }
 0x56b   :  { %4771 = vmin.xlane.f32.xlu1 %v8179_v29  ;;  %v3922_v32 = vpop.permute.xlu1 %3921 }
 0x56c   :  { %4756 = vmin.xlane.f32.xlu0 %v8183_v26  ;;  %v4431_v23 = vrot.slane %v3922_v32, %v6549_v39  ;;  %v5245_v32 = vld [vmem:[%s8450_s0 + $0x58] sm:$0xff] }
 0x56e   :  { %v4552_v51 = vsel %vm2455_vm4, %v4431_v23, %v4551_v30  ;;  %v4632_v23 = vand.u32 65535, %v7864_v50  ;;  %v5248_v30 = vld [vmem:[%s8450_s0 + $0x40] sm:$0xff] }
 0x56f   :  { %v3925_v46 = vpop.permute.xlu1 %3924 }
 0x570   :  { %v4435_v45 = vrot.slane %v3925_v46, %v6549_v39  ;;  %v5247_v46 = vld [vmem:[%s8450_s0 + $0x48] sm:$0xff] }
 0x572   :  { %v4553_v47 = vsel %vm2457_vm5, %v4435_v45, %v4552_v51  ;;  %v4634_v45 = vcvt.s32.f32 %v4632_v23  ;;  %v4662_v51 = vand.u32 65535, %v7902_v62 }
 0x573   :  { %v3931_v13 = vpop.permute.xlu1 %3930  ;;  %v4554_v12 = vsel %vm2459_vm6, %v4439_v41, %v4553_v47  ;;  %v4677_v47 = vand.u32 65535, %v8019_v25 }
 0x574   :  { %v4443_v35 = vrot.slane %v3931_v13, %v6549_v39  ;;  %v4587_v39 = vand.u32 65535, %v7816_v11  ;;  %v5242_v11 = vld [vmem:[%s8450_s0 + $0x70] sm:$0xff]  ;;  %v4664_v25 = vcvt.s32.f32 %v4662_v51 }
 0x575   :  { %5166 = vmatpush3.msra.mxu1 %v5242_v11 }
 0x576   :  { %v4555_v33 = vsel %vm2461_vm7, %v4443_v35, %v4554_v12  ;;  %v4589_v6 = vcvt.s32.f32 %v4587_v39  ;;  %5167 = vmatprep.subr.mxu1 %v5259_v61  ;;  %v4679_v35 = vcvt.s32.f32 %v4677_v47  ;;  %v4692_v12 = vand.u32 65535, %v8043_v1  ;;  %v5253_v39 = vld [vmem:[%s8450_s0 + $0x18] sm:$0xff] }
 0x577   :  { %v8202_v0 = vsel %vm2584_vm8, %v4555_v33, 2147483647  ;;  %5168 = vmatpush3.msra.mxu1 %v5243_v38  ;;  %v4722_v38 = vand.u32 65535, %v8104_v4  ;;  %v4767_v4 = vand.u32 65535, %v8171_v37 }
 0x578   :  { %v4783_v24 = vshra.s32 %v8202_v0, 16  ;;  %5169 = vmatprep.subr.mxu1 %v5259_v61  ;;  %v4782_v37 = vand.u32 65535, %v8202_v0 }
 0x579   :  { %5170 = vmatpush3.msra.mxu1 %v5244_v18 }
 0x57a   :  { %v8205_v20 = vcvt.s32.f32 %v4783_v24  ;;  %5171 = vmatprep.subr.mxu1 %v5259_v61  ;;  %v5251_v24 = vld [vmem:[%s8450_s0 + $0x28] sm:$0xff] }
 0x57b   :  { %5172 = vmatpush3.msra.mxu1 %v5245_v32 }
 0x57c   :  { %4786 = vmin.xlane.f32.xlu0 %v8205_v20  ;;  %5173 = vmatprep.subr.mxu1 %v5259_v61 }
 0x57d   :  { %5174 = vmatpush3.msra.mxu1 %v5246_v17 }
 0x57e   :  { %5175 = vmatprep.subr.mxu1 %v5259_v61 }
 0x57f   :  { %5176 = vmatpush3.msra.mxu1 %v5247_v46 }
 0x580   :  { %5177 = vmatprep.subr.mxu1 %v5259_v61 }
 0x581   :  { %5178 = vmatpush3.msra.mxu1 %v5248_v30 }
 0x582   :  { %5179 = vmatprep.subr.mxu1 %v5259_v61 }
 0x587   :  { %v8209_v2 = vpop.xlane.xlu0 %4561 }
 0x588   :  { %vm4563_vm1 = vcmp.eq.f32.partialorder %v7835_v28, %v8209_v2  ;;  %v4568_v0 = vcvt.f32.s32 %v8209_v2  ;;  %v8957_v2 = vld [vmem:[#allocation140_spill] sm:$0xff] }
 0x589   :  { %v4564_v60 = vsel %vm4563_vm1, %v4559_v5, inf  ;;  %v4694_v5 = vcvt.s32.f32 %v4692_v12 }
 0x58a   :  { %4565 = vmin.xlane.f32.xlu1 %v4564_v60  ;;  %v5254_v60 = vld [vmem:[%s8450_s0 + $0x10] sm:$0xff]  ;;  %v4569_v46 = vshll.u32 %v4568_v0, 16 }
 0x58b   :  { %v8214_v31 = vpop.xlane.xlu0 %4591 }
 0x58c   :  { %vm4593_vm2 = vcmp.eq.f32.partialorder %v7856_v15, %v8214_v31  ;;  %v4572_v15 = vand.u32 65535, %v7966_v53  ;;  %v4617_v53 = vand.u32 65535, %v7985_v34  ;;  %v4604_v34 = vcvt.s32.f32 %v4602_v3 }
 0x58d   :  { %v4594_v22 = vsel %vm4593_vm2, %v4589_v6, inf  ;;  %v5256_v6 = vld [vmem:[%s8450_s0] sm:$0xff]  ;;  %vm5261_vm2 = vmmov 0  }
 0x58e   :  { %4595 = vmin.xlane.f32.xlu1 %v4594_v22  ;;  %v4574_v58 = vcvt.s32.f32 %v4572_v15  ;;  %v4707_v22 = vand.u32 65535, %v8073_v8  ;;  %v4737_v8 = vand.u32 65535, %v8130_v36  ;;  %5195 = vmatprep.mubr.msk.f32.mxu1 %vm5261_vm2, %v5259_v61 }
 0x58f   :  { %v8230_v28 = vpop.xlane.xlu0 %4606  ;;  %5230 = vmatprep.mubr.msk.f32.mxu0 %vm5261_vm2, %v5259_v61 }
 0x590   :  { %vm4608_vm4 = vcmp.eq.f32.partialorder %v7876_v10, %v8230_v28  ;;  %v4709_v11 = vcvt.s32.f32 %v4707_v22  ;;  %v4739_v32 = vcvt.s32.f32 %v4737_v8 }
 0x591   :  { %v4609_v10 = vsel %vm4608_vm4, %v4604_v34, inf  ;;  %v4769_v34 = vcvt.s32.f32 %v4767_v4 }
 0x593   :  { %v8251_v54 = vpop.xlane.xlu0 %4636 }
 0x594   :  { %vm4638_vm6 = vcmp.eq.f32.partialorder %v7905_v49, %v8251_v54  ;;  %v5249_v49 = vld [vmem:[%s8450_s0 + $0x38] sm:$0xff] }
 0x595   :  { %5180 = vmatpush3.msra.mxu1 %v5249_v49  ;;  %v4639_v41 = vsel %vm4638_vm6, %v4634_v45, inf  ;;  %v4598_v45 = vcvt.f32.s32 %v8214_v31 }
 0x596   :  { %5181 = vmatprep.subr.mxu1 %v5259_v61 }
 0x597   :  { %v8274_v50 = vpop.xlane.xlu0 %4666  ;;  %v4599_v49 = vshll.u32 %v4598_v45, 16 }
 0x598   :  { %vm4668_vm8 = vcmp.eq.f32.partialorder %v7935_v57, %v8274_v50 }
 0x599   :  { %v4669_v33 = vsel %vm4668_vm8, %v4664_v25, inf }
 0x5a4   :  { %v8241_v59 = vpop.xlane.xlu1 %4576 }
 0x5a5   :  { %vm4578_vm3 = vcmp.eq.f32.partialorder %v7994_v21, %v8241_v59  ;;  %v4619_v21 = vcvt.s32.f32 %v4617_v53 }
 0x5a6   :  { %v4579_v56 = vsel %vm4578_vm3, %v4574_v58, inf  ;;  %v4724_v58 = vcvt.s32.f32 %v4722_v38 }
 0x5a7   :  { %4580 = vmin.xlane.f32.xlu0 %v4579_v56  ;;  %v4752_v56 = vand.u32 65535, %v8175_v43  ;;  %v4784_v43 = vcvt.s32.f32 %v4782_v37 }
 0x5a8   :  { %v8259_v44 = vpop.xlane.xlu1 %4621 }
 0x5a9   :  { %vm4623_vm5 = vcmp.eq.f32.partialorder %v8012_v48, %v8259_v44  ;;  %v4649_v48 = vcvt.s32.f32 %v4647_v7  ;;  %v4754_v36 = vcvt.s32.f32 %v4752_v56 }
 0x5aa   :  { %v4624_v52 = vsel %vm4623_vm5, %v4619_v21, inf }
 0x5ab   :  { %4610 = vmin.xlane.f32.xlu0 %v4609_v10  ;;  %4625 = vmin.xlane.f32.xlu1 %v4624_v52 }
 0x5ac   :  { %v8276_v19 = vpop.xlane.xlu1 %4651 }
 0x5ad   :  { %vm4653_vm7 = vcmp.eq.f32.partialorder %v8025_v55, %v8276_v19  ;;  %v5250_v55 = vld [vmem:[%s8450_s0 + $0x30] sm:$0xff] }
 0x5ae   :  { %v4654_v13 = vsel %vm4653_vm7, %v4649_v48, inf  ;;  %5182 = vmatpush3.msra.mxu1 %v5250_v55  ;;  %v4583_v48 = vcvt.f32.s32 %v8241_v59 }
 0x5af   :  { %4640 = vmin.xlane.f32.xlu0 %v4639_v41  ;;  %4655 = vmin.xlane.f32.xlu1 %v4654_v13  ;;  %v4613_v41 = vcvt.f32.s32 %v8230_v28 }
 0x5b0   :  { %v8289_v62 = vpop.xlane.xlu1 %4681  ;;  %5183 = vmatprep.subr.mxu1 %v5259_v61  ;;  %v4584_v13 = vshll.u32 %v4583_v48, 16 }
 0x5b1   :  { %vm4683_vm11 = vcmp.eq.f32.partialorder %v8036_v63, %v8289_v62  ;;  %5184 = vmatpush3.msra.mxu1 %v5251_v24  ;;  %v5252_v63 = vld [vmem:[%s8450_s0 + $0x20] sm:$0xff]  ;;  %v4614_v12 = vshll.u32 %v4613_v41, 16 }
 0x5b2   :  { %v4684_v57 = vsel %vm4683_vm11, %v4679_v35, inf  ;;  %5185 = vmatprep.subr.mxu1 %v5259_v61 }
 0x5b3   :  { %4670 = vmin.xlane.f32.xlu0 %v4669_v33  ;;  %4685 = vmin.xlane.f32.xlu1 %v4684_v57  ;;  %v4628_v33 = vcvt.f32.s32 %v8259_v44 }
 0x5b4   :  { %5186 = vmatpush3.msra.mxu1 %v5252_v63 }
 0x5b5   :  { %v8302_v14 = vpop.xlane.xlu0 %4696  ;;  %5187 = vmatprep.subr.mxu1 %v5259_v61  ;;  %v4629_v44 = vshll.u32 %v4628_v33, 16 }
 0x5b6   :  { %vm4698_vm12 = vcmp.eq.f32.partialorder %v8052_v9, %v8302_v14  ;;  %5188 = vmatpush3.msra.mxu1 %v5253_v39  ;;  %v5255_v9 = vld [vmem:[%s8450_s0 + $0x8] sm:$0xff] }
 0x5b7   :  { %v4699_v1 = vsel %vm4698_vm12, %v4694_v5, inf  ;;  %5189 = vmatprep.subr.mxu1 %v5259_v61 }
 0x5b8   :  { %4700 = vmin.xlane.f32.xlu0 %v4699_v1  ;;  %5190 = vmatpush3.msra.mxu1 %v5254_v60  ;;  %v4643_v1 = vcvt.f32.s32 %v8251_v54 }
 0x5b9   :  { %5191 = vmatprep.subr.mxu1 %v5259_v61 }
 0x5ba   :  { %5192 = vmatpush3.msra.mxu1 %v5255_v9  ;;  %v4644_v22 = vshll.u32 %v4643_v1, 16 }
 0x5bb   :  { %5193 = vmatprep.subr.mxu1 %v5259_v61 }
 0x5bc   :  { %5194 = vmatpush3.msra.mxu1 %v5256_v6 }
 0x5c5   :  { %v8326_v27 = vpop.xlane.xlu1 %4711 }
 0x5c6   :  { %vm4713_vm13 = vcmp.eq.f32.partialorder %v8082_v16, %v8326_v27 }
 0x5c7   :  { %v4714_v15 = vsel %vm4713_vm13, %v4709_v11, inf  ;;  %v4658_v11 = vcvt.f32.s32 %v8276_v19 }
 0x5c8   :  { %4715 = vmin.xlane.f32.xlu1 %v4714_v15 }
 0x5c9   :  { %v4659_v8 = vshll.u32 %v4658_v11, 16 }
 0x5d5   :  { %v8331_v18 = vpop.xlane.xlu0 %4726 }
 0x5d6   :  { %vm4728_vm14 = vcmp.eq.f32.partialorder %v8111_v42, %v8331_v18 }
 0x5d7   :  { %v4729_v3 = vsel %vm4728_vm14, %v4724_v58, inf }
 0x5d8   :  { %4730 = vmin.xlane.f32.xlu0 %v4729_v3  ;;  %v4673_v3 = vcvt.f32.s32 %v8274_v50 }
 0x5da   :  { %v4674_v19 = vshll.u32 %v4673_v3, 16 }
 0x5e5   :  { %v8336_v53 = vpop.xlane.xlu1 %4741 }
 0x5e6   :  { %vm4743_vm15 = vcmp.eq.f32.partialorder %v8138_v40, %v8336_v53 }
 0x5e7   :  { %v4744_v16 = vsel %vm4743_vm15, %v4739_v32, inf }
 0x5e8   :  { %4745 = vmin.xlane.f32.xlu1 %v4744_v16 }
 0x5f4   :  { %v8342_v17 = vpop.xlane.xlu1 %4771 }
 0x5f5   :  { %vm4773_vm9 = vcmp.eq.f32.partialorder %v8179_v29, %v8342_v17  ;;  %v8346_v42 = vpop.xlane.xlu0 %4756  ;;  %v5260_v29 = vmov 1.0  }
 0x5f6   :  { %vm4758_vm10 = vcmp.eq.f32.partialorder %v8183_v26, %v8346_v42  ;;  %v4774_v21 = vsel %vm4773_vm9, %v4769_v34, inf  ;;  %5199 = vmatpush3.msra.mxu0 %v5260_v29  ;;  %v4688_v34 = vcvt.f32.s32 %v8289_v62  ;;  %v4718_v62 = vcvt.f32.s32 %v8326_v27 }
 0x5f7   :  { %4775 = vmin.xlane.f32.xlu1 %v4774_v21  ;;  %v4759_v40 = vsel %vm4758_vm10, %v4754_v36, inf  ;;  %5200 = vmatprep.subr.mxu0 %v5259_v61 }
 0x5f8   :  { %4760 = vmin.xlane.f32.xlu0 %v4759_v40  ;;  %5201 = vmatpush3.msra.mxu0 %v5260_v29  ;;  %v4689_v37 = vshll.u32 %v4688_v34, 16 }
 0x5f9   :  { %5202 = vmatprep.subr.mxu0 %v5259_v61 }
 0x5fa   :  { %5203 = vmatpush3.msra.mxu0 %v5260_v29 }
 0x5fb   :  { %5204 = vmatprep.subr.mxu0 %v5259_v61 }
 0x5fc   :  { %5205 = vmatpush3.msra.mxu0 %v5260_v29 }
 0x5fd   :  { %5206 = vmatprep.subr.mxu0 %v5259_v61 }
 0x5fe   :  { %5207 = vmatpush3.msra.mxu0 %v5260_v29 }
 0x5ff   :  { %5208 = vmatprep.subr.mxu0 %v5259_v61 }
 0x600   :  { %5209 = vmatpush3.msra.mxu0 %v5260_v29 }
 0x601   :  { %5210 = vmatprep.subr.mxu0 %v5259_v61 }
 0x602   :  { %5211 = vmatpush3.msra.mxu0 %v5260_v29 }
 0x603   :  { %5212 = vmatprep.subr.mxu0 %v5259_v61 }
 0x604   :  { %5213 = vmatpush3.msra.mxu0 %v5260_v29 }
 0x605   :  { %v8351_v23 = vpop.xlane.xlu0 %4786  ;;  %5214 = vmatprep.subr.mxu0 %v5259_v61 }
 0x606   :  { %vm4788_vm1 = vcmp.eq.f32.partialorder %v8205_v20, %v8351_v23  ;;  %5215 = vmatpush3.msra.mxu0 %v5260_v29 }
 0x607   :  { %v4789_v7 = vsel %vm4788_vm1, %v4784_v43, inf  ;;  %5216 = vmatprep.subr.mxu0 %v5259_v61  ;;  %v4703_v43 = vcvt.f32.s32 %v8302_v14 }
 0x608   :  { %4790 = vmin.xlane.f32.xlu0 %v4789_v7  ;;  %5217 = vmatpush3.msra.mxu0 %v5260_v29 }
 0x609   :  { %5218 = vmatprep.subr.mxu0 %v5259_v61  ;;  %v4704_v0 = vshll.u32 %v4703_v43, 16 }
 0x60a   :  { %5219 = vmatpush3.msra.mxu0 %v5260_v29 }
 0x60b   :  { %5220 = vmatprep.subr.mxu0 %v5259_v61 }
 0x60c   :  { %5221 = vmatpush3.msra.mxu0 %v5260_v29 }
 0x60d   :  { %5222 = vmatprep.subr.mxu0 %v5259_v61 }
 0x60e   :  { %5223 = vmatpush3.msra.mxu0 %v5260_v29 }
 0x60f   :  { %5224 = vmatprep.subr.mxu0 %v5259_v61 }
 0x610   :  { %5225 = vmatpush3.msra.mxu0 %v5260_v29 }
 0x611   :  { %5226 = vmatprep.subr.mxu0 %v5259_v61 }
 0x612   :  { %5227 = vmatpush3.msra.mxu0 %v5260_v29 }
 0x613   :  { %v4566_v26 = vpop.xlane.xlu1 %4565  ;;  %5228 = vmatprep.subr.mxu0 %v5259_v61 }
 0x614   :  { %v4567_v20 = vcvt.f32.s32 %v4566_v26  ;;  %5229 = vmatpush3.msra.mxu0 %v5260_v29 }
 0x616   :  { %v4570_v10 = vadd.s32 %v4569_v46, %v4567_v20 }
 0x617   :  { %v4596_v30 = vpop.xlane.xlu1 %4595 }
 0x618   :  { %vm4796_vm3 = vcmp.eq.s32.totalorder %v8957_v2, %v4570_v10  ;;  %v4597_v51 = vcvt.f32.s32 %v4596_v30 }
 0x619   :  { %v5070_v52 = vsel %vm4796_vm3, 1.0, %v5259_v61 }
 0x61a   :  { %v4600_v31 = vadd.s32 %v4599_v49, %v4597_v51  ;;  %v4733_v51 = vcvt.f32.s32 %v8331_v18  ;;  %v4778_v18 = vcvt.f32.s32 %v8342_v17  ;;  %v4793_v17 = vcvt.f32.s32 %v8351_v23 }
 0x61c   :  { %vm4798_vm5 = vcmp.eq.s32.totalorder %v8957_v2, %v4600_v31  ;;  %v4734_v49 = vshll.u32 %v4733_v51, 16  ;;  %v4748_v31 = vcvt.f32.s32 %v8336_v53 }
 0x61d   :  { %v5072_v39 = vsel %vm4798_vm5, 1.0, %v5259_v61 }
 0x62a   :  { %4845 = vxpose.xlu1.b32.start [1/16] (narrow) %v5070_v52, 8  ;;  %v4719_v52 = vshll.u32 %v4718_v62, 16 }
 0x630   :  { %v4581_v47 = vpop.xlane.xlu0 %4580 }
 0x631   :  { %v4582_v25 = vcvt.f32.s32 %v4581_v47 }
 0x633   :  { %v4585_v59 = vadd.s32 %v4584_v13, %v4582_v25 }
 0x634   :  { %v4611_v35 = vpop.xlane.xlu0 %4610  ;;  %v4626_v55 = vpop.xlane.xlu1 %4625 }
 0x635   :  { %v4612_v57 = vcvt.f32.s32 %v4611_v35  ;;  %vm4797_vm4 = vcmp.eq.s32.totalorder %v8957_v2, %v4585_v59  ;;  %v4627_v5 = vcvt.f32.s32 %v4626_v55  ;;  %v4749_v35 = vshll.u32 %v4748_v31, 16 }
 0x636   :  { %v5071_v28 = vsel %vm4797_vm4, 1.0, %v5259_v61  ;;  %vm19_vm4 = vcmask 7168  }
 0x637   :  { %v4615_v24 = vadd.s32 %v4614_v12, %v4612_v57  ;;  %4846 = vxpose.xlu1.b32.cont [2/16] (narrow) %v5071_v28, 8  ;;  %v4630_v60 = vadd.s32 %v4629_v44, %v4627_v5  ;;  %v4763_v57 = vcvt.f32.s32 %v8346_v42  ;;  %20 = vst.msk [vmem:[#allocation3] sm:$0xff] %vm19_vm4, %v5259_v61 }
 0x638   :  { %v4641_v63 = vpop.xlane.xlu0 %4640  ;;  %v4656_v6 = vpop.xlane.xlu1 %4655 }
 0x639   :  { %v4642_v9 = vcvt.f32.s32 %v4641_v63  ;;  %vm4799_vm6 = vcmp.eq.s32.totalorder %v8957_v2, %v4615_v24  ;;  %v4657_v58 = vcvt.f32.s32 %v4656_v6  ;;  %vm4800_vm7 = vcmp.eq.s32.totalorder %v8957_v2, %v4630_v60 }
 0x63a   :  { %v5073_v15 = vsel %vm4799_vm6, 1.0, %v5259_v61  ;;  %v5074_v32 = vsel %vm4800_vm7, 1.0, %v5259_v61  ;;  %v4779_v63 = vshll.u32 %v4778_v18, 16  ;;  %v4764_v1 = vshll.u32 %v4763_v57, 16 }
 0x63b   :  { %4847 = vxpose.xlu1.b32.cont [3/16] (narrow) %v5072_v39, 8  ;;  %v4645_v38 = vadd.s32 %v4644_v22, %v4642_v9  ;;  %v4660_v16 = vadd.s32 %v4659_v8, %v4657_v58  ;;  %v4794_v6 = vshll.u32 %v4793_v17, 16  ;;  %v4844_v58 = vld [vmem:[#allocation2] sm:$0xff] }
 0x63c   :  { %v4671_v54 = vpop.xlane.xlu0 %4670  ;;  %v4686_v56 = vpop.xlane.xlu1 %4685 }
 0x63d   :  { %v4672_v4 = vcvt.f32.s32 %v4671_v54  ;;  %vm4801_vm8 = vcmp.eq.s32.totalorder %v8957_v2, %v4645_v38  ;;  %v4687_v40 = vcvt.f32.s32 %v4686_v56  ;;  %vm4802_vm11 = vcmp.eq.s32.totalorder %v8957_v2, %v4660_v16 }
 0x63e   :  { %v5075_v36 = vsel %vm4801_vm8, 1.0, %v5259_v61  ;;  %v5076_v7 = vsel %vm4802_vm11, 1.0, %v5259_v61  ;;  %v4949_v54 = vld [vmem:[#allocation3] sm:$0xff] }
 0x63f   :  { %4848 = vxpose.xlu1.b32.cont [4/16] (narrow) %v5073_v15, 8  ;;  %v4675_v21 = vadd.s32 %v4674_v19, %v4672_v4  ;;  %v4690_v29 = vadd.s32 %v4689_v37, %v4687_v40  ;;  %v5257_v37 = vld [vmem:[%s8449_s1] sm:$0xff] }
 0x641   :  { %v4701_v50 = vpop.xlane.xlu0 %4700  ;;  %vm4803_vm12 = vcmp.eq.s32.totalorder %v8957_v2, %v4675_v21  ;;  %vm4804_vm13 = vcmp.eq.s32.totalorder %v8957_v2, %v4690_v29 }
 0x642   :  { %v4702_v26 = vcvt.f32.s32 %v4701_v50  ;;  %v5077_v20 = vsel %vm4803_vm12, 1.0, %v5259_v61  ;;  %v5078_v14 = vsel %vm4804_vm13, 1.0, %v5259_v61 }
 0x643   :  { %4849 = vxpose.xlu1.b32.cont [5/16] (narrow) %v5074_v32, 8 }
 0x644   :  { %v4705_v46 = vadd.s32 %v4704_v0, %v4702_v26 }
 0x646   :  { %vm4805_vm14 = vcmp.eq.s32.totalorder %v8957_v2, %v4705_v46 }
 0x647   :  { %4850 = vxpose.xlu1.b32.cont [6/16] (narrow) %v5075_v36, 8  ;;  %v5079_v48 = vsel %vm4805_vm14, 1.0, %v5259_v61 }
 0x64b   :  { %4851 = vxpose.xlu1.b32.cont [7/16] (narrow) %v5076_v7, 8 }
 0x64f   :  { %4852 = vxpose.xlu1.b32.cont [8/16] (narrow) %v5077_v20, 8 }
 0x651   :  { %v4716_v10 = vpop.xlane.xlu1 %4715 }
 0x652   :  { %v4717_v30 = vcvt.f32.s32 %v4716_v10 }
 0x653   :  { %4853 = vxpose.xlu1.b32.cont [9/16] (narrow) %v5078_v14, 8 }
 0x654   :  { %v4720_v45 = vadd.s32 %v4719_v52, %v4717_v30 }
 0x656   :  { %vm4806_vm15 = vcmp.eq.s32.totalorder %v8957_v2, %v4720_v45 }
 0x657   :  { %4854 = vxpose.xlu1.b32.cont [10/16] (narrow) %v5079_v48, 8  ;;  %v5080_v27 = vsel %vm4806_vm15, 1.0, %v5259_v61 }
 0x65b   :  { %4855 = vxpose.xlu1.b32.cont [11/16] (narrow) %v5080_v27, 8 }
 0x661   :  { %v4731_v47 = vpop.xlane.xlu0 %4730 }
 0x662   :  { %v4732_v41 = vcvt.f32.s32 %v4731_v47 }
 0x664   :  { %v4735_v13 = vadd.s32 %v4734_v49, %v4732_v41 }
 0x666   :  { %vm4807_vm9 = vcmp.eq.s32.totalorder %v8957_v2, %v4735_v13 }
 0x667   :  { %v5081_v25 = vsel %vm4807_vm9, 1.0, %v5259_v61 }
 0x668   :  { %4856 = vxpose.xlu1.b32.cont [12/16] (narrow) %v5081_v25, 8 }
 0x671   :  { %v4746_v59 = vpop.xlane.xlu1 %4745 }
 0x672   :  { %v4747_v55 = vcvt.f32.s32 %v4746_v59 }
 0x674   :  { %v4750_v12 = vadd.s32 %v4749_v35, %v4747_v55 }
 0x676   :  { %vm4808_vm10 = vcmp.eq.s32.totalorder %v8957_v2, %v4750_v12 }
 0x677   :  { %v5082_v33 = vsel %vm4808_vm10, 1.0, %v5259_v61 }
 0x678   :  { %4857 = vxpose.xlu1.b32.cont [13/16] (narrow) %v5082_v33, 8 }
 0x680   :  { %v4776_v28 = vpop.xlane.xlu1 %4775 }
 0x681   :  { %v4777_v24 = vcvt.f32.s32 %v4776_v28  ;;  %v4761_v5 = vpop.xlane.xlu0 %4760 }
 0x682   :  { %v4762_v44 = vcvt.f32.s32 %v4761_v5 }
 0x683   :  { %v4780_v53 = vadd.s32 %v4779_v63, %v4777_v24 }
 0x684   :  { %v4765_v39 = vadd.s32 %v4764_v1, %v4762_v44 }
 0x685   :  { %vm4810_vm2 = vcmp.eq.s32.totalorder %v8957_v2, %v4780_v53 }
 0x686   :  { %vm4809_vm1 = vcmp.eq.s32.totalorder %v8957_v2, %v4765_v39  ;;  %v5084_v9 = vsel %vm4810_vm2, 1.0, %v5259_v61 }
 0x687   :  { %v5083_v60 = vsel %vm4809_vm1, 1.0, %v5259_v61 }
 0x688   :  { %4858 = vxpose.xlu1.b32.cont [14/16] (narrow) %v5083_v60, 8 }
 0x68c   :  { %4859 = vxpose.xlu1.b32.cont [15/16] (narrow) %v5084_v9, 8 }
 0x691   :  { %v4791_v42 = vpop.xlane.xlu0 %4790 }
 0x692   :  { %v4792_v22 = vcvt.f32.s32 %v4791_v42 }
 0x694   :  { %v4795_v11 = vadd.s32 %v4794_v6, %v4792_v22 }
 0x696   :  { %vm4811_vm3 = vcmp.eq.s32.totalorder %v8957_v2, %v4795_v11 }
 0x697   :  { %v5085_v15 = vsel %vm4811_vm3, 1.0, %v5259_v61  ;;  %v8958_v61 = vmov 0  }
 0x698   :  { %4860 = vxpose.xlu1.b32.end [16/16] (narrow) %v5085_v15, 8 }
 0x6d8   :  { %v4861_v38 = vpop.trf.xlu1 }
 0x6d9   :  { %5196 = vmatmul.mubr.f32.vlgmr.msra.gmra.mxu1 %v4861_v38  ;;  %5231 = vmatmul.mubr.f32.vlgmr.msra.gmra.mxu0 %v4861_v38 }
 0x799   :  { %v4943_v3 = vpop.f32.mrf.mxu1  ;;  %v5016_v8 = vpop.f32.mrf.mxu0 }
 0x79a   :  { %v4947_v23 = vadd.f32 %v4943_v3, %v4844_v58  ;;  %v5020_v32 = vadd.f32 %v5016_v8, %v4949_v54 }
 0x79b   :  { %v5197_v16 = vpop.f32.mrf.mxu1  ;;  %v5232_v4 = vpop.f32.mrf.mxu0 }
 0x79c   :  { %4948 = vst.msk [vmem:[#allocation2] sm:$0xff] %vm17_vm0, %v4947_v23 }
 0x79d   :  { %5022 = vst.msk [vmem:[#allocation3] sm:$0xff] %vm19_vm4, %v5020_v32 }
 0x7a3   :  { %v5029_v40 = vld [vmem:[#allocation2] sm:$0xff] }
 0x7a4   :  { %v5026_v2 = vld [vmem:[#allocation3] sm:$0xff] }
 0x7a5   :  { %v5028_v56 = vmax.f32 %v5026_v2, 1.0  ;;  %5044 = vst.msk [vmem:[%s8451_s3] sm:$0xff] %vm19_vm4, %v5026_v2  ;;  %vm5027_vm5 = vcmp.gt.f32.partialorder %v5026_v2, 0.0 }
 0x7a6   :  { %v5037_v19 = vsel %vm5027_vm5, 1, %v8958_v61 }
 0x7a7   :  { %5032 = vperm.xlu0 %5238, %v5028_v56  }
 0x7ab   :  { %5039 = vperm.xlu0 %5238, %v5037_v19  }
 0x822   :  { %v5033_v34 = vpop.permute.xlu0 %5032 }
 0x823   :  { %5239 = vrcp.f32 %v5033_v34 }
 0x826   :  { %v5040_v36 = vpop.permute.xlu0 %5039 }
 0x827   :  { %vm5041_vm6 = vcmp.eq.s32.totalorder %v5040_v36, 1 }
 0x830   :  { %v5240_v21 = vpop.eup %5239 }
 0x831   :  { %v5036_v50 = vmul.f32 %v5240_v21, %v5029_v40 }
 0x833   :  { %v5042_v43 = vsel %vm5041_vm6, %v5036_v50, %v5257_v37 }
 0x834   :  { %5043 = vst.msk [vmem:[%s8452_s2] sm:$0xff] %vm17_vm0, %v5042_v43 }

</bundles_post_ra>
